<compile_context>
chip_gen: v6e
topology: v6e:2x2x1
jax: 0.10.0
libtpu: 0.0.40
codegen_flags: <defaults>
</compile_context>

<pallas_src>
import functools

import jax
import jax.numpy as jnp
from jax.experimental import pallas as pl
from jax.experimental.pallas import tpu as pltpu

H1 = 400   # hidden widths fixed by the PyTorch module
H2 = 200
LANE = 128
SUBLANE = 8

# VMEM planning (portable across v5e / v6e / v7x):
#  * keep the estimated per-step footprint under ~40 MiB (v7x physical VMEM is
#    64 MiB — the binding budget; v5e/v6e have 128 MiB),
#  * never request less than the 32 MiB default scoped limit,
#  * never request more than 56 MiB (headroom under v7x's 64 MiB physical).
_VMEM_TILE_BUDGET = 40 << 20
_VMEM_LIMIT_FLOOR = 32 << 20
_VMEM_LIMIT_CAP = 56 << 20


def _round_up(n, m):
    return ((n + m - 1) // m) * m


def _pad2(a, rows, cols):
    return jnp.pad(a, ((0, rows - a.shape[0]), (0, cols - a.shape[1])))


# --------------------------------------------------------------------------
# Kernel: one batch tile end-to-end.  Weights are VMEM-resident across tiles.
# --------------------------------------------------------------------------
def _genome_ae_kernel(
    x_ref,
    w1_ref, b1_ref,
    w2_ref, b2_ref,
    wde_ref, bde_ref,      # fused fc_d / fc_e
    w1d_ref, b1d_ref,
    w2d_ref, b2d_ref,
    w3d_ref, b3d_ref,
    z_out_ref, xhat_out_ref,
):
    cdt = w1_ref.dtype  # MXU operand dtype (bf16); accumulation stays f32.

    def mm(act, w_ref):
        return jnp.dot(act.astype(cdt), w_ref[...],
                       preferred_element_type=jnp.float32)

    x = x_ref[...]  # already bf16 (cast in the wrapper)

    # ---- encoder ----
    h1 = jnp.maximum(mm(x, w1_ref) + b1_ref[...], 0.0)
    h2 = jnp.maximum(mm(h1, w2_ref) + b2_ref[...], 0.0)

    # fused latent head: columns [0:zd) are z_d, [zd:zd+ze) are z_e,
    # padded lanes are exactly zero (zero weight cols + zero bias lanes).
    z = mm(h2, wde_ref) + bde_ref[...]
    z_out_ref[...] = z.astype(z_out_ref.dtype)

    # ---- decoder (torch.cat([z_d, z_e], 1) is just z here) ----
    h3 = jnp.maximum(mm(z, w1d_ref) + b1d_ref[...], 0.0)
    h4 = jnp.maximum(mm(h3, w2d_ref) + b2d_ref[...], 0.0)
    x_hat = mm(h4, w3d_ref) + b3d_ref[...]
    xhat_out_ref[...] = jnp.clip(x_hat, 0.0, 2.0).astype(xhat_out_ref.dtype)  # Hardtanh(0,2)


# --------------------------------------------------------------------------
# Parameter packing: fuse fc_d/fc_e, zero-pad to lane multiples, cast to bf16.
# NOTE: the wrapper's z / x_hat slicing relies on padded weight COLS and
# padded bias LANES being exactly zero — keep this invariant if pack_params
# is ever changed (e.g. fp8 scaling).
# --------------------------------------------------------------------------
def pack_params(params, dim, zd, ze, weight_dtype=jnp.bfloat16):
    (w1, b1, w2, b2, wd, bd, we, be, w1d, b1d, w2d, b2d, w3d, b3d) = params
    dp = _round_up(dim, LANE)
    h1p = _round_up(H1, LANE)
    h2p = _round_up(H2, LANE)
    zp = _round_up(zd + ze, LANE)

    wde = jnp.concatenate([wd, we], axis=1)      # (200, zd+ze)
    bde = jnp.concatenate([bd, be], axis=1)      # (1, zd+ze)

    def W(w, r, c):
        return _pad2(w, r, c).astype(weight_dtype)

    def Bv(b, c):
        return _pad2(b, 1, c).astype(jnp.float32)

    return (
        W(w1, dp, h1p),  Bv(b1, h1p),
        W(w2, h1p, h2p), Bv(b2, h2p),
        W(wde, h2p, zp), Bv(bde, zp),
        W(w1d, zp, h2p), Bv(b1d, h2p),
        W(w2d, h2p, h1p), Bv(b2d, h1p),
        W(w3d, h1p, dp), Bv(b3d, dp),
    )


def _estimate_vmem_bytes(tb, dp, h1p, h2p, zp, packed, x_isize, xhat_isize):
    # Weights/biases are index-invariant (DMA'd once) but keep the default
    # double-buffer allocation; count both copies.
    weight_bytes = 2 * sum(int(p.size) * int(p.dtype.itemsize) for p in packed)
    io_bytes = 2 * tb * dp * x_isize              # x tile, double-buffered
    io_bytes += 2 * tb * zp * 4                   # z tile (f32), double-buffered
    io_bytes += 2 * tb * dp * xhat_isize          # x_hat tile, double-buffered
    inter_bytes = tb * (h1p + h2p + zp + h2p + h1p + dp) * 4   # f32 temps (upper bound)
    return weight_bytes + io_bytes + inter_bytes


# --------------------------------------------------------------------------
# Wrapper: batch grid, resident weights, lane-dense outputs.
# Pick B a multiple of the batch tile so the pad / output slices are no-ops.
# --------------------------------------------------------------------------
@functools.partial(jax.jit,
                   static_argnames=("dim", "zd", "ze", "block_b", "xhat_dtype"))
def genome_ae_forward(x, packed, *, dim, zd, ze, block_b=512,
                      xhat_dtype=jnp.bfloat16):
    B = x.shape[0]
    dp = packed[0].shape[0]
    h1p = packed[0].shape[1]
    h2p = packed[2].shape[1]
    zp = packed[4].shape[1]
    xhat_isize = jnp.dtype(xhat_dtype).itemsize

    # ---- batch-tile selection --------------------------------------------
    bq = _round_up(B, SUBLANE)
    tb = _round_up(min(block_b, bq), SUBLANE)
    # v7x has 2 TensorCores and the parallel batch axis is the only thing
    # sharding work across them: never leave the grid at length 1 when the
    # batch is big enough to split (harmless on single-TC v5e/v6e).
    if bq // tb < 2 and bq >= 2 * SUBLANE:
        tb = _round_up((bq + 1) // 2, SUBLANE)
    # Shrink the tile until the estimated VMEM footprint fits the portable
    # budget (binding on v7x's 64 MiB VMEM).
    while (_estimate_vmem_bytes(tb, dp, h1p, h2p, zp, packed, 2, xhat_isize)
           > _VMEM_TILE_BUDGET) and tb > 2 * SUBLANE:
        tb = _round_up(tb // 2, SUBLANE)
    bp = _round_up(bq, tb)

    # bf16 x: the kernel feeds bf16 to the MXU anyway — halves x DMA bytes.
    xp = jnp.pad(x.astype(jnp.bfloat16), ((0, bp - B), (0, dp - dim)))

    def tile_spec(feat):
        return pl.BlockSpec((tb, feat), lambda i: (i, 0))

    def resident_spec(arr):
        # Same block index every grid step -> DMA'd once, stays in VMEM.
        # (Single-buffering via pipeline_mode=pl.Buffered(1) would save the
        # second weight copy; left at the default for lowering portability —
        # the extra copy is included in the footprint estimate above.)
        return pl.BlockSpec(arr.shape, lambda i: (0, 0))

    in_specs = [tile_spec(dp)] + [resident_spec(p) for p in packed]
    out_specs = (tile_spec(zp), tile_spec(dp))
    out_shapes = (
        jax.ShapeDtypeStruct((bp, zp), jnp.float32),
        jax.ShapeDtypeStruct((bp, dp), xhat_dtype),
    )

    footprint = _estimate_vmem_bytes(tb, dp, h1p, h2p, zp, packed, 2, xhat_isize)
    vmem_limit = int(min(max(int(footprint * 1.25) + (4 << 20),
                             _VMEM_LIMIT_FLOOR), _VMEM_LIMIT_CAP))

    flops = 2 * bp * (dp * h1p + h1p * h2p + h2p * zp + zp * h2p
                      + h2p * h1p + h1p * dp)
    weight_bytes = sum(int(p.size) * int(p.dtype.itemsize) for p in packed)
    io_bytes = int(xp.size) * 2 + bp * zp * 4 + bp * dp * xhat_isize
    cost = pl.CostEstimate(flops=flops, transcendentals=0,
                           bytes_accessed=weight_bytes + io_bytes)

    z, x_hat = pl.pallas_call(
        _genome_ae_kernel,
        grid=(bp // tb,),
        out_shape=out_shapes,
        in_specs=in_specs,
        out_specs=out_specs,
        compiler_params=pltpu.CompilerParams(
            dimension_semantics=("parallel",),
            vmem_limit_bytes=vmem_limit),
        cost_estimate=cost,
    )(xp, *packed)

    z_d = z[:B, :zd]
    z_e = z[:B, zd:zd + ze]
    x_hat = x_hat[:B, :dim].astype(jnp.float32)
    return z_d, z_e, x_hat


# --------------------------------------------------------------------------
# Init + references
# --------------------------------------------------------------------------
def init_params(key, dim, zd, ze):
    """nn.Linear-style init. Weights are (in, out); biases are (1, out)."""
    def linear(key, fan_in, fan_out):
        kw, kb = jax.random.split(key)
        bound = 1.0 / jnp.sqrt(jnp.float32(fan_in))
        w = jax.random.uniform(kw, (fan_in, fan_out), jnp.float32, -bound, bound)
        b = jax.random.uniform(kb, (1, fan_out), jnp.float32, -bound, bound)
        return w, b

    keys = jax.random.split(key, 7)
    w1, b1 = linear(keys[0], dim, H1)          # fc1
    w2, b2 = linear(keys[1], H1, H2)           # fc2
    wd, bd = linear(keys[2], H2, zd)           # fc_d
    we, be = linear(keys[3], H2, ze)           # fc_e
    w1d, b1d = linear(keys[4], zd + ze, H2)    # fc1_decode
    w2d, b2d = linear(keys[5], H2, H1)         # fc2_decode
    w3d, b3d = linear(keys[6], H1, dim)        # fc3_decode
    return (w1, b1, w2, b2, wd, bd, we, be, w1d, b1d, w2d, b2d, w3d, b3d)


def reference_forward_f32(x, params):
    """Pure-JAX f32 reference matching the PyTorch forward exactly."""
    (w1, b1, w2, b2, wd, bd, we, be, w1d, b1d, w2d, b2d, w3d, b3d) = params
    h1 = jax.nn.relu(x @ w1 + b1)
    h2 = jax.nn.relu(h1 @ w2 + b2)
    z_d = h2 @ wd + bd
    z_e = h2 @ we + be
    z = jnp.concatenate([z_d, z_e], axis=1)
    h3 = jax.nn.relu(z @ w1d + b1d)
    h4 = jax.nn.relu(h3 @ w2d + b2d)
    x_hat = jnp.clip(h4 @ w3d + b3d, 0.0, 2.0)
    return z_d, z_e, x_hat


def reference_forward_bf16(x, params):
    """Pure-JAX reference using the same bf16-operand / f32-accumulate recipe
    as the kernel (matched quantization, tight comparison)."""
    (w1, b1, w2, b2, wd, bd, we, be, w1d, b1d, w2d, b2d, w3d, b3d) = params

    def dot(a, w):
        return jnp.dot(a.astype(jnp.bfloat16), w.astype(jnp.bfloat16),
                       preferred_element_type=jnp.float32)

    h1 = jax.nn.relu(dot(x, w1) + b1)
    h2 = jax.nn.relu(dot(h1, w2) + b2)
    z_d = dot(h2, wd) + bd
    z_e = dot(h2, we) + be
    z = jnp.concatenate([z_d, z_e], axis=1)
    h3 = jax.nn.relu(dot(z, w1d) + b1d)
    h4 = jax.nn.relu(dot(h3, w2d) + b2d)
    x_hat = jnp.clip(dot(h4, w3d) + b3d, 0.0, 2.0)
    return z_d, z_e, x_hat


if __name__ == "__main__":
    # Small shapes consistent with the module (dim is a constructor arg;
    # hidden widths 400/200 and zd/ze defaults as in the PyTorch code).
    # B=256 is a multiple of the chosen batch tile (pad/slice are no-ops) and
    # with the default block_b=512 it splits into an even 2-long grid so both
    # v7x TensorCores are fed.
    B, DIM, ZD, ZE = 256, 512, 100, 20

    key = jax.random.PRNGKey(0)
    kx, kp = jax.random.split(key)
    x = jax.random.normal(kx, (B, DIM), jnp.float32)
    params = init_params(kp, DIM, ZD, ZE)
    packed = pack_params(params, DIM, ZD, ZE, weight_dtype=jnp.bfloat16)

    z_d, z_e, x_hat = genome_ae_forward(x, packed, dim=DIM, zd=ZD, ze=ZE)
    jax.block_until_ready((z_d, z_e, x_hat))

    assert z_d.shape == (B, ZD) and z_e.shape == (B, ZE) and x_hat.shape == (B, DIM)

    # Tight check vs a pure-JAX reference with the same bf16 recipe
    # (reference x_hat quantized to the kernel's bf16 output dtype).
    rz_d, rz_e, rx_hat = reference_forward_bf16(x, params)
    rx_hat_q = rx_hat.astype(jnp.bfloat16).astype(jnp.float32)
    assert jnp.allclose(z_d, rz_d, atol=1e-2, rtol=1e-2)
    assert jnp.allclose(z_e, rz_e, atol=1e-2, rtol=1e-2)
    assert jnp.allclose(x_hat, rx_hat_q, atol=1e-2, rtol=1e-2)

    # Loose sanity check vs the full-f32 module semantics (bf16 weights and
    # bf16 x_hat store are the only, intentional, deviations).
    fz_d, fz_e, fx_hat = reference_forward_f32(x, params)
    assert jnp.allclose(z_d, fz_d, atol=0.1, rtol=0.1)
    assert jnp.allclose(z_e, fz_e, atol=0.1, rtol=0.1)
    assert jnp.allclose(x_hat, fx_hat, atol=0.1, rtol=0.1)

    print("KERNEL_OK")
</pallas_src>

<mosaic_0001>
module attributes {stable_mosaic.version = 11 : i64} {
  func.func @_genome_ae_kernel(%arg0: i32, %arg1: memref<128x512xbf16, #tpu.memory_space<vmem>>, %arg2: memref<512x512xbf16, #tpu.memory_space<vmem>>, %arg3: memref<1x512xf32, #tpu.memory_space<vmem>>, %arg4: memref<512x256xbf16, #tpu.memory_space<vmem>>, %arg5: memref<1x256xf32, #tpu.memory_space<vmem>>, %arg6: memref<256x128xbf16, #tpu.memory_space<vmem>>, %arg7: memref<1x128xf32, #tpu.memory_space<vmem>>, %arg8: memref<128x256xbf16, #tpu.memory_space<vmem>>, %arg9: memref<1x256xf32, #tpu.memory_space<vmem>>, %arg10: memref<256x512xbf16, #tpu.memory_space<vmem>>, %arg11: memref<1x512xf32, #tpu.memory_space<vmem>>, %arg12: memref<512x512xbf16, #tpu.memory_space<vmem>>, %arg13: memref<1x512xf32, #tpu.memory_space<vmem>>, %arg14: memref<128x128xf32, #tpu.memory_space<vmem>>, %arg15: memref<128x512xbf16, #tpu.memory_space<vmem>>) attributes {dimension_semantics = [#tpu.dimension_semantics<parallel>], iteration_bounds = array<i64: 2>, scalar_prefetch = 0 : i64, scratch_operands = 0 : i64, tpu.core_type = #tpu.core_type<tc>, window_params = [{transform_indices = @transform_0, window_bounds = array<i64: 128, 512>}, {pipeline_mode = #tpu.pipeline_mode<synchronous>, transform_indices = @transform_1, window_bounds = array<i64: 512, 512>}, {pipeline_mode = #tpu.pipeline_mode<synchronous>, transform_indices = @transform_2, window_bounds = array<i64: 1, 512>}, {pipeline_mode = #tpu.pipeline_mode<synchronous>, transform_indices = @transform_3, window_bounds = array<i64: 512, 256>}, {pipeline_mode = #tpu.pipeline_mode<synchronous>, transform_indices = @transform_4, window_bounds = array<i64: 1, 256>}, {pipeline_mode = #tpu.pipeline_mode<synchronous>, transform_indices = @transform_5, window_bounds = array<i64: 256, 128>}, {pipeline_mode = #tpu.pipeline_mode<synchronous>, transform_indices = @transform_6, window_bounds = array<i64: 1, 128>}, {pipeline_mode = #tpu.pipeline_mode<synchronous>, transform_indices = @transform_7, window_bounds = array<i64: 128, 256>}, {pipeline_mode = #tpu.pipeline_mode<synchronous>, transform_indices = @transform_8, window_bounds = array<i64: 1, 256>}, {pipeline_mode = #tpu.pipeline_mode<synchronous>, transform_indices = @transform_9, window_bounds = array<i64: 256, 512>}, {pipeline_mode = #tpu.pipeline_mode<synchronous>, transform_indices = @transform_10, window_bounds = array<i64: 1, 512>}, {pipeline_mode = #tpu.pipeline_mode<synchronous>, transform_indices = @transform_11, window_bounds = array<i64: 512, 512>}, {pipeline_mode = #tpu.pipeline_mode<synchronous>, transform_indices = @transform_12, window_bounds = array<i64: 1, 512>}, {transform_indices = @transform_13, window_bounds = array<i64: 128, 128>}, {transform_indices = @transform_14, window_bounds = array<i64: 128, 512>}]} {
    %c0 = arith.constant 0 : index
    %c0_0 = arith.constant 0 : index
    %0 = vector.load %arg1[%c0, %c0_0] : memref<128x512xbf16, #tpu.memory_space<vmem>>, vector<128x512xbf16>
    %c0_1 = arith.constant 0 : index
    %c0_2 = arith.constant 0 : index
    %1 = vector.load %arg2[%c0_1, %c0_2] : memref<512x512xbf16, #tpu.memory_space<vmem>>, vector<512x512xbf16>
    %cst = arith.constant dense<0.000000e+00> : vector<128x512xf32>
    %2 = tpu.matmul %0, %1, %cst {dimension_numbers = #tpu.dot_dimension_numbers<[1], [0], [0], [1], [0, 0, 1, 1], [], []>} : vector<128x512xbf16>, vector<512x512xbf16>, vector<128x512xf32> -> vector<128x512xf32>
    %c0_3 = arith.constant 0 : index
    %c0_4 = arith.constant 0 : index
    %3 = vector.load %arg3[%c0_3, %c0_4] : memref<1x512xf32, #tpu.memory_space<vmem>>, vector<1x512xf32>
    %4 = vector.broadcast %3 : vector<1x512xf32> to vector<128x512xf32>
    %5 = arith.addf %2, %4 : vector<128x512xf32>
    %cst_5 = arith.constant 0.000000e+00 : f32
    %6 = vector.broadcast %cst_5 : f32 to vector<128x512xf32>
    %7 = arith.maximumf %5, %6 : vector<128x512xf32>
    %8 = arith.truncf %7 : vector<128x512xf32> to vector<128x512xbf16>
    %c0_6 = arith.constant 0 : index
    %c0_7 = arith.constant 0 : index
    %9 = vector.load %arg4[%c0_6, %c0_7] : memref<512x256xbf16, #tpu.memory_space<vmem>>, vector<512x256xbf16>
    %cst_8 = arith.constant dense<0.000000e+00> : vector<128x256xf32>
    %10 = tpu.matmul %8, %9, %cst_8 {dimension_numbers = #tpu.dot_dimension_numbers<[1], [0], [0], [1], [0, 0, 1, 1], [], []>} : vector<128x512xbf16>, vector<512x256xbf16>, vector<128x256xf32> -> vector<128x256xf32>
    %c0_9 = arith.constant 0 : index
    %c0_10 = arith.constant 0 : index
    %11 = vector.load %arg5[%c0_9, %c0_10] : memref<1x256xf32, #tpu.memory_space<vmem>>, vector<1x256xf32>
    %12 = vector.broadcast %11 : vector<1x256xf32> to vector<128x256xf32>
    %13 = arith.addf %10, %12 : vector<128x256xf32>
    %cst_11 = arith.constant 0.000000e+00 : f32
    %14 = vector.broadcast %cst_11 : f32 to vector<128x256xf32>
    %15 = arith.maximumf %13, %14 : vector<128x256xf32>
    %16 = arith.truncf %15 : vector<128x256xf32> to vector<128x256xbf16>
    %c0_12 = arith.constant 0 : index
    %c0_13 = arith.constant 0 : index
    %17 = vector.load %arg6[%c0_12, %c0_13] : memref<256x128xbf16, #tpu.memory_space<vmem>>, vector<256x128xbf16>
    %cst_14 = arith.constant dense<0.000000e+00> : vector<128x128xf32>
    %18 = tpu.matmul %16, %17, %cst_14 {dimension_numbers = #tpu.dot_dimension_numbers<[1], [0], [0], [1], [0, 0, 1, 1], [], []>} : vector<128x256xbf16>, vector<256x128xbf16>, vector<128x128xf32> -> vector<128x128xf32>
    %c0_15 = arith.constant 0 : index
    %c0_16 = arith.constant 0 : index
    %19 = vector.load %arg7[%c0_15, %c0_16] : memref<1x128xf32, #tpu.memory_space<vmem>>, vector<1x128xf32>
    %20 = vector.broadcast %19 : vector<1x128xf32> to vector<128x128xf32>
    %21 = arith.addf %18, %20 : vector<128x128xf32>
    %c0_17 = arith.constant 0 : index
    %c0_18 = arith.constant 0 : index
    %22 = vector.load %arg14[%c0_17, %c0_18] : memref<128x128xf32, #tpu.memory_space<vmem>>, vector<128x128xf32>
    tpu.vector_store %arg14[%c0_17, %c0_18], %21 {strides = array<i32>} : memref<128x128xf32, #tpu.memory_space<vmem>>, vector<128x128xf32>,
    %23 = arith.truncf %21 : vector<128x128xf32> to vector<128x128xbf16>
    %c0_19 = arith.constant 0 : index
    %c0_20 = arith.constant 0 : index
    %24 = vector.load %arg8[%c0_19, %c0_20] : memref<128x256xbf16, #tpu.memory_space<vmem>>, vector<128x256xbf16>
    %cst_21 = arith.constant dense<0.000000e+00> : vector<128x256xf32>
    %25 = tpu.matmul %23, %24, %cst_21 {dimension_numbers = #tpu.dot_dimension_numbers<[1], [0], [0], [1], [0, 0, 1, 1], [], []>} : vector<128x128xbf16>, vector<128x256xbf16>, vector<128x256xf32> -> vector<128x256xf32>
    %c0_22 = arith.constant 0 : index
    %c0_23 = arith.constant 0 : index
    %26 = vector.load %arg9[%c0_22, %c0_23] : memref<1x256xf32, #tpu.memory_space<vmem>>, vector<1x256xf32>
    %27 = vector.broadcast %26 : vector<1x256xf32> to vector<128x256xf32>
    %28 = arith.addf %25, %27 : vector<128x256xf32>
    %cst_24 = arith.constant 0.000000e+00 : f32
    %29 = vector.broadcast %cst_24 : f32 to vector<128x256xf32>
    %30 = arith.maximumf %28, %29 : vector<128x256xf32>
    %31 = arith.truncf %30 : vector<128x256xf32> to vector<128x256xbf16>
    %c0_25 = arith.constant 0 : index
    %c0_26 = arith.constant 0 : index
    %32 = vector.load %arg10[%c0_25, %c0_26] : memref<256x512xbf16, #tpu.memory_space<vmem>>, vector<256x512xbf16>
    %cst_27 = arith.constant dense<0.000000e+00> : vector<128x512xf32>
    %33 = tpu.matmul %31, %32, %cst_27 {dimension_numbers = #tpu.dot_dimension_numbers<[1], [0], [0], [1], [0, 0, 1, 1], [], []>} : vector<128x256xbf16>, vector<256x512xbf16>, vector<128x512xf32> -> vector<128x512xf32>
    %c0_28 = arith.constant 0 : index
    %c0_29 = arith.constant 0 : index
    %34 = vector.load %arg11[%c0_28, %c0_29] : memref<1x512xf32, #tpu.memory_space<vmem>>, vector<1x512xf32>
    %35 = vector.broadcast %34 : vector<1x512xf32> to vector<128x512xf32>
    %36 = arith.addf %33, %35 : vector<128x512xf32>
    %cst_30 = arith.constant 0.000000e+00 : f32
    %37 = vector.broadcast %cst_30 : f32 to vector<128x512xf32>
    %38 = arith.maximumf %36, %37 : vector<128x512xf32>
    %39 = arith.truncf %38 : vector<128x512xf32> to vector<128x512xbf16>
    %c0_31 = arith.constant 0 : index
    %c0_32 = arith.constant 0 : index
    %40 = vector.load %arg12[%c0_31, %c0_32] : memref<512x512xbf16, #tpu.memory_space<vmem>>, vector<512x512xbf16>
    %cst_33 = arith.constant dense<0.000000e+00> : vector<128x512xf32>
    %41 = tpu.matmul %39, %40, %cst_33 {dimension_numbers = #tpu.dot_dimension_numbers<[1], [0], [0], [1], [0, 0, 1, 1], [], []>} : vector<128x512xbf16>, vector<512x512xbf16>, vector<128x512xf32> -> vector<128x512xf32>
    %c0_34 = arith.constant 0 : index
    %c0_35 = arith.constant 0 : index
    %42 = vector.load %arg13[%c0_34, %c0_35] : memref<1x512xf32, #tpu.memory_space<vmem>>, vector<1x512xf32>
    %43 = vector.broadcast %42 : vector<1x512xf32> to vector<128x512xf32>
    %44 = arith.addf %41, %43 : vector<128x512xf32>
    %cst_36 = arith.constant 0.000000e+00 : f32
    %cst_37 = arith.constant 2.000000e+00 : f32
    %45 = vector.broadcast %cst_36 : f32 to vector<128x512xf32>
    %46 = arith.maximumf %45, %44 : vector<128x512xf32>
    %47 = vector.broadcast %cst_37 : f32 to vector<128x512xf32>
    %48 = arith.minimumf %47, %46 : vector<128x512xf32>
    %49 = arith.truncf %48 : vector<128x512xf32> to vector<128x512xbf16>
    %c0_38 = arith.constant 0 : index
    %c0_39 = arith.constant 0 : index
    %50 = vector.load %arg15[%c0_38, %c0_39] : memref<128x512xbf16, #tpu.memory_space<vmem>>, vector<128x512xbf16>
    tpu.vector_store %arg15[%c0_38, %c0_39], %49 {strides = array<i32>} : memref<128x512xbf16, #tpu.memory_space<vmem>>, vector<128x512xbf16>,
    return
  }
  func.func @transform_0(%arg0: i32) -> (i32, i32) {
    %c0_i32 = arith.constant 0 : i32
    %c0_i32_0 = arith.constant 0 : i32
    return %arg0, %c0_i32 : i32, i32
  }
  func.func @transform_1(%arg0: i32) -> (i32, i32) {
    %c0_i32 = arith.constant 0 : i32
    %c0_i32_0 = arith.constant 0 : i32
    %c0_i32_1 = arith.constant 0 : i32
    return %c0_i32, %c0_i32_0 : i32, i32
  }
  func.func @transform_2(%arg0: i32) -> (i32, i32) {
    %c0_i32 = arith.constant 0 : i32
    %c0_i32_0 = arith.constant 0 : i32
    %c0_i32_1 = arith.constant 0 : i32
    return %c0_i32, %c0_i32_0 : i32, i32
  }
  func.func @transform_3(%arg0: i32) -> (i32, i32) {
    %c0_i32 = arith.constant 0 : i32
    %c0_i32_0 = arith.constant 0 : i32
    %c0_i32_1 = arith.constant 0 : i32
    return %c0_i32, %c0_i32_0 : i32, i32
  }
  func.func @transform_4(%arg0: i32) -> (i32, i32) {
    %c0_i32 = arith.constant 0 : i32
    %c0_i32_0 = arith.constant 0 : i32
    %c0_i32_1 = arith.constant 0 : i32
    return %c0_i32, %c0_i32_0 : i32, i32
  }
  func.func @transform_5(%arg0: i32) -> (i32, i32) {
    %c0_i32 = arith.constant 0 : i32
    %c0_i32_0 = arith.constant 0 : i32
    %c0_i32_1 = arith.constant 0 : i32
    return %c0_i32, %c0_i32_0 : i32, i32
  }
  func.func @transform_6(%arg0: i32) -> (i32, i32) {
    %c0_i32 = arith.constant 0 : i32
    %c0_i32_0 = arith.constant 0 : i32
    %c0_i32_1 = arith.constant 0 : i32
    return %c0_i32, %c0_i32_0 : i32, i32
  }
  func.func @transform_7(%arg0: i32) -> (i32, i32) {
    %c0_i32 = arith.constant 0 : i32
    %c0_i32_0 = arith.constant 0 : i32
    %c0_i32_1 = arith.constant 0 : i32
    return %c0_i32, %c0_i32_0 : i32, i32
  }
  func.func @transform_8(%arg0: i32) -> (i32, i32) {
    %c0_i32 = arith.constant 0 : i32
    %c0_i32_0 = arith.constant 0 : i32
    %c0_i32_1 = arith.constant 0 : i32
    return %c0_i32, %c0_i32_0 : i32, i32
  }
  func.func @transform_9(%arg0: i32) -> (i32, i32) {
    %c0_i32 = arith.constant 0 : i32
    %c0_i32_0 = arith.constant 0 : i32
    %c0_i32_1 = arith.constant 0 : i32
    return %c0_i32, %c0_i32_0 : i32, i32
  }
  func.func @transform_10(%arg0: i32) -> (i32, i32) {
    %c0_i32 = arith.constant 0 : i32
    %c0_i32_0 = arith.constant 0 : i32
    %c0_i32_1 = arith.constant 0 : i32
    return %c0_i32, %c0_i32_0 : i32, i32
  }
  func.func @transform_11(%arg0: i32) -> (i32, i32) {
    %c0_i32 = arith.constant 0 : i32
    %c0_i32_0 = arith.constant 0 : i32
    %c0_i32_1 = arith.constant 0 : i32
    return %c0_i32, %c0_i32_0 : i32, i32
  }
  func.func @transform_12(%arg0: i32) -> (i32, i32) {
    %c0_i32 = arith.constant 0 : i32
    %c0_i32_0 = arith.constant 0 : i32
    %c0_i32_1 = arith.constant 0 : i32
    return %c0_i32, %c0_i32_0 : i32, i32
  }
  func.func @transform_13(%arg0: i32) -> (i32, i32) {
    %c0_i32 = arith.constant 0 : i32
    %c0_i32_0 = arith.constant 0 : i32
    return %arg0, %c0_i32 : i32, i32
  }
  func.func @transform_14(%arg0: i32) -> (i32, i32) {
    %c0_i32 = arith.constant 0 : i32
    %c0_i32_0 = arith.constant 0 : i32
    return %arg0, %c0_i32 : i32, i32
  }
}

</mosaic_0001>

<bundles_post_ra>
// kernel: genome_ae_forward.1
= control target key start
LH: loop header
LB: loop body
LE: loop exit
PB: predicated region body
PF: predicated region fallthrough
CT: control target
= control target key end

     0   :  { %20 = vsyncpa [#allocation3], 0  ;;  %s8886_s0 = inlined_call_operand.vmem [shape: bf16[256,512], index: 0, kind: input, shape index: {}]   ;;  %s8887_s1 = inlined_call_operand.vmem [shape: bf16[512,512], index: 1, kind: input, shape index: {}]   ;;  %s8888_s2 = inlined_call_operand.hbm [shape: f32[1,512], index: 2, kind: input, shape index: {}]   ;;  %s8889_s3 = inlined_call_operand.vmem [shape: bf16[512,256], index: 3, kind: input, shape index: {}]   ;;  %s8890_s4 = inlined_call_operand.hbm [shape: f32[1,256], index: 4, kind: input, shape index: {}]   ;;  %s8891_s5 = inlined_call_operand.hbm [shape: bf16[256,128], index: 5, kind: input, shape index: {}]   ;;  %s8892_s6 = inlined_call_operand.vmem [shape: f32[1,128], index: 6, kind: input, shape index: {}]   ;;  %s8893_s7 = inlined_call_operand.hbm [shape: bf16[128,256], index: 7, kind: input, shape index: {}]   ;;  %s8894_s8 = inlined_call_operand.hbm [shape: f32[1,256], index: 8, kind: input, shape index: {}]   ;;  %s8895_s9 = inlined_call_operand.hbm [shape: bf16[256,512], index: 9, kind: input, shape index: {}]   ;;  %s8896_s10 = inlined_call_operand.vmem [shape: f32[1,512], index: 10, kind: input, shape index: {}]   ;;  %s8897_s11 = inlined_call_operand.hbm [shape: bf16[512,512], index: 11, kind: input, shape index: {}]   ;;  %s8898_s12 = inlined_call_operand.vmem [shape: f32[1,512], index: 12, kind: input, shape index: {}]   ;;  %s8899_s13 = inlined_call_operand.vmem [shape: f32[256,128], index: 13, kind: output, shape index: {0}]   ;;  %s8900_s14 = inlined_call_operand.vmem [shape: bf16[256,512], index: 14, kind: output, shape index: {1}]  }
   0x1   :  { %21 = vsyncpa [#allocation5], 0 }
   0x2   :  { %22 = vsyncpa [#allocation8], 0 }
   0x3   :  { %23 = vsyncpa [#allocation11], 0  ;;  %s7448_s29 = smov 0  }
   0x4 LB: > { %s7359_s30 = smov [#allocation4]   ;;  %s8904_s16 = sadd.s32 4294967295, %s7357_s29   ;;  %s7357_s29 = sphi %s7448_s29, %s29_s29  }
   0x5   : > { %s394_s15 = sshll.u32 %s7359_s30, 4  ;;  %p5797_p0 = scmp.ge.s32.totalorder %s7357_s29, 1  ;;  %s395_s15 = int_to_ptr.vmem [resolvable:$true] %s394_s15 }
   0x6   : > { %p364_p1 = scmp.lt.s32.totalorder %s7357_s29, 3  ;;  %p7458_p2 = scmp.eq.s32.totalorder %s8904_s16, 0 }
   0x7   : > { %s7360_s19 = smov [#allocation7]   ;;  %s7361_s22 = smov [#allocation10]  }
   0x8   : > { %s8907_s17 = scalar_select %p7458_p2, 1, 0 }
   0x9   : > { %p7462_p3 = pnand %p5797_p0, %p364_p1  ;;  %s420_s20 = sshll.u32 %s7360_s19, 4  ;;  %s7468_s20 = int_to_ptr.vmem [resolvable:$true] %s420_s20 }
   0xa   : > { %s444_s23 = sshll.u32 %s7361_s22, 4  ;;  %s7164_s25 = scalar_lea.vmem %s395_s15, 32  ;;  %s7476_s23 = int_to_ptr.vmem [resolvable:$true] %s444_s23 }
   0xb   : > { %s8908_s18 = scalar_select %p7462_p3, 1, 0 }
   0xc   : > { %p6431_p4 = pneg %p7462_p3  ;;  %p7165_p7 = scmp.ne.s32.totalorder %s395_s15, %s7164_s25 }
   0xd   : > { %p7172_p10 = scmp.lt.s32.totalorder %s395_s15, %s395_s15  ;;  %p7173_p11 = scmp.lt.s32.totalorder %s7164_s25, %s7164_s25 }
   0xe   : > { %p7472_p5 = pnand %p7458_p2, %p6431_p4 }
   0xf   : > { %p7174_p12 = por %p7173_p11, %p7172_p10 }
  0x10   : > { %p7480_p6 = pneg %p7472_p5 }
  0x12   : > { %p7167_p8 = pnand %p7165_p7, %p7480_p6 }
  0x14   : > { %p7168_p9 = pneg %p7167_p8 }
  0x16   : > { %p7175_p13 = pnand %p7174_p12, %p7168_p9 }
  0x18   : > { %7178 = shalt.err (!%p7175_p13)
}
  0x19   : > { %6437 = dma.hbm_to_vmem [thread:$0]  (!%p7472_p5), %s8890_s4, 32, %s395_s15, [#allocation5]  }
  0x1a   : > { %s7190_s28 = scalar_lea.vmem %s7468_s20, 2048  ;;  %p7198_p7 = scmp.lt.s32.totalorder %s7468_s20, %s7468_s20 }
  0x1b   : > { %p7191_p0 = scmp.ne.s32.totalorder %s7468_s20, %s7190_s28  ;;  %p7199_p8 = scmp.lt.s32.totalorder %s7190_s28, %s7190_s28 }
  0x1d   : > { %p7193_p1 = pnand %p7191_p0, %p7480_p6  ;;  %p7200_p9 = por %p7199_p8, %p7198_p7 }
  0x1f   : > { %p7194_p4 = pneg %p7193_p1 }
  0x21   : > { %p7201_p10 = pnand %p7200_p9, %p7194_p4 }
  0x23   : > { %7204 = shalt.err (!%p7201_p10)
}
  0x24   : > { %s7362_s30 = smov 128   ;;  %s7363_s19 = smov 8  }
  0x25   : > { %6443 = dma.hbm_to_vmem [thread:$0]  (!%p7472_p5), %s8893_s7, 2048, %s7468_s20, [#allocation8], %s7362_s30, %s7362_s30, %s7363_s19  }
  0x26   : > { %s7216_s25 = scalar_lea.vmem %s7476_s23, 8192  ;;  %p7224_p0 = scmp.lt.s32.totalorder %s7476_s23, %s7476_s23 }
  0x27   : > { %p7217_p11 = scmp.ne.s32.totalorder %s7476_s23, %s7216_s25  ;;  %p7225_p1 = scmp.lt.s32.totalorder %s7216_s25, %s7216_s25 }
  0x29   : > { %p7219_p12 = pnand %p7217_p11, %p7480_p6  ;;  %p7226_p4 = por %p7225_p1, %p7224_p0 }
  0x2b   : > { %p7220_p13 = pneg %p7219_p12 }
  0x2d   : > { %p7227_p7 = pnand %p7226_p4, %p7220_p13 }
  0x2f   : > { %7230 = shalt.err (!%p7227_p7)
}
  0x30   : > { %s8905_s26 = smov 256   ;;  %s8906_s27 = smov 16  }
  0x31   : > { %6449 = dma.hbm_to_vmem [thread:$0]  (!%p7472_p5), %s8895_s9, 8192, %s7476_s23, [#allocation11], %s8905_s26, %s8905_s26, %s8906_s27  }
  0x32   : > { %s7366_s30 = smov [#allocation2]   ;;  %s7367_s15 = smov [#allocation6]  }
  0x33   : > { %s380_s19 = sshll.u32 %s7366_s30, 4  ;;  %s404_s22 = sshll.u32 %s7367_s15, 4  ;;  %s381_s19 = int_to_ptr.vmem [resolvable:$true] %s380_s19  ;;  %s405_s22 = int_to_ptr.vmem [resolvable:$true] %s404_s22 }
  0x34   : > { %s7242_s25 = scalar_lea.vmem %s381_s19, 64  ;;  %p7250_p11 = scmp.lt.s32.totalorder %s381_s19, %s381_s19 }
  0x35   : > { %p7243_p8 = scmp.ne.s32.totalorder %s381_s19, %s7242_s25  ;;  %p7251_p12 = scmp.lt.s32.totalorder %s7242_s25, %s7242_s25 }
  0x37   : > { %p7245_p9 = pnand %p7243_p8, %p7480_p6  ;;  %p7252_p13 = por %p7251_p12, %p7250_p11 }
  0x39   : > { %p7246_p10 = pneg %p7245_p9 }
  0x3b   : > { %p7253_p0 = pnand %p7252_p13, %p7246_p10 }
  0x3d   : > { %7256 = shalt.err (!%p7253_p0)
}
  0x3e   : > { %6434 = dma.hbm_to_vmem [thread:$0]  (!%p7472_p5), %s8888_s2, 64, %s381_s19, [#allocation3]  }
  0x3f   : > { %s7268_s28 = scalar_lea.vmem %s405_s22, 2048  ;;  %p7276_p2 = scmp.lt.s32.totalorder %s405_s22, %s405_s22 }
  0x40   : > { %p7269_p1 = scmp.ne.s32.totalorder %s405_s22, %s7268_s28  ;;  %p7277_p8 = scmp.lt.s32.totalorder %s7268_s28, %s7268_s28 }
  0x42   : > { %p7271_p4 = pnand %p7269_p1, %p7480_p6  ;;  %p7278_p9 = por %p7277_p8, %p7276_p2 }
  0x44   : > { %p7272_p7 = pneg %p7271_p4 }
  0x46   : > { %p7279_p3 = pnand %p7278_p9, %p7272_p7 }
  0x48   : > { %7282 = shalt.err (!%p7279_p3)
}
  0x49   : > { %s7368_s30 = smov 64   ;;  %s7369_s15 = smov 4  }
  0x4a   : > { %6440 = dma.hbm_to_vmem [thread:$0]  (!%p7472_p5), %s8891_s5, 2048, %s405_s22, [#allocation5], %s7368_s30, %s7368_s30, %s7369_s15  }
  0x4b   : > { %s7370_s19 = smov [#allocation9]   ;;  %s7371_s23 = smov [#allocation12]  }
  0x4c   : > { %s434_s20 = sshll.u32 %s7370_s19, 4  ;;  %s460_s26 = sshll.u32 %s7371_s23, 4  ;;  %s435_s20 = int_to_ptr.vmem [resolvable:$true] %s434_s20  ;;  %s461_s26 = int_to_ptr.vmem [resolvable:$true] %s460_s26 }
  0x4d   : > { %s7294_s27 = scalar_lea.vmem %s435_s20, 32  ;;  %p7302_p11 = scmp.lt.s32.totalorder %s435_s20, %s435_s20 }
  0x4e   : > { %p7295_p10 = scmp.ne.s32.totalorder %s435_s20, %s7294_s27  ;;  %p7303_p12 = scmp.lt.s32.totalorder %s7294_s27, %s7294_s27 }
  0x50   : > { %p7297_p2 = pnand %p7295_p10, %p7480_p6  ;;  %p7304_p13 = por %p7303_p12, %p7302_p11 }
  0x52   : > { %p7298_p3 = pneg %p7297_p2 }
  0x54   : > { %p7305_p0 = pnand %p7304_p13, %p7298_p3 }
  0x56   : > { %7308 = shalt.err (!%p7305_p0)
}
  0x57   : > { %6446 = dma.hbm_to_vmem [thread:$0]  (!%p7472_p5), %s8894_s8, 32, %s435_s20, [#allocation8]  }
  0x58   : > { %s7320_s28 = scalar_lea.vmem %s461_s26, 16384  ;;  %p7328_p8 = scmp.lt.s32.totalorder %s461_s26, %s461_s26 }
  0x59   : > { %p7321_p1 = scmp.ne.s32.totalorder %s461_s26, %s7320_s28  ;;  %p7329_p9 = scmp.lt.s32.totalorder %s7320_s28, %s7320_s28 }
  0x5b   : > { %p7323_p4 = pnand %p7321_p1, %p7480_p6  ;;  %p7330_p10 = por %p7329_p9, %p7328_p8 }
  0x5d   : > { %p7324_p7 = pneg %p7323_p4 }
  0x5f   : > { %p7331_p2 = pnand %p7330_p10, %p7324_p7 }
  0x61   : > { %7334 = shalt.err (!%p7331_p2)
}
  0x62   : > { %s8911_s27 = smov 16   ;;  %s8912_s30 = smov 256  }
  0x63   : > { %6452 = dma.hbm_to_vmem [thread:$0]  (!%p7472_p5), %s8897_s11, 16384, %s461_s26, [#allocation11], %s8912_s30, %s8912_s30, %s8911_s27  }
  0x64   : > { %p8913_p3 = scmp.ne.s32.totalorder %s8908_s18, 0 }
  0x65   : > { %p8914_p6 = scmp.ne.s32.totalorder (!%p8913_p3), %s8907_s17, 0 }
  0x66   : > { %489 = sbr.rel (%p8913_p3) target bundleno = 1604 (0x644), region = 72 }
  0x6b   : > { %7340 = dma.done.wait (%p8914_p6), [#allocation3], 64  }
  0x6c   : > { %7342 = vsyncadd (%p8914_p6), [#allocation3], 4294967232 }
  0x6d   : > { %7344 = dma.done.wait (%p8914_p6), [#allocation5], 2080  }
  0x6e   : > { %7346 = vsyncadd (%p8914_p6), [#allocation5], 4294965216 }
  0x6f   : > { %7348 = dma.done.wait (%p8914_p6), [#allocation8], 2080  }
  0x70   : > { %7350 = vsyncadd (%p8914_p6), [#allocation8], 4294965216 }
  0x71   : > { %7352 = dma.done.wait (%p8914_p6), [#allocation11], 24576  }
  0x72   : > { %7354 = vsyncadd (%p8914_p6), [#allocation11], 4294942720  ;;  %v6489_v0 = vld [vmem:[%s8887_s1 + $0xe4] ss:$16 sps:$4 sm:$0xff]   ;;  %v6493_v2 = vld [vmem:[%s8887_s1 + $0xe0] ss:$16 sps:$4 sm:$0xff]  }
  0x73   : > { %v6491_v1 = vld [vmem:[%s8887_s1 + $0x2e4] ss:$16 sps:$4 sm:$0xff]   ;;  %1569 = vmatprep.subr.bf16.mxu0 %v6489_v0  ;;  %v6494_v3 = vld [vmem:[%s8887_s1 + $0x2e0] ss:$16 sps:$4 sm:$0xff]   ;;  %s8915_s18 = sadd.s32 4294967295, %s7357_s29  }
  0x74   : > { %1682 = vmatprep.subr.bf16.mxu1 %v6491_v1  ;;  %v6495_v4 = vld [vmem:[%s8887_s1 + $0xc4] ss:$16 sps:$4 sm:$0xff]   ;;  %1570 = vmatpush1.bf16.msra.mxu0 %v6493_v2  ;;  %v6499_v6 = vld [vmem:[%s8887_s1 + $0xc0] ss:$16 sps:$4 sm:$0xff]   ;;  %s5814_s21 = sshll.u32 %s8915_s18, 4 }
  0x75   : > { %1683 = vmatpush1.bf16.msra.mxu1 %v6494_v3  ;;  %v6497_v5 = vld [vmem:[%s8887_s1 + $0x2c4] ss:$16 sps:$4 sm:$0xff]   ;;  %1571 = vmatprep.subr.bf16.mxu0 %v6495_v4  ;;  %v6500_v7 = vld [vmem:[%s8887_s1 + $0x2c0] ss:$16 sps:$4 sm:$0xff]   ;;  %p567_p5 = scmp.lt.s32.totalorder %s5814_s21, 31 }
  0x76   : > { %1684 = vmatprep.subr.bf16.mxu1 %v6497_v5  ;;  %v6501_v8 = vld [vmem:[%s8887_s1 + $0xa4] ss:$16 sps:$4 sm:$0xff]   ;;  %v6505_v10 = vld [vmem:[%s8887_s1 + $0xa0] ss:$16 sps:$4 sm:$0xff]   ;;  %v6593_v2 = vld [vmem:[%s8887_s1 + $0xec] ss:$16 sps:$4 sm:$0xff]  }
  0x77   : > { %v6503_v9 = vld [vmem:[%s8887_s1 + $0x2a4] ss:$16 sps:$4 sm:$0xff]   ;;  %v6506_v11 = vld [vmem:[%s8887_s1 + $0x2a0] ss:$16 sps:$4 sm:$0xff]   ;;  %s8917_s21 = smov (!%p567_p5, %s5814_s21), 31 }
  0x78   : > { %1572 = vmatpush1.bf16.msra.mxu0 %v6499_v6  ;;  %v6507_v12 = vld [vmem:[%s8887_s1 + $0x84] ss:$16 sps:$4 sm:$0xff]   ;;  %v6511_v14 = vld [vmem:[%s8887_s1 + $0x80] ss:$16 sps:$4 sm:$0xff]   ;;  %s6305_s30 = sshll.u32 %s8917_s21, 4  ;;  %s5818_s24 = sshll.u32 %s8917_s21, 3 }
  0x79   : > { %1685 = vmatpush1.bf16.msra.mxu1 %v6500_v7  ;;  %1573 = vmatprep.subr.bf16.mxu0 %v6501_v8  ;;  %v6509_v13 = vld [vmem:[%s8887_s1 + $0x284] ss:$16 sps:$4 sm:$0xff]   ;;  %v6512_v15 = vld [vmem:[%s8887_s1 + $0x280] ss:$16 sps:$4 sm:$0xff]   ;;  %s7712_s16 = scalar_lea.vmem %s8886_s0, %s6305_s30  ;;  %v6596_v3 = vld [vmem:[%s8887_s1 + $0x2ec] ss:$16 sps:$4 sm:$0xff]   ;;  %s8489_s17 = scalar_lea.vmem %s8899_s13, %s5818_s24 }
  0x7a   : > { %1686 = vmatprep.subr.bf16.mxu1 %v6503_v9  ;;  %v6513_v16 = vld [vmem:[%s8887_s1 + $0x64] ss:$16 sps:$4 sm:$0xff]   ;;  %v6517_v18 = vld [vmem:[%s8887_s1 + $0x60] ss:$16 sps:$4 sm:$0xff]   ;;  %v7733_v51 = vld [vmem:[%s7712_s16 + $0xc] ss:$16 sps:$4 sm:$0xff]   ;;  %s8782_s18 = scalar_lea.vmem %s8900_s14, %s6305_s30 }
  0x7b   : > { %v6515_v17 = vld [vmem:[%s8887_s1 + $0x264] ss:$16 sps:$4 sm:$0xff]   ;;  %v6518_v19 = vld [vmem:[%s8887_s1 + $0x260] ss:$16 sps:$4 sm:$0xff]   ;;  %1714 = vmatprep.mubr.bf16.mxu1 %v7733_v51  ;;  %v7789_v5 = vld [vmem:[%s7712_s16 + $0x8] ss:$16 sps:$4 sm:$0xff]  }
  0x7c   : > { %1574 = vmatpush1.bf16.msra.mxu0 %v6505_v10  ;;  %v6519_v20 = vld [vmem:[%s8887_s1 + $0x44] ss:$16 sps:$4 sm:$0xff]   ;;  %v6523_v22 = vld [vmem:[%s8887_s1 + $0x40] ss:$16 sps:$4 sm:$0xff]   ;;  %v6591_v6 = vld [vmem:[%s8887_s1 + $0xe8] ss:$16 sps:$4 sm:$0xff]  }
  0x7d   : > { %1687 = vmatpush1.bf16.msra.mxu1 %v6506_v11  ;;  %1575 = vmatprep.subr.bf16.mxu0 %v6507_v12  ;;  %v6521_v21 = vld [vmem:[%s8887_s1 + $0x244] ss:$16 sps:$4 sm:$0xff]   ;;  %v6524_v23 = vld [vmem:[%s8887_s1 + $0x240] ss:$16 sps:$4 sm:$0xff]   ;;  %v6594_v7 = vld [vmem:[%s8887_s1 + $0x2e8] ss:$16 sps:$4 sm:$0xff]  }
  0x7e   : > { %1688 = vmatprep.subr.bf16.mxu1 %v6509_v13  ;;  %v6525_v24 = vld [vmem:[%s8887_s1 + $0x24] ss:$16 sps:$4 sm:$0xff]   ;;  %v6529_v26 = vld [vmem:[%s8887_s1 + $0x20] ss:$16 sps:$4 sm:$0xff]   ;;  %v6599_v8 = vld [vmem:[%s8887_s1 + $0xcc] ss:$16 sps:$4 sm:$0xff]  }
  0x7f   : > { %v6527_v25 = vld [vmem:[%s8887_s1 + $0x224] ss:$16 sps:$4 sm:$0xff]   ;;  %v6530_v27 = vld [vmem:[%s8887_s1 + $0x220] ss:$16 sps:$4 sm:$0xff]   ;;  %v6602_v9 = vld [vmem:[%s8887_s1 + $0x2cc] ss:$16 sps:$4 sm:$0xff]  }
  0x80   : > { %1576 = vmatpush1.bf16.msra.mxu0 %v6511_v14  ;;  %v6531_v28 = vld [vmem:[%s8887_s1 + $0x4] ss:$16 sps:$4 sm:$0xff]   ;;  %v6535_v30 = vld [vmem:[%s8887_s1] ss:$16 sps:$4 sm:$0xff]   ;;  %v7807_v11 = vld [vmem:[%s7712_s16 + $0x2c] ss:$16 sps:$4 sm:$0xff]  }
  0x81   : > { %1689 = vmatpush1.bf16.msra.mxu1 %v6512_v15  ;;  %1577 = vmatprep.subr.bf16.mxu0 %v6513_v16  ;;  %v6533_v29 = vld [vmem:[%s8887_s1 + $0x204] ss:$16 sps:$4 sm:$0xff]   ;;  %v6536_v31 = vld [vmem:[%s8887_s1 + $0x200] ss:$16 sps:$4 sm:$0xff]   ;;  %v6597_v12 = vld [vmem:[%s8887_s1 + $0xc8] ss:$16 sps:$4 sm:$0xff]  }
  0x82   : > { %1690 = vmatprep.subr.bf16.mxu1 %v6515_v17  ;;  %v6537_v32 = vld [vmem:[%s8887_s1 + $0x1e4] ss:$16 sps:$4 sm:$0xff]   ;;  %v6541_v34 = vld [vmem:[%s8887_s1 + $0x1e0] ss:$16 sps:$4 sm:$0xff]   ;;  %v6600_v13 = vld [vmem:[%s8887_s1 + $0x2c8] ss:$16 sps:$4 sm:$0xff]  }
  0x83   : > { %v6539_v33 = vld [vmem:[%s8887_s1 + $0x3e4] ss:$16 sps:$4 sm:$0xff]   ;;  %v6542_v35 = vld [vmem:[%s8887_s1 + $0x3e0] ss:$16 sps:$4 sm:$0xff]   ;;  %v6611_v14 = vld [vmem:[%s8887_s1 + $0xac] ss:$16 sps:$4 sm:$0xff]  }
  0x84   : > { %1578 = vmatpush1.bf16.msra.mxu0 %v6517_v18  ;;  %v6543_v36 = vld [vmem:[%s8887_s1 + $0x1c4] ss:$16 sps:$4 sm:$0xff]   ;;  %v6547_v38 = vld [vmem:[%s8887_s1 + $0x1c0] ss:$16 sps:$4 sm:$0xff]   ;;  %v6614_v15 = vld [vmem:[%s8887_s1 + $0x2ac] ss:$16 sps:$4 sm:$0xff]  }
  0x85   : > { %1691 = vmatpush1.bf16.msra.mxu1 %v6518_v19  ;;  %1579 = vmatprep.subr.bf16.mxu0 %v6519_v20  ;;  %v6545_v37 = vld [vmem:[%s8887_s1 + $0x3c4] ss:$16 sps:$4 sm:$0xff]   ;;  %v6548_v39 = vld [vmem:[%s8887_s1 + $0x3c0] ss:$16 sps:$4 sm:$0xff]   ;;  %v7829_v17 = vld [vmem:[%s7712_s16 + $0x28] ss:$16 sps:$4 sm:$0xff]  }
  0x86   : > { %1692 = vmatprep.subr.bf16.mxu1 %v6521_v21  ;;  %v6549_v40 = vld [vmem:[%s8887_s1 + $0x1a4] ss:$16 sps:$4 sm:$0xff]   ;;  %v6553_v42 = vld [vmem:[%s8887_s1 + $0x1a0] ss:$16 sps:$4 sm:$0xff]   ;;  %v6609_v18 = vld [vmem:[%s8887_s1 + $0xa8] ss:$16 sps:$4 sm:$0xff]  }
  0x87   : > { %v6551_v41 = vld [vmem:[%s8887_s1 + $0x3a4] ss:$16 sps:$4 sm:$0xff]   ;;  %v6554_v43 = vld [vmem:[%s8887_s1 + $0x3a0] ss:$16 sps:$4 sm:$0xff]   ;;  %v6612_v19 = vld [vmem:[%s8887_s1 + $0x2a8] ss:$16 sps:$4 sm:$0xff]  }
  0x88   : > { %1580 = vmatpush1.bf16.msra.mxu0 %v6523_v22  ;;  %v6555_v44 = vld [vmem:[%s8887_s1 + $0x184] ss:$16 sps:$4 sm:$0xff]   ;;  %v6559_v46 = vld [vmem:[%s8887_s1 + $0x180] ss:$16 sps:$4 sm:$0xff]   ;;  %v6617_v20 = vld [vmem:[%s8887_s1 + $0x8c] ss:$16 sps:$4 sm:$0xff]  }
  0x89   : > { %1693 = vmatpush1.bf16.msra.mxu1 %v6524_v23  ;;  %1581 = vmatprep.subr.bf16.mxu0 %v6525_v24  ;;  %v6557_v45 = vld [vmem:[%s8887_s1 + $0x384] ss:$16 sps:$4 sm:$0xff]   ;;  %v6560_v47 = vld [vmem:[%s8887_s1 + $0x380] ss:$16 sps:$4 sm:$0xff]   ;;  %v6620_v21 = vld [vmem:[%s8887_s1 + $0x28c] ss:$16 sps:$4 sm:$0xff]  }
  0x8a   : > { %1694 = vmatprep.subr.bf16.mxu1 %v6527_v25  ;;  %v6561_v48 = vld [vmem:[%s8887_s1 + $0x164] ss:$16 sps:$4 sm:$0xff]   ;;  %v6565_v52 = vld [vmem:[%s8887_s1 + $0x160] ss:$16 sps:$4 sm:$0xff]   ;;  %v7847_v23 = vld [vmem:[%s7712_s16 + $0x4c] ss:$16 sps:$4 sm:$0xff]  }
  0x8b   : > { %v7727_v49 = vld [vmem:[%s7712_s16 + $0x4] ss:$16 sps:$4 sm:$0xff]   ;;  %v6566_v53 = vld [vmem:[%s8887_s1 + $0x360] ss:$16 sps:$4 sm:$0xff]   ;;  %v6615_v24 = vld [vmem:[%s8887_s1 + $0x88] ss:$16 sps:$4 sm:$0xff]  }
  0x8c   : > { %1582 = vmatpush1.bf16.msra.mxu0 %v6529_v26  ;;  %v6563_v50 = vld [vmem:[%s8887_s1 + $0x364] ss:$16 sps:$4 sm:$0xff]   ;;  %1601 = vmatprep.mubr.bf16.mxu0 %v7727_v49  ;;  %v6571_v56 = vld [vmem:[%s8887_s1 + $0x140] ss:$16 sps:$4 sm:$0xff]   ;;  %v6618_v25 = vld [vmem:[%s8887_s1 + $0x288] ss:$16 sps:$4 sm:$0xff]  }
  0x8d   : > { %1695 = vmatpush1.bf16.msra.mxu1 %v6530_v27  ;;  %1583 = vmatprep.subr.bf16.mxu0 %v6531_v28  ;;  %v6567_v54 = vld [vmem:[%s8887_s1 + $0x144] ss:$16 sps:$4 sm:$0xff]   ;;  %v6572_v57 = vld [vmem:[%s8887_s1 + $0x340] ss:$16 sps:$4 sm:$0xff]   ;;  %v6629_v26 = vld [vmem:[%s8887_s1 + $0x6c] ss:$16 sps:$4 sm:$0xff]  }
  0x8e   : > { %1696 = vmatprep.subr.bf16.mxu1 %v6533_v29  ;;  %v6569_v55 = vld [vmem:[%s8887_s1 + $0x344] ss:$16 sps:$4 sm:$0xff]   ;;  %v6577_v60 = vld [vmem:[%s8887_s1 + $0x120] ss:$16 sps:$4 sm:$0xff]   ;;  %v6632_v27 = vld [vmem:[%s8887_s1 + $0x26c] ss:$16 sps:$4 sm:$0xff]  }
  0x8f   : > { %v6573_v58 = vld [vmem:[%s8887_s1 + $0x124] ss:$16 sps:$4 sm:$0xff]   ;;  %v6578_v61 = vld [vmem:[%s8887_s1 + $0x320] ss:$16 sps:$4 sm:$0xff]   ;;  %v7869_v29 = vld [vmem:[%s7712_s16 + $0x48] ss:$16 sps:$4 sm:$0xff]  }
  0x90   : > { %1584 = vmatpush1.bf16.msra.mxu0 %v6535_v30  ;;  %v6575_v59 = vld [vmem:[%s8887_s1 + $0x324] ss:$16 sps:$4 sm:$0xff]   ;;  %v6583_v0 = vld [vmem:[%s8887_s1 + $0x100] ss:$16 sps:$4 sm:$0xff]   ;;  %v6627_v30 = vld [vmem:[%s8887_s1 + $0x68] ss:$16 sps:$4 sm:$0xff]  }
  0x91   : > { %1697 = vmatpush1.bf16.msra.mxu1 %v6536_v31  ;;  %1585 = vmatprep.subr.bf16.mxu0 %v6537_v32  ;;  %v6579_v62 = vld [vmem:[%s8887_s1 + $0x104] ss:$16 sps:$4 sm:$0xff]   ;;  %v6584_v1 = vld [vmem:[%s8887_s1 + $0x300] ss:$16 sps:$4 sm:$0xff]   ;;  %v6630_v31 = vld [vmem:[%s8887_s1 + $0x268] ss:$16 sps:$4 sm:$0xff]  }
  0x92   : > { %1698 = vmatprep.subr.bf16.mxu1 %v6539_v33  ;;  %v6581_v63 = vld [vmem:[%s8887_s1 + $0x304] ss:$16 sps:$4 sm:$0xff]   ;;  %v7786_v4 = vld [vmem:[%s7712_s16] ss:$16 sps:$4 sm:$0xff]   ;;  %v6635_v32 = vld [vmem:[%s8887_s1 + $0x4c] ss:$16 sps:$4 sm:$0xff]  }
  0x93   : > { %v7804_v10 = vld [vmem:[%s7712_s16 + $0x24] ss:$16 sps:$4 sm:$0xff]   ;;  %v7826_v16 = vld [vmem:[%s7712_s16 + $0x20] ss:$16 sps:$4 sm:$0xff]   ;;  %v6638_v33 = vld [vmem:[%s8887_s1 + $0x24c] ss:$16 sps:$4 sm:$0xff]  }
  0x94   : > { %1586 = vmatpush2.bf16.msra.mxu0 %v6541_v34  ;;  %v7844_v22 = vld [vmem:[%s7712_s16 + $0x44] ss:$16 sps:$4 sm:$0xff]   ;;  %v7866_v28 = vld [vmem:[%s7712_s16 + $0x40] ss:$16 sps:$4 sm:$0xff]  }
  0x95   : > { %1699 = vmatpush2.bf16.msra.mxu1 %v6542_v35  ;;  %1587 = vmatprep.subr.bf16.mxu0 %v6543_v36  ;;  %v7884_v34 = vld [vmem:[%s7712_s16 + $0x64] ss:$16 sps:$4 sm:$0xff]   ;;  %v7887_v35 = vld [vmem:[%s7712_s16 + $0x6c] ss:$16 sps:$4 sm:$0xff]   ;;  %v6633_v36 = vld [vmem:[%s8887_s1 + $0x48] ss:$16 sps:$4 sm:$0xff]  }
  0x96   : > { %1700 = vmatprep.subr.bf16.mxu1 %v6545_v37  ;;  %v6636_v37 = vld [vmem:[%s8887_s1 + $0x248] ss:$16 sps:$4 sm:$0xff]  }
  0x98   : > { %1588 = vmatpush2.bf16.msra.mxu0 %v6547_v38  ;;  %v6647_v38 = vld [vmem:[%s8887_s1 + $0x2c] ss:$16 sps:$4 sm:$0xff]  }
  0x99   : > { %1701 = vmatpush2.bf16.msra.mxu1 %v6548_v39  ;;  %1589 = vmatprep.subr.bf16.mxu0 %v6549_v40  ;;  %v6650_v39 = vld [vmem:[%s8887_s1 + $0x22c] ss:$16 sps:$4 sm:$0xff]   ;;  %v7906_v40 = vld [vmem:[%s7712_s16 + $0x60] ss:$16 sps:$4 sm:$0xff]  }
  0x9a   : > { %1702 = vmatprep.subr.bf16.mxu1 %v6551_v41  ;;  %v7909_v41 = vld [vmem:[%s7712_s16 + $0x68] ss:$16 sps:$4 sm:$0xff]  }
  0x9c   : > { %1590 = vmatpush2.bf16.msra.mxu0 %v6553_v42  ;;  %v6645_v42 = vld [vmem:[%s8887_s1 + $0x28] ss:$16 sps:$4 sm:$0xff]  }
  0x9d   : > { %1703 = vmatpush2.bf16.msra.mxu1 %v6554_v43  ;;  %1591 = vmatprep.subr.bf16.mxu0 %v6555_v44  ;;  %v6648_v43 = vld [vmem:[%s8887_s1 + $0x228] ss:$16 sps:$4 sm:$0xff]   ;;  %v6653_v44 = vld [vmem:[%s8887_s1 + $0xc] ss:$16 sps:$4 sm:$0xff]  }
  0x9e   : > { %1704 = vmatprep.subr.bf16.mxu1 %v6557_v45  ;;  %v6656_v45 = vld [vmem:[%s8887_s1 + $0x20c] ss:$16 sps:$4 sm:$0xff]  }
  0xa0   : > { %1592 = vmatpush2.bf16.msra.mxu0 %v6559_v46  ;;  %v7924_v46 = vld [vmem:[%s7712_s16 + $0x84] ss:$16 sps:$4 sm:$0xff]  }
  0xa1   : > { %1705 = vmatpush2.bf16.msra.mxu1 %v6560_v47  ;;  %1593 = vmatprep.subr.bf16.mxu0 %v6561_v48  ;;  %v7927_v47 = vld [vmem:[%s7712_s16 + $0x8c] ss:$16 sps:$4 sm:$0xff]   ;;  %v6651_v48 = vld [vmem:[%s8887_s1 + $0x8] ss:$16 sps:$4 sm:$0xff]  }
  0xa2   : > { %1706 = vmatprep.subr.bf16.mxu1 %v6563_v50  ;;  %v6654_v50 = vld [vmem:[%s8887_s1 + $0x208] ss:$16 sps:$4 sm:$0xff]  }
  0xa4   : > { %1594 = vmatpush2.bf16.msra.mxu0 %v6565_v52  ;;  %v6665_v52 = vld [vmem:[%s8887_s1 + $0x1ec] ss:$16 sps:$4 sm:$0xff]  }
  0xa5   : > { %1707 = vmatpush2.bf16.msra.mxu1 %v6566_v53  ;;  %1595 = vmatprep.subr.bf16.mxu0 %v6567_v54  ;;  %v6668_v53 = vld [vmem:[%s8887_s1 + $0x3ec] ss:$16 sps:$4 sm:$0xff]   ;;  %v7946_v54 = vld [vmem:[%s7712_s16 + $0x80] ss:$16 sps:$4 sm:$0xff]  }
  0xa6   : > { %1708 = vmatprep.subr.bf16.mxu1 %v6569_v55  ;;  %v7949_v55 = vld [vmem:[%s7712_s16 + $0x88] ss:$16 sps:$4 sm:$0xff]  }
  0xa8   : > { %1596 = vmatpush2.bf16.msra.mxu0 %v6571_v56  ;;  %v6663_v56 = vld [vmem:[%s8887_s1 + $0x1e8] ss:$16 sps:$4 sm:$0xff]  }
  0xa9   : > { %1709 = vmatpush2.bf16.msra.mxu1 %v6572_v57  ;;  %1597 = vmatprep.subr.bf16.mxu0 %v6573_v58  ;;  %v6666_v57 = vld [vmem:[%s8887_s1 + $0x3e8] ss:$16 sps:$4 sm:$0xff]   ;;  %v6671_v58 = vld [vmem:[%s8887_s1 + $0x1cc] ss:$16 sps:$4 sm:$0xff]  }
  0xaa   : > { %1710 = vmatprep.subr.bf16.mxu1 %v6575_v59  ;;  %v6674_v59 = vld [vmem:[%s8887_s1 + $0x3cc] ss:$16 sps:$4 sm:$0xff]  }
  0xac   : > { %1598 = vmatpush2.bf16.msra.mxu0 %v6577_v60  ;;  %v7964_v60 = vld [vmem:[%s7712_s16 + $0xa4] ss:$16 sps:$4 sm:$0xff]  }
  0xad   : > { %1711 = vmatpush2.bf16.msra.mxu1 %v6578_v61  ;;  %1599 = vmatprep.subr.bf16.mxu0 %v6579_v62  ;;  %v7967_v61 = vld [vmem:[%s7712_s16 + $0xac] ss:$16 sps:$4 sm:$0xff]   ;;  %v6669_v62 = vld [vmem:[%s8887_s1 + $0x1c8] ss:$16 sps:$4 sm:$0xff]  }
  0xae   : > { %1712 = vmatprep.subr.bf16.mxu1 %v6581_v63  ;;  %v6672_v63 = vld [vmem:[%s8887_s1 + $0x3c8] ss:$16 sps:$4 sm:$0xff]  }
  0xb0   : > { %1600 = vmatpush2.bf16.msra.mxu0 %v6583_v0  ;;  %v6683_v0 = vld [vmem:[%s8887_s1 + $0x1ac] ss:$16 sps:$4 sm:$0xff]  }
  0xb1   : > { %1713 = vmatpush2.bf16.msra.mxu1 %v6584_v1  ;;  %1795 = vmatprep.subr.bf16.mxu0 %v6593_v2  ;;  %v6686_v1 = vld [vmem:[%s8887_s1 + $0x3ac] ss:$16 sps:$4 sm:$0xff]   ;;  %v7986_v2 = vld [vmem:[%s7712_s16 + $0xa0] ss:$16 sps:$4 sm:$0xff]  }
  0xb2   : > { %1908 = vmatprep.subr.bf16.mxu1 %v6596_v3  ;;  %v7989_v3 = vld [vmem:[%s7712_s16 + $0xa8] ss:$16 sps:$4 sm:$0xff]  }
  0xb3   : > { %1602 = vmatmul.mubr.bf16.vlgmr.msra.gmra.mxu0 %v7786_v4 }
  0xb4   : > { %1715 = vmatmul.mubr.bf16.vlgmr.msra.gmra.mxu1 %v7789_v5  ;;  %1796 = vmatpush1.bf16.msra.mxu0 %v6591_v6  ;;  %v6681_v6 = vld [vmem:[%s8887_s1 + $0x1a8] ss:$16 sps:$4 sm:$0xff]  }
  0xb5   : > { %1909 = vmatpush1.bf16.msra.mxu1 %v6594_v7  ;;  %1797 = vmatprep.subr.bf16.mxu0 %v6599_v8  ;;  %v6684_v7 = vld [vmem:[%s8887_s1 + $0x3a8] ss:$16 sps:$4 sm:$0xff]   ;;  %v6689_v8 = vld [vmem:[%s8887_s1 + $0x18c] ss:$16 sps:$4 sm:$0xff]  }
  0xb6   : > { %1910 = vmatprep.subr.bf16.mxu1 %v6602_v9  ;;  %1611 = vmatprep.mubr.bf16.mxu0 %v7804_v10  ;;  %v6692_v9 = vld [vmem:[%s8887_s1 + $0x38c] ss:$16 sps:$4 sm:$0xff]  }
  0xb7   : > { %1724 = vmatprep.mubr.bf16.mxu1 %v7807_v11 }
  0xb8   : > { %1798 = vmatpush1.bf16.msra.mxu0 %v6597_v12  ;;  %v8004_v12 = vld [vmem:[%s7712_s16 + $0xc4] ss:$16 sps:$4 sm:$0xff]  }
  0xb9   : > { %1911 = vmatpush1.bf16.msra.mxu1 %v6600_v13  ;;  %1799 = vmatprep.subr.bf16.mxu0 %v6611_v14  ;;  %v8007_v13 = vld [vmem:[%s7712_s16 + $0xcc] ss:$16 sps:$4 sm:$0xff]   ;;  %v6687_v14 = vld [vmem:[%s8887_s1 + $0x188] ss:$16 sps:$4 sm:$0xff]  }
  0xba   : > { %1912 = vmatprep.subr.bf16.mxu1 %v6614_v15  ;;  %v6690_v15 = vld [vmem:[%s8887_s1 + $0x388] ss:$16 sps:$4 sm:$0xff]  }
  0xbb   : > { %1612 = vmatmul.mubr.bf16.gmra.mxu0 %v7826_v16 }
  0xbc   : > { %1725 = vmatmul.mubr.bf16.gmra.mxu1 %v7829_v17  ;;  %1800 = vmatpush1.bf16.msra.mxu0 %v6609_v18  ;;  %v6701_v18 = vld [vmem:[%s8887_s1 + $0x16c] ss:$16 sps:$4 sm:$0xff]  }
  0xbd   : > { %1913 = vmatpush1.bf16.msra.mxu1 %v6612_v19  ;;  %1801 = vmatprep.subr.bf16.mxu0 %v6617_v20  ;;  %v6704_v19 = vld [vmem:[%s8887_s1 + $0x36c] ss:$16 sps:$4 sm:$0xff]   ;;  %v8026_v20 = vld [vmem:[%s7712_s16 + $0xc0] ss:$16 sps:$4 sm:$0xff]  }
  0xbe   : > { %1914 = vmatprep.subr.bf16.mxu1 %v6620_v21  ;;  %1621 = vmatprep.mubr.bf16.mxu0 %v7844_v22  ;;  %v8029_v21 = vld [vmem:[%s7712_s16 + $0xc8] ss:$16 sps:$4 sm:$0xff]  }
  0xbf   : > { %1734 = vmatprep.mubr.bf16.mxu1 %v7847_v23 }
  0xc0   : > { %1802 = vmatpush1.bf16.msra.mxu0 %v6615_v24  ;;  %v6699_v24 = vld [vmem:[%s8887_s1 + $0x168] ss:$16 sps:$4 sm:$0xff]  }
  0xc1   : > { %1915 = vmatpush1.bf16.msra.mxu1 %v6618_v25  ;;  %1803 = vmatprep.subr.bf16.mxu0 %v6629_v26  ;;  %v6702_v25 = vld [vmem:[%s8887_s1 + $0x368] ss:$16 sps:$4 sm:$0xff]   ;;  %v6707_v26 = vld [vmem:[%s8887_s1 + $0x14c] ss:$16 sps:$4 sm:$0xff]  }
  0xc2   : > { %1916 = vmatprep.subr.bf16.mxu1 %v6632_v27  ;;  %v6710_v27 = vld [vmem:[%s8887_s1 + $0x34c] ss:$16 sps:$4 sm:$0xff]  }
  0xc3   : > { %1622 = vmatmul.mubr.bf16.gmra.mxu0 %v7866_v28 }
  0xc4   : > { %1735 = vmatmul.mubr.bf16.gmra.mxu1 %v7869_v29  ;;  %1804 = vmatpush1.bf16.msra.mxu0 %v6627_v30  ;;  %v8044_v30 = vld [vmem:[%s7712_s16 + $0xe4] ss:$16 sps:$4 sm:$0xff]  }
  0xc5   : > { %1917 = vmatpush1.bf16.msra.mxu1 %v6630_v31  ;;  %1805 = vmatprep.subr.bf16.mxu0 %v6635_v32  ;;  %v8047_v31 = vld [vmem:[%s7712_s16 + $0xec] ss:$16 sps:$4 sm:$0xff]   ;;  %v6705_v32 = vld [vmem:[%s8887_s1 + $0x148] ss:$16 sps:$4 sm:$0xff]  }
  0xc6   : > { %1918 = vmatprep.subr.bf16.mxu1 %v6638_v33  ;;  %1631 = vmatprep.mubr.bf16.mxu0 %v7884_v34  ;;  %v6708_v33 = vld [vmem:[%s8887_s1 + $0x348] ss:$16 sps:$4 sm:$0xff]  }
  0xc7   : > { %1744 = vmatprep.mubr.bf16.mxu1 %v7887_v35 }
  0xc8   : > { %1806 = vmatpush1.bf16.msra.mxu0 %v6633_v36  ;;  %v6719_v36 = vld [vmem:[%s8887_s1 + $0x12c] ss:$16 sps:$4 sm:$0xff]  }
  0xc9   : > { %1919 = vmatpush1.bf16.msra.mxu1 %v6636_v37  ;;  %1807 = vmatprep.subr.bf16.mxu0 %v6647_v38  ;;  %v6722_v37 = vld [vmem:[%s8887_s1 + $0x32c] ss:$16 sps:$4 sm:$0xff]   ;;  %v8066_v38 = vld [vmem:[%s7712_s16 + $0xe0] ss:$16 sps:$4 sm:$0xff]  }
  0xca   : > { %1920 = vmatprep.subr.bf16.mxu1 %v6650_v39  ;;  %v8069_v39 = vld [vmem:[%s7712_s16 + $0xe8] ss:$16 sps:$4 sm:$0xff]  }
  0xcb   : > { %1632 = vmatmul.mubr.bf16.gmra.mxu0 %v7906_v40 }
  0xcc   : > { %1745 = vmatmul.mubr.bf16.gmra.mxu1 %v7909_v41  ;;  %1808 = vmatpush1.bf16.msra.mxu0 %v6645_v42  ;;  %v6717_v42 = vld [vmem:[%s8887_s1 + $0x128] ss:$16 sps:$4 sm:$0xff]  }
  0xcd   : > { %1921 = vmatpush1.bf16.msra.mxu1 %v6648_v43  ;;  %1809 = vmatprep.subr.bf16.mxu0 %v6653_v44  ;;  %v6720_v43 = vld [vmem:[%s8887_s1 + $0x328] ss:$16 sps:$4 sm:$0xff]   ;;  %v6725_v44 = vld [vmem:[%s8887_s1 + $0x10c] ss:$16 sps:$4 sm:$0xff]  }
  0xce   : > { %1922 = vmatprep.subr.bf16.mxu1 %v6656_v45  ;;  %1641 = vmatprep.mubr.bf16.mxu0 %v7924_v46  ;;  %v6728_v45 = vld [vmem:[%s8887_s1 + $0x30c] ss:$16 sps:$4 sm:$0xff]  }
  0xcf   : > { %1754 = vmatprep.mubr.bf16.mxu1 %v7927_v47 }
  0xd0   : > { %1810 = vmatpush1.bf16.msra.mxu0 %v6651_v48  ;;  %v6723_v48 = vld [vmem:[%s8887_s1 + $0x108] ss:$16 sps:$4 sm:$0xff]  }
  0xd1   : > { %1923 = vmatpush1.bf16.msra.mxu1 %v6654_v50  ;;  %1811 = vmatprep.subr.bf16.mxu0 %v6665_v52  ;;  %v6726_v50 = vld [vmem:[%s8887_s1 + $0x308] ss:$16 sps:$4 sm:$0xff]   ;;  %v6731_v52 = vld [vmem:[%s8889_s3 + $0x74] ss:$8 sps:$4 sm:$0xff]  }
  0xd2   : > { %1924 = vmatprep.subr.bf16.mxu1 %v6668_v53  ;;  %v6729_v53 = vld [vmem:[%s8889_s3 + $0x70] ss:$8 sps:$4 sm:$0xff]  }
  0xd3   : > { %1642 = vmatmul.mubr.bf16.gmra.mxu0 %v7946_v54 }
  0xd4   : > { %1755 = vmatmul.mubr.bf16.gmra.mxu1 %v7949_v55  ;;  %1812 = vmatpush2.bf16.msra.mxu0 %v6663_v56  ;;  %v6734_v56 = vld [vmem:[%s8889_s3 + $0x64] ss:$8 sps:$4 sm:$0xff]  }
  0xd5   : > { %1925 = vmatpush2.bf16.msra.mxu1 %v6666_v57  ;;  %1813 = vmatprep.subr.bf16.mxu0 %v6671_v58  ;;  %v6744_v57 = vld [vmem:[%s8889_s3 + $0x20] ss:$8 sps:$4 sm:$0xff]   ;;  %v6749_v58 = vld [vmem:[%s8889_s3 + $0x14] ss:$8 sps:$4 sm:$0xff]  }
  0xd6   : > { %1926 = vmatprep.subr.bf16.mxu1 %v6674_v59  ;;  %1651 = vmatprep.mubr.bf16.mxu0 %v7964_v60  ;;  %v6785_v59 = vld [vmem:[%s8889_s3 + $0x154] ss:$8 sps:$4 sm:$0xff]  }
  0xd7   : > { %1764 = vmatprep.mubr.bf16.mxu1 %v7967_v61 }
  0xd8   : > { %1814 = vmatpush2.bf16.msra.mxu0 %v6669_v62  ;;  %v6783_v62 = vld [vmem:[%s8889_s3 + $0x150] ss:$8 sps:$4 sm:$0xff]  }
  0xd9   : > { %1927 = vmatpush2.bf16.msra.mxu1 %v6672_v63  ;;  %1815 = vmatprep.subr.bf16.mxu0 %v6683_v0  ;;  %v6750_v63 = vld [vmem:[%s8889_s3] ss:$8 sps:$4 sm:$0xff]   ;;  %v6755_v0 = vld [vmem:[%s8889_s3 + $0xf4] ss:$8 sps:$4 sm:$0xff]  }
  0xda   : > { %1928 = vmatprep.subr.bf16.mxu1 %v6686_v1  ;;  %v6791_v1 = vld [vmem:[%s8889_s3 + $0x134] ss:$8 sps:$4 sm:$0xff]  }
  0xdb   : > { %1652 = vmatmul.mubr.bf16.gmra.mxu0 %v7986_v2 }
  0xdc   : > { %1765 = vmatmul.mubr.bf16.gmra.mxu1 %v7989_v3  ;;  %1816 = vmatpush2.bf16.msra.mxu0 %v6681_v6  ;;  %v6789_v6 = vld [vmem:[%s8889_s3 + $0x130] ss:$8 sps:$4 sm:$0xff]  }
  0xdd   : > { %1929 = vmatpush2.bf16.msra.mxu1 %v6684_v7  ;;  %1817 = vmatprep.subr.bf16.mxu0 %v6689_v8  ;;  %v6756_v7 = vld [vmem:[%s8889_s3 + $0xe0] ss:$8 sps:$4 sm:$0xff]   ;;  %v6761_v8 = vld [vmem:[%s8889_s3 + $0xd4] ss:$8 sps:$4 sm:$0xff]  }
  0xde   : > { %1930 = vmatprep.subr.bf16.mxu1 %v6692_v9  ;;  %1661 = vmatprep.mubr.bf16.mxu0 %v8004_v12  ;;  %v6797_v9 = vld [vmem:[%s8889_s3 + $0x114] ss:$8 sps:$4 sm:$0xff]  }
  0xdf   : > { %1774 = vmatprep.mubr.bf16.mxu1 %v8007_v13 }
  0xe0   : > { %1818 = vmatpush2.bf16.msra.mxu0 %v6687_v14  ;;  %v6795_v14 = vld [vmem:[%s8889_s3 + $0x110] ss:$8 sps:$4 sm:$0xff]  }
  0xe1   : > { %1931 = vmatpush2.bf16.msra.mxu1 %v6690_v15  ;;  %1819 = vmatprep.subr.bf16.mxu0 %v6701_v18  ;;  %v6762_v15 = vld [vmem:[%s8889_s3 + $0xc0] ss:$8 sps:$4 sm:$0xff]   ;;  %v6767_v18 = vld [vmem:[%s8889_s3 + $0xb4] ss:$8 sps:$4 sm:$0xff]  }
  0xe2   : > { %1932 = vmatprep.subr.bf16.mxu1 %v6704_v19  ;;  %v6803_v19 = vld [vmem:[%s8889_s3 + $0x1f4] ss:$8 sps:$4 sm:$0xff]  }
  0xe3   : > { %1662 = vmatmul.mubr.bf16.gmra.mxu0 %v8026_v20 }
  0xe4   : > { %1775 = vmatmul.mubr.bf16.gmra.mxu1 %v8029_v21  ;;  %1820 = vmatpush2.bf16.msra.mxu0 %v6699_v24  ;;  %v6801_v24 = vld [vmem:[%s8889_s3 + $0x1f0] ss:$8 sps:$4 sm:$0xff]  }
  0xe5   : > { %1933 = vmatpush2.bf16.msra.mxu1 %v6702_v25  ;;  %1821 = vmatprep.subr.bf16.mxu0 %v6707_v26  ;;  %v6768_v25 = vld [vmem:[%s8889_s3 + $0xa0] ss:$8 sps:$4 sm:$0xff]   ;;  %v6773_v26 = vld [vmem:[%s8889_s3 + $0x94] ss:$8 sps:$4 sm:$0xff]  }
  0xe6   : > { %1934 = vmatprep.subr.bf16.mxu1 %v6710_v27  ;;  %1671 = vmatprep.mubr.bf16.mxu0 %v8044_v30  ;;  %v6771_v27 = vld [vmem:[%s8889_s3 + $0x90] ss:$8 sps:$4 sm:$0xff]  }
  0xe7   : > { %1784 = vmatprep.mubr.bf16.mxu1 %v8047_v31 }
  0xe8   : > { %1822 = vmatpush2.bf16.msra.mxu0 %v6705_v32  ;;  %v6807_v32 = vld [vmem:[%s8889_s3 + $0x1d0] ss:$8 sps:$4 sm:$0xff]  }
  0xe9   : > { %1935 = vmatpush2.bf16.msra.mxu1 %v6708_v33  ;;  %1823 = vmatprep.subr.bf16.mxu0 %v6719_v36  ;;  %v6774_v33 = vld [vmem:[%s8889_s3 + $0x80] ss:$8 sps:$4 sm:$0xff]   ;;  %v6812_v36 = vld [vmem:[%s8889_s3 + $0x1c4] ss:$8 sps:$4 sm:$0xff]  }
  0xea   : > { %1936 = vmatprep.subr.bf16.mxu1 %v6722_v37  ;;  %v6810_v37 = vld [vmem:[%s8889_s3 + $0x1c0] ss:$8 sps:$4 sm:$0xff]  }
  0xeb   : > { %1672 = vmatmul.mubr.bf16.gmra.mxu0 %v8066_v38 }
  0xec   : > { %1785 = vmatmul.mubr.bf16.gmra.mxu1 %v8069_v39  ;;  %1824 = vmatpush2.bf16.msra.mxu0 %v6717_v42  ;;  %v6818_v42 = vld [vmem:[%s8889_s3 + $0x1a4] ss:$8 sps:$4 sm:$0xff]  }
  0xed   : > { %1937 = vmatpush2.bf16.msra.mxu1 %v6720_v43  ;;  %1825 = vmatprep.subr.bf16.mxu0 %v6725_v44  ;;  %v6816_v43 = vld [vmem:[%s8889_s3 + $0x1a0] ss:$8 sps:$4 sm:$0xff]   ;;  %v6821_v44 = vld [vmem:[%s8889_s3 + $0x194] ss:$8 sps:$4 sm:$0xff]  }
  0xee   : > { %1938 = vmatprep.subr.bf16.mxu1 %v6728_v45  ;;  %1827 = vmatprep.mubr.bf16.mxu0 %v7727_v49  ;;  %v6732_v49 = vld [vmem:[%s8889_s3 + $0x60] ss:$8 sps:$4 sm:$0xff]   ;;  %v6819_v45 = vld [vmem:[%s8889_s3 + $0x190] ss:$8 sps:$4 sm:$0xff]  }
  0xef   : > { %1940 = vmatprep.mubr.bf16.mxu1 %v7733_v51  ;;  %v6737_v51 = vld [vmem:[%s8889_s3 + $0x54] ss:$8 sps:$4 sm:$0xff]  }
  0xf0   : > { %1826 = vmatpush2.bf16.msra.mxu0 %v6723_v48  ;;  %v6824_v48 = vld [vmem:[%s8889_s3 + $0x184] ss:$8 sps:$4 sm:$0xff]  }
  0xf1   : > { %1939 = vmatpush2.bf16.msra.mxu1 %v6726_v50  ;;  %2513 = vmatprep.subr.bf16.mxu0 %v6731_v52  ;;  %v6822_v50 = vld [vmem:[%s8889_s3 + $0x180] ss:$8 sps:$4 sm:$0xff]   ;;  %v749_v52 = vlaneseq }
  0xf3   : > { %1828 = vmatmul.mubr.bf16.vlgmr.msra.gmra.mxu0 %v7786_v4  ;;  %v6735_v4 = vld [vmem:[%s8889_s3 + $0x50] ss:$8 sps:$4 sm:$0xff]  }
  0xf4   : > { %1941 = vmatmul.mubr.bf16.vlgmr.msra.gmra.mxu1 %v7789_v5  ;;  %1837 = vmatprep.mubr.bf16.mxu0 %v7804_v10  ;;  %v6740_v5 = vld [vmem:[%s8889_s3 + $0x44] ss:$8 sps:$4 sm:$0xff]   ;;  %v6738_v10 = vld [vmem:[%s8889_s3 + $0x40] ss:$8 sps:$4 sm:$0xff]  }
  0xf5   : > { %1950 = vmatprep.mubr.bf16.mxu1 %v7807_v11  ;;  %2514 = vmatpush1.bf16.msra.mxu0 %v6729_v53  ;;  %v6743_v11 = vld [vmem:[%s8889_s3 + $0x34] ss:$8 sps:$4 sm:$0xff]   ;;  %v8315_v53 = vshrl.u32 %v749_v52, 7 }
  0xf6   : > { %2515 = vmatprep.subr.bf16.mxu0 %v6734_v56 }
  0xf7   : > { %v8318_v56 = vsub.s32 1, %v8315_v53 }
  0xf9   : > { %2516 = vmatpush1.bf16.msra.mxu0 %v6732_v49  ;;  %v8321_v49 = vsub.s32 0, %v8315_v53 }
  0xfa   : > { %2517 = vmatprep.subr.bf16.mxu0 %v6737_v51  ;;  %v8323_v51 = vld [vmem:[#allocation2] sm:$0xf] }
  0xfb   : > { %1838 = vmatmul.mubr.bf16.gmra.mxu0 %v7826_v16  ;;  %v6741_v16 = vld [vmem:[%s8889_s3 + $0x30] ss:$8 sps:$4 sm:$0xff]  }
  0xfc   : > { %1951 = vmatmul.mubr.bf16.gmra.mxu1 %v7829_v17  ;;  %1847 = vmatprep.mubr.bf16.mxu0 %v7844_v22  ;;  %v6746_v17 = vld [vmem:[%s8889_s3 + $0x24] ss:$8 sps:$4 sm:$0xff]   ;;  %v6779_v22 = vld [vmem:[%s8889_s3 + $0x174] ss:$8 sps:$4 sm:$0xff]  }
  0xfd   : > { %1960 = vmatprep.mubr.bf16.mxu1 %v7847_v23  ;;  %2518 = vmatpush1.bf16.msra.mxu0 %v6735_v4  ;;  %v6777_v23 = vld [vmem:[%s8889_s3 + $0x170] ss:$8 sps:$4 sm:$0xff]   ;;  %v8327_v4 = vrot.slane %v8323_v51, %v8318_v56 }
  0xfe   : > { %2519 = vmatprep.subr.bf16.mxu0 %v6740_v5  ;;  %2626 = vmatprep.subr.bf16.mxu1 %v6779_v22  ;;  %v8331_v5 = vrot.slane %v8323_v51, %v8321_v49 }
  0xff   : > { %2627 = vmatpush1.bf16.msra.mxu1 %v6777_v23 }
 0x101   : > { %2520 = vmatpush1.bf16.msra.mxu0 %v6738_v10 }
 0x102   : > { %2521 = vmatprep.subr.bf16.mxu0 %v6743_v11 }
 0x103   : > { %1848 = vmatmul.mubr.bf16.gmra.mxu0 %v7866_v28  ;;  %v6782_v28 = vld [vmem:[%s8889_s3 + $0x164] ss:$8 sps:$4 sm:$0xff]  }
 0x104   : > { %1961 = vmatmul.mubr.bf16.gmra.mxu1 %v7869_v29  ;;  %1857 = vmatprep.mubr.bf16.mxu0 %v7884_v34  ;;  %v6780_v29 = vld [vmem:[%s8889_s3 + $0x160] ss:$8 sps:$4 sm:$0xff]   ;;  %v6747_v34 = vld [vmem:[%s8889_s3 + $0x10] ss:$8 sps:$4 sm:$0xff]  }
 0x105   : > { %1970 = vmatprep.mubr.bf16.mxu1 %v7887_v35  ;;  %2522 = vmatpush1.bf16.msra.mxu0 %v6741_v16  ;;  %v6752_v35 = vld [vmem:[%s8889_s3 + $0x4] ss:$8 sps:$4 sm:$0xff]  }
 0x106   : > { %2523 = vmatprep.subr.bf16.mxu0 %v6746_v17  ;;  %2628 = vmatprep.subr.bf16.mxu1 %v6782_v28 }
 0x107   : > { %2629 = vmatpush1.bf16.msra.mxu1 %v6780_v29 }
 0x108   : > { %2630 = vmatprep.subr.bf16.mxu1 %v6785_v59 }
 0x109   : > { %2524 = vmatpush1.bf16.msra.mxu0 %v6744_v57 }
 0x10a   : > { %2525 = vmatprep.subr.bf16.mxu0 %v6749_v58 }
 0x10b   : > { %1858 = vmatmul.mubr.bf16.gmra.mxu0 %v7906_v40  ;;  %v6788_v40 = vld [vmem:[%s8889_s3 + $0x144] ss:$8 sps:$4 sm:$0xff]   ;;  %2631 = vmatpush1.bf16.msra.mxu1 %v6783_v62 }
 0x10c   : > { %1971 = vmatmul.mubr.bf16.gmra.mxu1 %v7909_v41  ;;  %1867 = vmatprep.mubr.bf16.mxu0 %v7924_v46  ;;  %v6786_v41 = vld [vmem:[%s8889_s3 + $0x140] ss:$8 sps:$4 sm:$0xff]   ;;  %v6753_v46 = vld [vmem:[%s8889_s3 + $0xf0] ss:$8 sps:$4 sm:$0xff]  }
 0x10d   : > { %1980 = vmatprep.mubr.bf16.mxu1 %v7927_v47  ;;  %2526 = vmatpush1.bf16.msra.mxu0 %v6747_v34  ;;  %v6758_v47 = vld [vmem:[%s8889_s3 + $0xe4] ss:$8 sps:$4 sm:$0xff]  }
 0x10e   : > { %2527 = vmatprep.subr.bf16.mxu0 %v6752_v35  ;;  %2632 = vmatprep.subr.bf16.mxu1 %v6788_v40 }
 0x10f   : > { %2633 = vmatpush1.bf16.msra.mxu1 %v6786_v41 }
 0x110   : > { %2634 = vmatprep.subr.bf16.mxu1 %v6791_v1 }
 0x111   : > { %2528 = vmatpush1.bf16.msra.mxu0 %v6750_v63 }
 0x112   : > { %2529 = vmatprep.subr.bf16.mxu0 %v6755_v0 }
 0x113   : > { %1868 = vmatmul.mubr.bf16.gmra.mxu0 %v7946_v54  ;;  %v6794_v54 = vld [vmem:[%s8889_s3 + $0x124] ss:$8 sps:$4 sm:$0xff]   ;;  %2635 = vmatpush1.bf16.msra.mxu1 %v6789_v6 }
 0x114   : > { %1981 = vmatmul.mubr.bf16.gmra.mxu1 %v7949_v55  ;;  %1877 = vmatprep.mubr.bf16.mxu0 %v7964_v60  ;;  %v6792_v55 = vld [vmem:[%s8889_s3 + $0x120] ss:$8 sps:$4 sm:$0xff]   ;;  %v6759_v60 = vld [vmem:[%s8889_s3 + $0xd0] ss:$8 sps:$4 sm:$0xff]  }
 0x115   : > { %1990 = vmatprep.mubr.bf16.mxu1 %v7967_v61  ;;  %2530 = vmatpush2.bf16.msra.mxu0 %v6753_v46  ;;  %v6764_v61 = vld [vmem:[%s8889_s3 + $0xc4] ss:$8 sps:$4 sm:$0xff]  }
 0x116   : > { %2531 = vmatprep.subr.bf16.mxu0 %v6758_v47  ;;  %2636 = vmatprep.subr.bf16.mxu1 %v6794_v54 }
 0x117   : > { %2637 = vmatpush1.bf16.msra.mxu1 %v6792_v55 }
 0x118   : > { %2638 = vmatprep.subr.bf16.mxu1 %v6797_v9 }
 0x119   : > { %2532 = vmatpush2.bf16.msra.mxu0 %v6756_v7 }
 0x11a   : > { %2533 = vmatprep.subr.bf16.mxu0 %v6761_v8 }
 0x11b   : > { %1878 = vmatmul.mubr.bf16.gmra.mxu0 %v7986_v2  ;;  %v6800_v2 = vld [vmem:[%s8889_s3 + $0x104] ss:$8 sps:$4 sm:$0xff]   ;;  %2639 = vmatpush1.bf16.msra.mxu1 %v6795_v14 }
 0x11c   : > { %1991 = vmatmul.mubr.bf16.gmra.mxu1 %v7989_v3  ;;  %1887 = vmatprep.mubr.bf16.mxu0 %v8004_v12  ;;  %v6798_v3 = vld [vmem:[%s8889_s3 + $0x100] ss:$8 sps:$4 sm:$0xff]   ;;  %v6765_v12 = vld [vmem:[%s8889_s3 + $0xb0] ss:$8 sps:$4 sm:$0xff]  }
 0x11d   : > { %2000 = vmatprep.mubr.bf16.mxu1 %v8007_v13  ;;  %2534 = vmatpush2.bf16.msra.mxu0 %v6759_v60  ;;  %v6770_v13 = vld [vmem:[%s8889_s3 + $0xa4] ss:$8 sps:$4 sm:$0xff]  }
 0x11e   : > { %2535 = vmatprep.subr.bf16.mxu0 %v6764_v61  ;;  %2640 = vmatprep.subr.bf16.mxu1 %v6800_v2 }
 0x11f   : > { %2641 = vmatpush1.bf16.msra.mxu1 %v6798_v3 }
 0x120   : > { %2642 = vmatprep.subr.bf16.mxu1 %v6803_v19 }
 0x121   : > { %2536 = vmatpush2.bf16.msra.mxu0 %v6762_v15 }
 0x122   : > { %2537 = vmatprep.subr.bf16.mxu0 %v6767_v18 }
 0x123   : > { %1888 = vmatmul.mubr.bf16.gmra.mxu0 %v8026_v20  ;;  %v6806_v20 = vld [vmem:[%s8889_s3 + $0x1e4] ss:$8 sps:$4 sm:$0xff]   ;;  %2643 = vmatpush2.bf16.msra.mxu1 %v6801_v24 }
 0x124   : > { %2001 = vmatmul.mubr.bf16.gmra.mxu1 %v8029_v21  ;;  %1897 = vmatprep.mubr.bf16.mxu0 %v8044_v30  ;;  %v6804_v21 = vld [vmem:[%s8889_s3 + $0x1e0] ss:$8 sps:$4 sm:$0xff]   ;;  %v6776_v30 = vld [vmem:[%s8889_s3 + $0x84] ss:$8 sps:$4 sm:$0xff]  }
 0x125   : > { %2010 = vmatprep.mubr.bf16.mxu1 %v8047_v31  ;;  %2538 = vmatpush2.bf16.msra.mxu0 %v6765_v12  ;;  %v6809_v31 = vld [vmem:[%s8889_s3 + $0x1d4] ss:$8 sps:$4 sm:$0xff]  }
 0x126   : > { %2539 = vmatprep.subr.bf16.mxu0 %v6770_v13  ;;  %2644 = vmatprep.subr.bf16.mxu1 %v6806_v20 }
 0x127   : > { %2645 = vmatpush2.bf16.msra.mxu1 %v6804_v21 }
 0x128   : > { %2646 = vmatprep.subr.bf16.mxu1 %v6809_v31 }
 0x129   : > { %2540 = vmatpush2.bf16.msra.mxu0 %v6768_v25 }
 0x12a   : > { %2541 = vmatprep.subr.bf16.mxu0 %v6773_v26 }
 0x12b   : > { %1898 = vmatmul.mubr.bf16.gmra.mxu0 %v8066_v38  ;;  %2647 = vmatpush2.bf16.msra.mxu1 %v6807_v32  ;;  %v6815_v38 = vld [vmem:[%s8889_s3 + $0x1b4] ss:$8 sps:$4 sm:$0xff]  }
 0x12c   : > { %2011 = vmatmul.mubr.bf16.gmra.mxu1 %v8069_v39  ;;  %2648 = vmatprep.subr.bf16.mxu1 %v6812_v36  ;;  %v6813_v39 = vld [vmem:[%s8889_s3 + $0x1b0] ss:$8 sps:$4 sm:$0xff]  }
 0x12d   : > { %2542 = vmatpush2.bf16.msra.mxu0 %v6771_v27 }
 0x12e   : > { %2543 = vmatprep.subr.bf16.mxu0 %v6776_v30 }
 0x12f   : > { %2649 = vmatpush2.bf16.msra.mxu1 %v6810_v37 }
 0x130   : > { %2650 = vmatprep.subr.bf16.mxu1 %v6815_v38 }
 0x131   : > { %2544 = vmatpush2.bf16.msra.mxu0 %v6774_v33 }
 0x133   : > { %2651 = vmatpush2.bf16.msra.mxu1 %v6813_v39 }
 0x134   : > { %2652 = vmatprep.subr.bf16.mxu1 %v6818_v42 }
 0x137   : > { %2653 = vmatpush2.bf16.msra.mxu1 %v6816_v43 }
 0x138   : > { %2654 = vmatprep.subr.bf16.mxu1 %v6821_v44 }
 0x13b   : > { %2655 = vmatpush2.bf16.msra.mxu1 %v6819_v45 }
 0x13c   : > { %2656 = vmatprep.subr.bf16.mxu1 %v6824_v48 }
 0x13f   : > { %2657 = vmatpush2.bf16.msra.mxu1 %v6822_v50 }
 0x173   : > { %v1603_v10 = vpop.f32.mrf.mxu0 }
 0x174   : > { %v1716_v11 = vpop.f32.mrf.mxu1  ;;  %v1604_v23 = vadd.f32 %v1603_v10, %v8331_v5 }
 0x175   : > { %v1605_v16 = vpop.f32.mrf.mxu0 }
 0x176   : > { %v1718_v17 = vpop.f32.mrf.mxu1  ;;  %v1606_v22 = vadd.f32 %v1605_v16, %v8327_v4  ;;  %v1717_v63 = vadd.f32 %v1716_v11, %v1604_v23 }
 0x177   : > { %v1607_v57 = vpop.f32.mrf.mxu0 }
 0x178   : > { %v1720_v58 = vpop.f32.mrf.mxu1  ;;  %v1608_v28 = vadd.f32 %v1607_v57, %v8331_v5  ;;  %v1719_v35 = vadd.f32 %v1718_v17, %v1606_v22  ;;  %v2021_v54 = vmax.f32 %v1717_v63, 0.0 }
 0x179   : > { %v1609_v29 = vpop.f32.mrf.mxu0 }
 0x17a   : > { %v1722_v34 = vpop.f32.mrf.mxu1  ;;  %v1721_v59 = vadd.f32 %v1720_v58, %v1608_v28  ;;  %v1610_v62 = vadd.f32 %v1609_v29, %v8327_v4  ;;  %v2022_v6 = vmax.f32 %v1719_v35, 0.0 }
 0x17b   : > { %v1613_v0 = vpop.f32.mrf.mxu0 }
 0x17c   : > { %v1726_v40 = vpop.f32.mrf.mxu1  ;;  %v1723_v41 = vadd.f32 %v1722_v34, %v1610_v62  ;;  %v2025_v46 = vmax.f32 %v1721_v59, 0.0  ;;  %v1614_v55 = vadd.f32 %v1613_v0, %v8331_v5 }
 0x17d   : > { %v1615_v47 = vpop.f32.mrf.mxu0 }
 0x17e   : > { %v1728_v1 = vpop.f32.mrf.mxu1  ;;  %v2026_v7 = vmax.f32 %v1723_v41, 0.0  ;;  %v1616_v8 = vadd.f32 %v1615_v47, %v8327_v4  ;;  %v2085_v15 = vpack.c.bf16 %v2025_v46, %v2021_v54  ;;  %v1727_v19 = vadd.f32 %v1726_v40, %v1614_v55 }
 0x17f   : > { %v1617_v60 = vpop.f32.mrf.mxu0 }
 0x180   : > { %v1730_v61 = vpop.f32.mrf.mxu1  ;;  %v1618_v9 = vadd.f32 %v1617_v60, %v8331_v5  ;;  %v2086_v14 = vpack.c.bf16 %v2026_v7, %v2022_v6  ;;  %v1729_v3 = vadd.f32 %v1728_v1, %v1616_v8  ;;  %v2029_v33 = vmax.f32 %v1727_v19, 0.0 }
 0x181   : > { %v1619_v18 = vpop.f32.mrf.mxu0 }
 0x182   : > { %v1732_v2 = vpop.f32.mrf.mxu1  ;;  %v1731_v12 = vadd.f32 %v1730_v61, %v1618_v9  ;;  %v1620_v13 = vadd.f32 %v1619_v18, %v8327_v4  ;;  %2545 = vmatprep.mubr.bf16.mxu0 %v2086_v14  ;;  %v2030_v30 = vmax.f32 %v1729_v3, 0.0 }
 0x183   : > { %v1623_v24 = vpop.f32.mrf.mxu0  ;;  %2546 = vmatmul.mubr.bf16.vlgmr.msra.gmra.mxu0 %v2085_v15 }
 0x184   : > { %v1736_v25 = vpop.f32.mrf.mxu1  ;;  %v1733_v26 = vadd.f32 %v1732_v2, %v1620_v13  ;;  %v2033_v20 = vmax.f32 %v1731_v12, 0.0  ;;  %v1624_v36 = vadd.f32 %v1623_v24, %v8331_v5 }
 0x185   : > { %v1625_v21 = vpop.f32.mrf.mxu0 }
 0x186   : > { %v1738_v27 = vpop.f32.mrf.mxu1  ;;  %v2034_v31 = vmax.f32 %v1733_v26, 0.0  ;;  %v1626_v32 = vadd.f32 %v1625_v21, %v8327_v4  ;;  %v2089_v43 = vpack.c.bf16 %v2033_v20, %v2029_v33  ;;  %v1737_v10 = vadd.f32 %v1736_v25, %v1624_v36 }
 0x187   : > { %v1627_v37 = vpop.f32.mrf.mxu0 }
 0x188   : > { %v1740_v38 = vpop.f32.mrf.mxu1  ;;  %v1628_v39 = vadd.f32 %v1627_v37, %v8331_v5  ;;  %v2090_v42 = vpack.c.bf16 %v2034_v31, %v2030_v30  ;;  %v1739_v48 = vadd.f32 %v1738_v27, %v1626_v32  ;;  %v2037_v34 = vmax.f32 %v1737_v10, 0.0 }
 0x189   : > { %v1629_v44 = vpop.f32.mrf.mxu0 }
 0x18a   : > { %v1742_v45 = vpop.f32.mrf.mxu1  ;;  %v1741_v50 = vadd.f32 %v1740_v38, %v1628_v39  ;;  %v1630_v52 = vadd.f32 %v1629_v44, %v8327_v4  ;;  %2555 = vmatprep.mubr.bf16.mxu0 %v2090_v42  ;;  %v2038_v58 = vmax.f32 %v1739_v48, 0.0 }
 0x18b   : > { %v1633_v11 = vpop.f32.mrf.mxu0  ;;  %2556 = vmatmul.mubr.bf16.gmra.mxu0 %v2089_v43 }
 0x18c   : > { %v1746_v16 = vpop.f32.mrf.mxu1  ;;  %v1743_v17 = vadd.f32 %v1742_v45, %v1630_v52  ;;  %v2041_v22 = vmax.f32 %v1741_v50, 0.0  ;;  %v1634_v35 = vadd.f32 %v1633_v11, %v8331_v5 }
 0x18d   : > { %v1635_v23 = vpop.f32.mrf.mxu0 }
 0x18e   : > { %v1748_v57 = vpop.f32.mrf.mxu1  ;;  %v2042_v28 = vmax.f32 %v1743_v17, 0.0  ;;  %v1636_v29 = vadd.f32 %v1635_v23, %v8327_v4  ;;  %v2093_v40 = vpack.c.bf16 %v2041_v22, %v2037_v34  ;;  %v1747_v7 = vadd.f32 %v1746_v16, %v1634_v35 }
 0x18f   : > { %v1637_v59 = vpop.f32.mrf.mxu0 }
 0x190   : > { %v1750_v62 = vpop.f32.mrf.mxu1  ;;  %v1638_v63 = vadd.f32 %v1637_v59, %v8331_v5  ;;  %v2094_v0 = vpack.c.bf16 %v2042_v28, %v2038_v58  ;;  %v1749_v47 = vadd.f32 %v1748_v57, %v1636_v29  ;;  %v2045_v2 = vmax.f32 %v1747_v7, 0.0 }
 0x191   : > { %v1639_v41 = vpop.f32.mrf.mxu0 }
 0x192   : > { %v1752_v46 = vpop.f32.mrf.mxu1  ;;  %v1751_v1 = vadd.f32 %v1750_v62, %v1638_v63  ;;  %v1640_v6 = vadd.f32 %v1639_v41, %v8327_v4  ;;  %2565 = vmatprep.mubr.bf16.mxu0 %v2094_v0  ;;  %v2046_v14 = vmax.f32 %v1749_v47, 0.0 }
 0x193   : > { %v1643_v8 = vpop.f32.mrf.mxu0  ;;  %2566 = vmatmul.mubr.bf16.gmra.mxu0 %v2093_v40 }
 0x194   : > { %v1756_v54 = vpop.f32.mrf.mxu1  ;;  %v1753_v55 = vadd.f32 %v1752_v46, %v1640_v6  ;;  %v2049_v60 = vmax.f32 %v1751_v1, 0.0  ;;  %v1644_v3 = vadd.f32 %v1643_v8, %v8331_v5 }
 0x195   : > { %v1645_v61 = vpop.f32.mrf.mxu0 }
 0x196   : > { %v1758_v9 = vpop.f32.mrf.mxu1  ;;  %v2050_v15 = vmax.f32 %v1753_v55, 0.0  ;;  %v1646_v18 = vadd.f32 %v1645_v61, %v8327_v4  ;;  %v2097_v25 = vpack.c.bf16 %v2049_v60, %v2045_v2  ;;  %v1757_v31 = vadd.f32 %v1756_v54, %v1644_v3 }
 0x197   : > { %v1647_v12 = vpop.f32.mrf.mxu0 }
 0x198   : > { %v1760_v13 = vpop.f32.mrf.mxu1  ;;  %v1648_v19 = vadd.f32 %v1647_v12, %v8331_v5  ;;  %v2098_v24 = vpack.c.bf16 %v2050_v15, %v2046_v14  ;;  %v1759_v21 = vadd.f32 %v1758_v9, %v1646_v18  ;;  %v2053_v45 = vmax.f32 %v1757_v31, 0.0 }
 0x199   : > { %v1649_v26 = vpop.f32.mrf.mxu0 }
 0x19a   : > { %v1762_v20 = vpop.f32.mrf.mxu1  ;;  %v1761_v27 = vadd.f32 %v1760_v13, %v1648_v19  ;;  %v1650_v30 = vadd.f32 %v1649_v26, %v8327_v4  ;;  %2575 = vmatprep.mubr.bf16.mxu0 %v2098_v24  ;;  %v2054_v42 = vmax.f32 %v1759_v21, 0.0 }
 0x19b   : > { %v1653_v32 = vpop.f32.mrf.mxu0  ;;  %2576 = vmatmul.mubr.bf16.gmra.mxu0 %v2097_v25 }
 0x19c   : > { %v1766_v33 = vpop.f32.mrf.mxu1  ;;  %v1763_v36 = vadd.f32 %v1762_v20, %v1650_v30  ;;  %v2057_v37 = vmax.f32 %v1761_v27, 0.0  ;;  %v1654_v48 = vadd.f32 %v1653_v32, %v8331_v5  ;;  %v8363_v20 = vsub.s32 3, %v8315_v53 }
 0x19d   : > { %v1655_v38 = vpop.f32.mrf.mxu0  ;;  %v8367_v32 = vsub.s32 2, %v8315_v53 }
 0x19e   : > { %v1768_v39 = vpop.f32.mrf.mxu1  ;;  %v2058_v43 = vmax.f32 %v1763_v36, 0.0  ;;  %v1656_v44 = vadd.f32 %v1655_v38, %v8327_v4  ;;  %v2101_v16 = vpack.c.bf16 %v2057_v37, %v2053_v45  ;;  %v1767_v28 = vadd.f32 %v1766_v33, %v1654_v48 }
 0x19f   : > { %v1657_v50 = vpop.f32.mrf.mxu0  ;;  %v8373_v45 = vrot.slane %v8323_v51, %v8363_v20  ;;  %v8377_v53 = vrot.slane %v8323_v51, %v8367_v32 }
 0x1a0   : > { %v1770_v52 = vpop.f32.mrf.mxu1  ;;  %v1658_v10 = vadd.f32 %v1657_v50, %v8331_v5  ;;  %v2102_v11 = vpack.c.bf16 %v2058_v43, %v2054_v42  ;;  %v1769_v23 = vadd.f32 %v1768_v39, %v1656_v44  ;;  %v2061_v46 = vmax.f32 %v1767_v28, 0.0 }
 0x1a1   : > { %v1659_v17 = vpop.f32.mrf.mxu0 }
 0x1a2   : > { %v1772_v22 = vpop.f32.mrf.mxu1  ;;  %v1771_v57 = vadd.f32 %v1770_v52, %v1658_v10  ;;  %v1660_v58 = vadd.f32 %v1659_v17, %v8327_v4  ;;  %2585 = vmatprep.mubr.bf16.mxu0 %v2102_v11  ;;  %v2062_v0 = vmax.f32 %v1769_v23, 0.0 }
 0x1a3   : > { %v1663_v29 = vpop.f32.mrf.mxu0  ;;  %2586 = vmatmul.mubr.bf16.gmra.mxu0 %v2101_v16 }
 0x1a4   : > { %v1776_v34 = vpop.f32.mrf.mxu1  ;;  %v1773_v35 = vadd.f32 %v1772_v22, %v1660_v58  ;;  %v2065_v59 = vmax.f32 %v1771_v57, 0.0  ;;  %v1664_v47 = vadd.f32 %v1663_v29, %v8331_v5 }
 0x1a5   : > { %v1665_v62 = vpop.f32.mrf.mxu0 }
 0x1a6   : > { %v1778_v63 = vpop.f32.mrf.mxu1  ;;  %v2066_v40 = vmax.f32 %v1773_v35, 0.0  ;;  %v1666_v41 = vadd.f32 %v1665_v62, %v8327_v4  ;;  %v2105_v54 = vpack.c.bf16 %v2065_v59, %v2061_v46  ;;  %v1777_v15 = vadd.f32 %v1776_v34, %v1664_v47 }
 0x1a7   : > { %v1667_v1 = vpop.f32.mrf.mxu0 }
 0x1a8   : > { %v1780_v6 = vpop.f32.mrf.mxu1  ;;  %v1668_v7 = vadd.f32 %v1667_v1, %v8331_v5  ;;  %v2106_v8 = vpack.c.bf16 %v2066_v40, %v2062_v0  ;;  %v1779_v61 = vadd.f32 %v1778_v63, %v1666_v41  ;;  %v2069_v21 = vmax.f32 %v1777_v15, 0.0 }
 0x1a9   : > { %v1669_v55 = vpop.f32.mrf.mxu0 }
 0x1aa   : > { %v1782_v60 = vpop.f32.mrf.mxu1  ;;  %v1781_v9 = vadd.f32 %v1780_v6, %v1668_v7  ;;  %v1670_v14 = vadd.f32 %v1669_v55, %v8327_v4  ;;  %2595 = vmatprep.mubr.bf16.mxu0 %v2106_v8  ;;  %v2070_v24 = vmax.f32 %v1779_v61, 0.0 }
 0x1ab   : > { %v1673_v18 = vpop.f32.mrf.mxu0  ;;  %2596 = vmatmul.mubr.bf16.gmra.mxu0 %v2105_v54 }
 0x1ac   : > { %v1786_v2 = vpop.f32.mrf.mxu1  ;;  %v1783_v3 = vadd.f32 %v1782_v60, %v1670_v14  ;;  %v2073_v12 = vmax.f32 %v1781_v9, 0.0  ;;  %v1674_v27 = vadd.f32 %v1673_v18, %v8331_v5 }
 0x1ad   : > { %v1675_v13 = vpop.f32.mrf.mxu0 }
 0x1ae   : > { %v1788_v19 = vpop.f32.mrf.mxu1  ;;  %v2074_v25 = vmax.f32 %v1783_v3, 0.0  ;;  %v1676_v26 = vadd.f32 %v1675_v13, %v8327_v4  ;;  %v2109_v37 = vpack.c.bf16 %v2073_v12, %v2069_v21  ;;  %v1787_v48 = vadd.f32 %v1786_v2, %v1674_v27 }
 0x1af   : > { %v1677_v30 = vpop.f32.mrf.mxu0 }
 0x1b0   : > { %v1790_v31 = vpop.f32.mrf.mxu1  ;;  %v1678_v33 = vadd.f32 %v1677_v30, %v8331_v5  ;;  %v2110_v36 = vpack.c.bf16 %v2074_v25, %v2070_v24  ;;  %v1789_v42 = vadd.f32 %v1788_v19, %v1676_v26  ;;  %v2077_v23 = vmax.f32 %v1787_v48, 0.0 }
 0x1b1   : > { %v1679_v38 = vpop.f32.mrf.mxu0 }
 0x1b2   : > { %v1792_v39 = vpop.f32.mrf.mxu1  ;;  %v1791_v43 = vadd.f32 %v1790_v31, %v1678_v33  ;;  %v1680_v44 = vadd.f32 %v1679_v38, %v8327_v4  ;;  %2605 = vmatprep.mubr.bf16.mxu0 %v2110_v36  ;;  %v2078_v17 = vmax.f32 %v1789_v42, 0.0 }
 0x1b3   : > { %v1829_v50 = vpop.f32.mrf.mxu0  ;;  %2606 = vmatmul.mubr.bf16.gmra.mxu0 %v2109_v37 }
 0x1b4   : > { %v1942_v5 = vpop.f32.mrf.mxu1  ;;  %v1793_v52 = vadd.f32 %v1792_v39, %v1680_v44  ;;  %v2081_v10 = vmax.f32 %v1791_v43, 0.0  ;;  %v1830_v57 = vadd.f32 %v1829_v50, %v8377_v53 }
 0x1b5   : > { %v1831_v11 = vpop.f32.mrf.mxu0 }
 0x1b6   : > { %v1944_v16 = vpop.f32.mrf.mxu1  ;;  %v2082_v22 = vmax.f32 %v1793_v52, 0.0  ;;  %v1832_v4 = vadd.f32 %v1831_v11, %v8373_v45  ;;  %v2113_v34 = vpack.c.bf16 %v2081_v10, %v2077_v23  ;;  %v1943_v40 = vadd.f32 %v1942_v5, %v1830_v57 }
 0x1b7   : > { %v1833_v58 = vpop.f32.mrf.mxu0 }
 0x1b8   : > { %v1946_v28 = vpop.f32.mrf.mxu1  ;;  %v1834_v29 = vadd.f32 %v1833_v58, %v8377_v53  ;;  %v2114_v51 = vpack.c.bf16 %v2082_v22, %v2078_v17  ;;  %v1945_v62 = vadd.f32 %v1944_v16, %v1832_v4  ;;  %v2023_v60 = vmax.f32 %v1943_v40, 0.0 }
 0x1b9   : > { %v1835_v35 = vpop.f32.mrf.mxu0 }
 0x1ba   : > { %v1948_v59 = vpop.f32.mrf.mxu1  ;;  %v1947_v63 = vadd.f32 %v1946_v28, %v1834_v29  ;;  %v1836_v0 = vadd.f32 %v1835_v35, %v8373_v45  ;;  %2615 = vmatprep.mubr.bf16.mxu0 %v2114_v51  ;;  %v2024_v8 = vmax.f32 %v1945_v62, 0.0 }
 0x1bb   : > { %v1839_v41 = vpop.f32.mrf.mxu0  ;;  %2616 = vmatmul.mubr.bf16.gmra.mxu0 %v2113_v34 }
 0x1bc   : > { %v1952_v46 = vpop.f32.mrf.mxu1  ;;  %v1949_v47 = vadd.f32 %v1948_v59, %v1836_v0  ;;  %v2027_v1 = vmax.f32 %v1947_v63, 0.0  ;;  %v1840_v61 = vadd.f32 %v1839_v41, %v8377_v53 }
 0x1bd   : > { %v1841_v6 = vpop.f32.mrf.mxu0 }
 0x1be   : > { %v1954_v7 = vpop.f32.mrf.mxu1  ;;  %v2028_v54 = vmax.f32 %v1949_v47, 0.0  ;;  %v1842_v55 = vadd.f32 %v1841_v6, %v8373_v45  ;;  %v2087_v2 = vpack.c.bf16 %v2027_v1, %v2023_v60  ;;  %v1953_v25 = vadd.f32 %v1952_v46, %v1840_v61 }
 0x1bf   : > { %v1843_v9 = vpop.f32.mrf.mxu0 }
 0x1c0   : > { %v1956_v14 = vpop.f32.mrf.mxu1  ;;  %v1844_v15 = vadd.f32 %v1843_v9, %v8377_v53  ;;  %v2088_v18 = vpack.c.bf16 %v2028_v54, %v2024_v8  ;;  %v1955_v13 = vadd.f32 %v1954_v7, %v1842_v55  ;;  %v2031_v39 = vmax.f32 %v1953_v25, 0.0  ;;  %v6825_v54 = vld [vmem:[#allocation6 + $0x78] sm:$0xff]  }
 0x1c1   : > { %v1845_v3 = vpop.f32.mrf.mxu0  ;;  %v6826_v55 = vld [vmem:[#allocation6 + $0x38] sm:$0xff]   ;;  %6339 = vmatprep.subr.bf16.mxu0 %v6825_v54 }
 0x1c2   : > { %v1958_v12 = vpop.f32.mrf.mxu1  ;;  %v1957_v19 = vadd.f32 %v1956_v14, %v1844_v15  ;;  %v1846_v24 = vadd.f32 %v1845_v3, %v8373_v45  ;;  %2658 = vmatprep.mubr.bf16.mxu1 %v2088_v18  ;;  %v2032_v36 = vmax.f32 %v1955_v13, 0.0  ;;  %6340 = vmatpush3.bf16.msra.mxu0 %v6826_v55 }
 0x1c3   : > { %v1849_v26 = vpop.f32.mrf.mxu0  ;;  %2659 = vmatmul.mubr.bf16.vlgmr.msra.gmra.mxu1 %v2087_v2 }
 0x1c4   : > { %v1962_v21 = vpop.f32.mrf.mxu1  ;;  %v1959_v27 = vadd.f32 %v1958_v12, %v1846_v24  ;;  %v2035_v30 = vmax.f32 %v1957_v19, 0.0  ;;  %v1850_v42 = vadd.f32 %v1849_v26, %v8377_v53 }
 0x1c5   : > { %v1851_v31 = vpop.f32.mrf.mxu0 }
 0x1c6   : > { %v1964_v33 = vpop.f32.mrf.mxu1  ;;  %v2036_v37 = vmax.f32 %v1959_v27, 0.0  ;;  %v1852_v38 = vadd.f32 %v1851_v31, %v8373_v45  ;;  %v2091_v5 = vpack.c.bf16 %v2035_v30, %v2031_v39  ;;  %v1963_v22 = vadd.f32 %v1962_v21, %v1850_v42  ;;  %v6827_v39 = vld [vmem:[#allocation6 + $0x70] sm:$0xff]  }
 0x1c7   : > { %v1853_v43 = vpop.f32.mrf.mxu0  ;;  %v6828_v42 = vld [vmem:[#allocation6 + $0x30] sm:$0xff]   ;;  %6341 = vmatprep.subr.bf16.mxu0 %v6827_v39 }
 0x1c8   : > { %v1966_v44 = vpop.f32.mrf.mxu1  ;;  %v1854_v48 = vadd.f32 %v1853_v43, %v8377_v53  ;;  %v2092_v50 = vpack.c.bf16 %v2036_v37, %v2032_v36  ;;  %v1965_v11 = vadd.f32 %v1964_v33, %v1852_v38  ;;  %v2039_v59 = vmax.f32 %v1963_v22, 0.0  ;;  %6342 = vmatpush3.bf16.msra.mxu0 %v6828_v42 }
 0x1c9   : > { %v1855_v52 = vpop.f32.mrf.mxu0 }
 0x1ca   : > { %v1968_v10 = vpop.f32.mrf.mxu1  ;;  %v1967_v16 = vadd.f32 %v1966_v44, %v1854_v48  ;;  %v1856_v17 = vadd.f32 %v1855_v52, %v8373_v45  ;;  %2668 = vmatprep.mubr.bf16.mxu1 %v2092_v50  ;;  %v2040_v51 = vmax.f32 %v1965_v11, 0.0 }
 0x1cb   : > { %v1859_v4 = vpop.f32.mrf.mxu0  ;;  %2669 = vmatmul.mubr.bf16.gmra.mxu1 %v2091_v5 }
 0x1cc   : > { %v1972_v23 = vpop.f32.mrf.mxu1  ;;  %v1969_v57 = vadd.f32 %v1968_v10, %v1856_v17  ;;  %v2043_v58 = vmax.f32 %v1967_v16, 0.0  ;;  %v1860_v62 = vadd.f32 %v1859_v4, %v8377_v53 }
 0x1cd   : > { %v1861_v28 = vpop.f32.mrf.mxu0 }
 0x1ce   : > { %v1974_v29 = vpop.f32.mrf.mxu1  ;;  %v2044_v34 = vmax.f32 %v1969_v57, 0.0  ;;  %v1862_v35 = vadd.f32 %v1861_v28, %v8373_v45  ;;  %v2095_v46 = vpack.c.bf16 %v2043_v58, %v2039_v59  ;;  %v1973_v60 = vadd.f32 %v1972_v23, %v1860_v62 }
 0x1cf   : > { %v1863_v63 = vpop.f32.mrf.mxu0 }
 0x1d0   : > { %v1976_v0 = vpop.f32.mrf.mxu1  ;;  %v1864_v40 = vadd.f32 %v1863_v63, %v8377_v53  ;;  %v2096_v41 = vpack.c.bf16 %v2044_v34, %v2040_v51  ;;  %v1975_v6 = vadd.f32 %v1974_v29, %v1862_v35  ;;  %v2047_v19 = vmax.f32 %v1973_v60, 0.0  ;;  %v6829_v63 = vld [vmem:[#allocation6 + $0x68] sm:$0xff]  }
 0x1d1   : > { %v1865_v47 = vpop.f32.mrf.mxu0  ;;  %6343 = vmatprep.subr.bf16.mxu0 %v6829_v63  ;;  %v6836_v63 = vld [vmem:[#allocation6 + $0x10] sm:$0xff]  }
 0x1d2   : > { %v1978_v1 = vpop.f32.mrf.mxu1  ;;  %v1977_v7 = vadd.f32 %v1976_v0, %v1864_v40  ;;  %v1866_v8 = vadd.f32 %v1865_v47, %v8373_v45  ;;  %2678 = vmatprep.mubr.bf16.mxu1 %v2096_v41  ;;  %v2048_v3 = vmax.f32 %v1975_v6, 0.0  ;;  %v6830_v0 = vld [vmem:[#allocation6 + $0x28] sm:$0xff]  }
 0x1d3   : > { %v1869_v61 = vpop.f32.mrf.mxu0  ;;  %2679 = vmatmul.mubr.bf16.gmra.mxu1 %v2095_v46  ;;  %6344 = vmatpush3.bf16.msra.mxu0 %v6830_v0  ;;  %v6838_v0 = vld [vmem:[#allocation6 + $0x8] sm:$0xff]  }
 0x1d4   : > { %v1982_v9 = vpop.f32.mrf.mxu1  ;;  %v1979_v14 = vadd.f32 %v1978_v1, %v1866_v8  ;;  %v2051_v15 = vmax.f32 %v1977_v7, 0.0  ;;  %v1870_v24 = vadd.f32 %v1869_v61, %v8377_v53 }
 0x1d5   : > { %v1871_v18 = vpop.f32.mrf.mxu0 }
 0x1d6   : > { %v1984_v2 = vpop.f32.mrf.mxu1  ;;  %v2052_v12 = vmax.f32 %v1979_v14, 0.0  ;;  %v1872_v13 = vadd.f32 %v1871_v18, %v8373_v45  ;;  %v2099_v30 = vpack.c.bf16 %v2051_v15, %v2047_v19  ;;  %v1983_v43 = vadd.f32 %v1982_v9, %v1870_v24 }
 0x1d7   : > { %v1873_v25 = vpop.f32.mrf.mxu0 }
 0x1d8   : > { %v1986_v26 = vpop.f32.mrf.mxu1  ;;  %v1874_v21 = vadd.f32 %v1873_v25, %v8377_v53  ;;  %v2100_v27 = vpack.c.bf16 %v2052_v12, %v2048_v3  ;;  %v1985_v36 = vadd.f32 %v1984_v2, %v1872_v13  ;;  %v2055_v22 = vmax.f32 %v1983_v43, 0.0  ;;  %v6831_v25 = vld [vmem:[#allocation6 + $0x60] sm:$0xff]  }
 0x1d9   : > { %v1875_v31 = vpop.f32.mrf.mxu0  ;;  %6345 = vmatprep.subr.bf16.mxu0 %v6831_v25  ;;  %v6861_v25 = vld [vmem:[#allocation7 + $0x14] ss:$8 sps:$4 sm:$0xff]  }
 0x1da   : > { %v1988_v33 = vpop.f32.mrf.mxu1  ;;  %v1987_v37 = vadd.f32 %v1986_v26, %v1874_v21  ;;  %v1876_v38 = vadd.f32 %v1875_v31, %v8373_v45  ;;  %2688 = vmatprep.mubr.bf16.mxu1 %v2100_v27  ;;  %v2056_v11 = vmax.f32 %v1985_v36, 0.0  ;;  %v6832_v26 = vld [vmem:[#allocation6 + $0x20] sm:$0xff]  }
 0x1db   : > { %v1879_v44 = vpop.f32.mrf.mxu0  ;;  %2689 = vmatmul.mubr.bf16.gmra.mxu1 %v2099_v30  ;;  %6346 = vmatpush3.bf16.msra.mxu0 %v6832_v26  ;;  %v6859_v26 = vld [vmem:[#allocation7 + $0x10] ss:$8 sps:$4 sm:$0xff]  }
 0x1dc   : > { %v1992_v48 = vpop.f32.mrf.mxu1  ;;  %v1989_v50 = vadd.f32 %v1988_v33, %v1876_v38  ;;  %v2059_v5 = vmax.f32 %v1987_v37, 0.0  ;;  %v1880_v4 = vadd.f32 %v1879_v44, %v8377_v53 }
 0x1dd   : > { %v1881_v52 = vpop.f32.mrf.mxu0 }
 0x1de   : > { %v1994_v10 = vpop.f32.mrf.mxu1  ;;  %v2060_v16 = vmax.f32 %v1989_v50, 0.0  ;;  %v1882_v17 = vadd.f32 %v1881_v52, %v8373_v45  ;;  %v2103_v29 = vpack.c.bf16 %v2059_v5, %v2055_v22  ;;  %v1993_v40 = vadd.f32 %v1992_v48, %v1880_v4  ;;  %v6833_v4 = vld [vmem:[#allocation6 + $0x58] sm:$0xff]  }
 0x1df   : > { %v1883_v23 = vpop.f32.mrf.mxu0  ;;  %6347 = vmatprep.subr.bf16.mxu0 %v6833_v4 }
 0x1e0   : > { %v1996_v57 = vpop.f32.mrf.mxu1  ;;  %v1884_v58 = vadd.f32 %v1883_v23, %v8377_v53  ;;  %v2104_v28 = vpack.c.bf16 %v2060_v16, %v2056_v11  ;;  %v1995_v35 = vadd.f32 %v1994_v10, %v1882_v17  ;;  %v2063_v60 = vmax.f32 %v1993_v40, 0.0  ;;  %v6834_v23 = vld [vmem:[#allocation6 + $0x18] sm:$0xff]   ;;  %v6839_v40 = vld [vmem:[#allocation6 + $0x40] sm:$0xff]  }
 0x1e1   : > { %v1885_v51 = vpop.f32.mrf.mxu0  ;;  %6348 = vmatpush3.bf16.msra.mxu0 %v6834_v23 }
 0x1e2   : > { %v1998_v34 = vpop.f32.mrf.mxu1  ;;  %v1997_v59 = vadd.f32 %v1996_v57, %v1884_v58  ;;  %v1886_v62 = vadd.f32 %v1885_v51, %v8373_v45  ;;  %2698 = vmatprep.mubr.bf16.mxu1 %v2104_v28  ;;  %v2064_v8 = vmax.f32 %v1995_v35, 0.0 }
 0x1e3   : > { %v1889_v41 = vpop.f32.mrf.mxu0  ;;  %2699 = vmatmul.mubr.bf16.gmra.mxu1 %v2103_v29 }
 0x1e4   : > { %v2002_v46 = vpop.f32.mrf.mxu1  ;;  %v1999_v47 = vadd.f32 %v1998_v34, %v1886_v62  ;;  %v2067_v1 = vmax.f32 %v1997_v59, 0.0  ;;  %v1890_v61 = vadd.f32 %v1889_v41, %v8377_v53  ;;  %v6835_v62 = vld [vmem:[#allocation6 + $0x50] sm:$0xff]   ;;  %v6840_v41 = vld [vmem:[#allocation6] sm:$0xff]  }
 0x1e5   : > { %v1891_v6 = vpop.f32.mrf.mxu0  ;;  %6349 = vmatprep.subr.bf16.mxu0 %v6835_v62 }
 0x1e6   : > { %v2004_v7 = vpop.f32.mrf.mxu1  ;;  %v2068_v54 = vmax.f32 %v1999_v47, 0.0  ;;  %v1892_v55 = vadd.f32 %v1891_v6, %v8373_v45  ;;  %v2107_v2 = vpack.c.bf16 %v2067_v1, %v2063_v60  ;;  %v2003_v21 = vadd.f32 %v2002_v46, %v1890_v61  ;;  %6350 = vmatpush3.bf16.msra.mxu0 %v6836_v63  ;;  %v6841_v6 = vld [vmem:[#allocation7 + $0x70] ss:$8 sps:$4 sm:$0xff]   ;;  %v6849_v60 = vld [vmem:[#allocation7 + $0x54] ss:$8 sps:$4 sm:$0xff]  }
 0x1e7   : > { %v1893_v9 = vpop.f32.mrf.mxu0  ;;  %v6847_v61 = vld [vmem:[#allocation7 + $0x50] ss:$8 sps:$4 sm:$0xff]  }
 0x1e8   : > { %v2006_v14 = vpop.f32.mrf.mxu1  ;;  %v1894_v15 = vadd.f32 %v1893_v9, %v8377_v53  ;;  %v2108_v18 = vpack.c.bf16 %v2068_v54, %v2064_v8  ;;  %v2005_v13 = vadd.f32 %v2004_v7, %v1892_v55  ;;  %v2071_v43 = vmax.f32 %v2003_v21, 0.0  ;;  %v6843_v7 = vld [vmem:[#allocation7 + $0x74] ss:$8 sps:$4 sm:$0xff]   ;;  %v6846_v8 = vld [vmem:[#allocation7 + $0x64] ss:$8 sps:$4 sm:$0xff]  }
 0x1e9   : > { %v1895_v3 = vpop.f32.mrf.mxu0  ;;  %3151 = vmatprep.subr.bf16.mxu1 %v6843_v7  ;;  %v6844_v54 = vld [vmem:[#allocation7 + $0x60] ss:$8 sps:$4 sm:$0xff]  }
 0x1ea   : > { %v2008_v12 = vpop.f32.mrf.mxu1  ;;  %v2007_v19 = vadd.f32 %v2006_v14, %v1894_v15  ;;  %v1896_v24 = vadd.f32 %v1895_v3, %v8373_v45  ;;  %2708 = vmatprep.mubr.bf16.mxu1 %v2108_v18  ;;  %v2072_v38 = vmax.f32 %v2005_v13, 0.0  ;;  %3152 = vmatpush1.bf16.msra.mxu1 %v6841_v6  ;;  %v6852_v14 = vld [vmem:[#allocation7 + $0x44] ss:$8 sps:$4 sm:$0xff]   ;;  %v6850_v15 = vld [vmem:[#allocation7 + $0x40] ss:$8 sps:$4 sm:$0xff]  }
 0x1eb   : > { %v1899_v27 = vpop.f32.mrf.mxu0  ;;  %2709 = vmatmul.mubr.bf16.gmra.mxu1 %v2107_v2  ;;  %3153 = vmatprep.subr.bf16.mxu1 %v6846_v8  ;;  %v6855_v2 = vld [vmem:[#allocation7 + $0x34] ss:$8 sps:$4 sm:$0xff]   ;;  %v6853_v3 = vld [vmem:[#allocation7 + $0x30] ss:$8 sps:$4 sm:$0xff]   ;;  %v6858_v13 = vld [vmem:[#allocation7 + $0x24] ss:$8 sps:$4 sm:$0xff]  }
 0x1ec   : > { %v2012_v30 = vpop.f32.mrf.mxu1  ;;  %v2009_v31 = vadd.f32 %v2008_v12, %v1896_v24  ;;  %v2075_v33 = vmax.f32 %v2007_v19, 0.0  ;;  %v1900_v44 = vadd.f32 %v1899_v27, %v8377_v53  ;;  %v6856_v19 = vld [vmem:[#allocation7 + $0x20] ss:$8 sps:$4 sm:$0xff]  }
 0x1ed   : > { %v1901_v36 = vpop.f32.mrf.mxu0 }
 0x1ee   : > { %v2014_v37 = vpop.f32.mrf.mxu1  ;;  %v2076_v39 = vmax.f32 %v2009_v31, 0.0  ;;  %v1902_v42 = vadd.f32 %v1901_v36, %v8373_v45  ;;  %v2111_v10 = vpack.c.bf16 %v2075_v33, %v2071_v43  ;;  %v2013_v57 = vadd.f32 %v2012_v30, %v1900_v44  ;;  %3154 = vmatpush1.bf16.msra.mxu1 %v6844_v54 }
 0x1ef   : > { %v1903_v48 = vpop.f32.mrf.mxu0  ;;  %3155 = vmatprep.subr.bf16.mxu1 %v6849_v60 }
 0x1f0   : > { %v2016_v50 = vpop.f32.mrf.mxu1  ;;  %v1904_v5 = vadd.f32 %v1903_v48, %v8377_v53  ;;  %v2112_v52 = vpack.c.bf16 %v2076_v39, %v2072_v38  ;;  %v2015_v16 = vadd.f32 %v2014_v37, %v1902_v42  ;;  %v2079_v53 = vmax.f32 %v2013_v57, 0.0  ;;  %v2181_v39 = vld [vmem:[#allocation4] sm:$0x3] }
 0x1f1   : > { %v1905_v11 = vpop.f32.mrf.mxu0  ;;  %v8422_v43 = vrot.slane %v2181_v39, %v8318_v56  ;;  %v8425_v44 = vrot.slane %v2181_v39, %v8321_v49 }
 0x1f2   : > { %v2017_v17 = vadd.f32 %v2016_v50, %v1904_v5  ;;  %v1906_v22 = vadd.f32 %v1905_v11, %v8373_v45  ;;  %2718 = vmatprep.mubr.bf16.mxu1 %v2112_v52  ;;  %v2018_v58 = vpop.f32.mrf.mxu1  ;;  %v2080_v51 = vmax.f32 %v2015_v16, 0.0  ;;  %v6837_v45 = vld [vmem:[#allocation6 + $0x48] sm:$0xff]   ;;  %3156 = vmatpush1.bf16.msra.mxu1 %v6847_v61 }
 0x1f3   : > { %2719 = vmatmul.mubr.bf16.gmra.mxu1 %v2111_v10  ;;  %6351 = vmatprep.subr.bf16.mxu0 %v6837_v45 }
 0x1f4   : > { %v2019_v28 = vadd.f32 %v2018_v58, %v1906_v22  ;;  %v2083_v29 = vmax.f32 %v2017_v17, 0.0  ;;  %6352 = vmatpush3.bf16.msra.mxu0 %v6838_v0  ;;  %3157 = vmatprep.subr.bf16.mxu1 %v6852_v14 }
 0x1f5   : > { %6353 = vmatprep.subr.bf16.mxu0 %v6839_v40 }
 0x1f6   : > { %v2084_v34 = vmax.f32 %v2019_v28, 0.0  ;;  %v2115_v59 = vpack.c.bf16 %v2083_v29, %v2079_v53  ;;  %3158 = vmatpush1.bf16.msra.mxu1 %v6850_v15 }
 0x1f7   : > { %3159 = vmatprep.subr.bf16.mxu1 %v6855_v2 }
 0x1f8   : > { %v2116_v35 = vpack.c.bf16 %v2084_v34, %v2080_v51  ;;  %6354 = vmatpush3.bf16.msra.mxu0 %v6840_v41 }
 0x1fa   : > { %2728 = vmatprep.mubr.bf16.mxu1 %v2116_v35  ;;  %3160 = vmatpush1.bf16.msra.mxu1 %v6853_v3 }
 0x1fb   : > { %2729 = vmatmul.mubr.bf16.gmra.mxu1 %v2115_v59  ;;  %3161 = vmatprep.subr.bf16.mxu1 %v6858_v13 }
 0x1fe   : > { %3162 = vmatpush1.bf16.msra.mxu1 %v6856_v19 }
 0x1ff   : > { %3163 = vmatprep.subr.bf16.mxu1 %v6861_v25 }
 0x202   : > { %3164 = vmatpush1.bf16.msra.mxu1 %v6859_v26 }
 0x243   : > { %v2547_v46 = vpop.f32.mrf.mxu0 }
 0x244   : > { %v2548_v11 = vadd.f32 %v2547_v46, %v8425_v44 }
 0x245   : > { %v2549_v47 = vpop.f32.mrf.mxu0 }
 0x246   : > { %v2550_v52 = vadd.f32 %v2549_v47, %v8422_v43 }
 0x247   : > { %v2551_v1 = vpop.f32.mrf.mxu0 }
 0x248   : > { %v2552_v10 = vadd.f32 %v2551_v1, %v8425_v44 }
 0x249   : > { %v2553_v55 = vpop.f32.mrf.mxu0 }
 0x24a   : > { %v2554_v17 = vadd.f32 %v2553_v55, %v8422_v43 }
 0x24b   : > { %v2557_v9 = vpop.f32.mrf.mxu0 }
 0x24c   : > { %v2558_v40 = vadd.f32 %v2557_v9, %v8425_v44 }
 0x24d   : > { %v2559_v18 = vpop.f32.mrf.mxu0 }
 0x24e   : > { %v2560_v63 = vadd.f32 %v2559_v18, %v8422_v43 }
 0x24f   : > { %v2561_v12 = vpop.f32.mrf.mxu0 }
 0x250   : > { %v2562_v45 = vadd.f32 %v2561_v12, %v8425_v44 }
 0x251   : > { %v2563_v24 = vpop.f32.mrf.mxu0 }
 0x252   : > { %v2564_v47 = vadd.f32 %v2563_v24, %v8422_v43 }
 0x253   : > { %v2567_v21 = vpop.f32.mrf.mxu0 }
 0x254   : > { %v2568_v19 = vadd.f32 %v2567_v21, %v8425_v44 }
 0x255   : > { %v2569_v27 = vpop.f32.mrf.mxu0 }
 0x256   : > { %v2570_v3 = vadd.f32 %v2569_v27, %v8422_v43 }
 0x257   : > { %v2571_v30 = vpop.f32.mrf.mxu0 }
 0x258   : > { %v2572_v12 = vadd.f32 %v2571_v30, %v8425_v44 }
 0x259   : > { %v2573_v31 = vpop.f32.mrf.mxu0 }
 0x25a   : > { %v2574_v26 = vadd.f32 %v2573_v31, %v8422_v43 }
 0x25b   : > { %v8411_v33 = vpop.f32.mrf.mxu0 }
 0x25d   : > { %v8413_v36 = vpop.f32.mrf.mxu0 }
 0x25e   : > { %v2580_v21 = vadd.f32 %v8413_v36, %v8422_v43 }
 0x25f   : > { %v8415_v37 = vpop.f32.mrf.mxu0 }
 0x260   : > { %v2582_v31 = vadd.f32 %v8415_v37, %v8425_v44 }
 0x261   : > { %v8417_v38 = vpop.f32.mrf.mxu0 }
 0x263   : > { %v8419_v42 = vpop.f32.mrf.mxu0 }
 0x265   : > { %v8427_v50 = vpop.f32.mrf.mxu0 }
 0x267   : > { %v8433_v23 = vpop.f32.mrf.mxu0 }
 0x269   : > { %v8435_v35 = vpop.f32.mrf.mxu0 }
 0x26b   : > { %v8441_v7 = vpop.f32.mrf.mxu0 }
 0x26d   : > { %v8443_v18 = vpop.f32.mrf.mxu0 }
 0x283   : > { %v2660_v48 = vpop.f32.mrf.mxu1 }
 0x284   : > { %v2661_v57 = vadd.f32 %v2660_v48, %v2548_v11 }
 0x285   : > { %v2662_v5 = vpop.f32.mrf.mxu1 }
 0x286   : > { %v2663_v22 = vadd.f32 %v2662_v5, %v2550_v52  ;;  %v2739_v59 = vmax.f32 %v2661_v57, 0.0  ;;  %v2601_v5 = vpop.f32.mrf.mxu0 }
 0x287   : > { %v2664_v16 = vpop.f32.mrf.mxu1 }
 0x288   : > { %v2665_v4 = vadd.f32 %v2664_v16, %v2552_v10  ;;  %v2740_v34 = vmax.f32 %v2663_v22, 0.0  ;;  %v2603_v30 = vpop.f32.mrf.mxu0 }
 0x289   : > { %v2666_v58 = vpop.f32.mrf.mxu1 }
 0x28a   : > { %v2667_v28 = vadd.f32 %v2666_v58, %v2554_v17  ;;  %v2741_v29 = vmax.f32 %v2665_v4, 0.0 }
 0x28b   : > { %v2670_v51 = vpop.f32.mrf.mxu1 }
 0x28c   : > { %v2742_v53 = vmax.f32 %v2667_v28, 0.0  ;;  %v2771_v41 = vpack.c.bf16 %v2741_v29, %v2739_v59  ;;  %v2671_v8 = vadd.f32 %v2670_v51, %v2558_v40  ;;  %v2578_v28 = vadd.f32 %v8411_v33, %v8425_v44 }
 0x28d   : > { %v2672_v62 = vpop.f32.mrf.mxu1 }
 0x28e   : > { %v2772_v0 = vpack.c.bf16 %v2742_v53, %v2740_v34  ;;  %v2673_v1 = vadd.f32 %v2672_v62, %v2560_v63  ;;  %v2743_v9 = vmax.f32 %v2671_v8, 0.0  ;;  %v2584_v34 = vadd.f32 %v8417_v38, %v8422_v43  ;;  %v2607_v62 = vpop.f32.mrf.mxu0 }
 0x28f   : > { %v2674_v46 = vpop.f32.mrf.mxu1  ;;  %v2592_v38 = vadd.f32 %v8433_v23, %v8425_v44  ;;  %v2588_v8 = vadd.f32 %v8419_v42, %v8425_v44 }
 0x290   : > { %v2675_v6 = vadd.f32 %v2674_v46, %v2562_v45  ;;  %2954 = vmatprep.mubr.bf16.mxu0 %v2772_v0  ;;  %v2744_v14 = vmax.f32 %v2673_v1, 0.0  ;;  %v2609_v46 = vpop.f32.mrf.mxu0  ;;  %v2590_v1 = vadd.f32 %v8427_v50, %v8422_v43 }
 0x291   : > { %v2676_v54 = vpop.f32.mrf.mxu1  ;;  %2955 = vmatmul.mubr.bf16.vlgmr.msra.gmra.mxu0 %v2771_v41 }
 0x292   : > { %v2677_v55 = vadd.f32 %v2676_v54, %v2564_v47  ;;  %v2745_v60 = vmax.f32 %v2675_v6, 0.0 }
 0x293   : > { %v2680_v61 = vpop.f32.mrf.mxu1 }
 0x294   : > { %v2746_v15 = vmax.f32 %v2677_v55, 0.0  ;;  %v2773_v24 = vpack.c.bf16 %v2745_v60, %v2743_v9  ;;  %v2681_v52 = vadd.f32 %v2680_v61, %v2568_v19  ;;  %v2594_v60 = vadd.f32 %v8435_v35, %v8422_v43 }
 0x295   : > { %v2682_v2 = vpop.f32.mrf.mxu1  ;;  %v2602_v35 = vadd.f32 %v2601_v5, %v8425_v44 }
 0x296   : > { %v2774_v13 = vpack.c.bf16 %v2746_v15, %v2744_v14  ;;  %v2683_v39 = vadd.f32 %v2682_v2, %v2570_v3  ;;  %v2747_v4 = vmax.f32 %v2681_v52, 0.0  ;;  %v2611_v15 = vpop.f32.mrf.mxu0 }
 0x297   : > { %v2684_v25 = vpop.f32.mrf.mxu1 }
 0x298   : > { %v2685_v48 = vadd.f32 %v2684_v25, %v2572_v12  ;;  %2962 = vmatprep.mubr.bf16.mxu0 %v2774_v13  ;;  %v2748_v27 = vmax.f32 %v2683_v39, 0.0  ;;  %v2613_v19 = vpop.f32.mrf.mxu0  ;;  %v2600_v25 = vadd.f32 %v8443_v18, %v8422_v43  ;;  %v2598_v39 = vadd.f32 %v8441_v7, %v8425_v44 }
 0x299   : > { %v2686_v10 = vpop.f32.mrf.mxu1  ;;  %2963 = vmatmul.mubr.bf16.gmra.mxu0 %v2773_v24  ;;  %v2610_v7 = vadd.f32 %v2609_v46, %v8422_v43 }
 0x29a   : > { %v2687_v11 = vadd.f32 %v2686_v10, %v2574_v26  ;;  %v2749_v16 = vmax.f32 %v2685_v48, 0.0  ;;  %v2604_v10 = vadd.f32 %v2603_v30, %v8422_v43 }
 0x29b   : > { %v2690_v17 = vpop.f32.mrf.mxu1 }
 0x29c   : > { %v2750_v22 = vmax.f32 %v2687_v11, 0.0  ;;  %v2775_v29 = vpack.c.bf16 %v2749_v16, %v2747_v4  ;;  %v2691_v63 = vadd.f32 %v2690_v17, %v2578_v28  ;;  %v2617_v17 = vpop.f32.mrf.mxu0 }
 0x29d   : > { %v2692_v57 = vpop.f32.mrf.mxu1 }
 0x29e   : > { %v2776_v58 = vpack.c.bf16 %v2750_v22, %v2748_v27  ;;  %v2693_v53 = vadd.f32 %v2692_v57, %v2580_v21  ;;  %v2751_v47 = vmax.f32 %v2691_v63, 0.0 }
 0x29f   : > { %v2694_v51 = vpop.f32.mrf.mxu1 }
 0x2a0   : > { %v2695_v59 = vadd.f32 %v2694_v51, %v2582_v31  ;;  %2970 = vmatprep.mubr.bf16.mxu0 %v2776_v58  ;;  %v2752_v37 = vmax.f32 %v2693_v53, 0.0  ;;  %v2619_v31 = vpop.f32.mrf.mxu0  ;;  %v2608_v51 = vadd.f32 %v2607_v62, %v8425_v44 }
 0x2a1   : > { %v2696_v45 = vpop.f32.mrf.mxu1  ;;  %2971 = vmatmul.mubr.bf16.gmra.mxu0 %v2775_v29  ;;  %v2612_v29 = vadd.f32 %v2611_v15, %v8425_v44  ;;  %v2620_v62 = vadd.f32 %v2619_v31, %v8422_v43  ;;  %v6907_v31 = vld [vmem:[#allocation10] ss:$16 sps:$4 sm:$0xff]  }
 0x2a2   : > { %v2697_v36 = vadd.f32 %v2696_v45, %v2584_v34  ;;  %v2753_v0 = vmax.f32 %v2695_v59, 0.0  ;;  %v2614_v59 = vadd.f32 %v2613_v19, %v8422_v43 }
 0x2a3   : > { %v2700_v40 = vpop.f32.mrf.mxu1 }
 0x2a4   : > { %v2754_v41 = vmax.f32 %v2697_v36, 0.0  ;;  %v2777_v54 = vpack.c.bf16 %v2753_v0, %v2751_v47  ;;  %v2701_v9 = vadd.f32 %v2700_v40, %v2588_v8  ;;  %v2621_v36 = vpop.f32.mrf.mxu0 }
 0x2a5   : > { %v2702_v33 = vpop.f32.mrf.mxu1  ;;  %v2622_v8 = vadd.f32 %v2621_v36, %v8425_v44  ;;  %v8484_v36 = vld [vmem:[%s8892_s6] ss:$0 sm:$0xff] }
 0x2a6   : > { %v2778_v6 = vpack.c.bf16 %v2754_v41, %v2752_v37  ;;  %v2703_v61 = vadd.f32 %v2702_v33, %v2590_v1  ;;  %v2755_v24 = vmax.f32 %v2701_v9, 0.0  ;;  %v2623_v1 = vpop.f32.mrf.mxu0 }
 0x2a7   : > { %v2704_v55 = vpop.f32.mrf.mxu1 }
 0x2a8   : > { %v2705_v14 = vadd.f32 %v2704_v55, %v2592_v38  ;;  %2978 = vmatprep.mubr.bf16.mxu0 %v2778_v6  ;;  %v2756_v23 = vmax.f32 %v2703_v61, 0.0  ;;  %v2618_v55 = vadd.f32 %v2617_v17, %v8425_v44  ;;  %v6862_v44 = vld [vmem:[#allocation7] ss:$8 sps:$4 sm:$0xff]  }
 0x2a9   : > { %v2706_v2 = vpop.f32.mrf.mxu1  ;;  %2979 = vmatmul.mubr.bf16.gmra.mxu0 %v2777_v54  ;;  %v6883_v17 = vld [vmem:[#allocation10 + $0x80] ss:$16 sps:$4 sm:$0xff]  }
 0x2aa   : > { %v2707_v50 = vadd.f32 %v2706_v2, %v2594_v60  ;;  %v2757_v3 = vmax.f32 %v2705_v14, 0.0  ;;  %v2624_v14 = vadd.f32 %v2623_v1, %v8422_v43  ;;  %v7372_v43 = vmov 0  }
 0x2ab   : > { %v2710_v12 = vpop.f32.mrf.mxu1  ;;  %3183 = vmatprep.mubr.bf16.mxu1 %v7372_v43 }
 0x2ac   : > { %v2758_v13 = vmax.f32 %v2707_v50, 0.0  ;;  %v2779_v48 = vpack.c.bf16 %v2757_v3, %v2755_v24  ;;  %v2711_v27 = vadd.f32 %v2710_v12, %v2598_v39  ;;  %v6870_v39 = vld [vmem:[#allocation10 + $0xec] ss:$16 sps:$4 sm:$0xff]  }
 0x2ad   : > { %v2712_v42 = vpop.f32.mrf.mxu1 }
 0x2ae   : > { %v2780_v26 = vpack.c.bf16 %v2758_v13, %v2756_v23  ;;  %v2713_v11 = vadd.f32 %v2712_v42, %v2600_v25  ;;  %v2759_v58 = vmax.f32 %v2711_v27, 0.0  ;;  %v6864_v25 = vld [vmem:[#allocation7 + $0x4] ss:$8 sps:$4 sm:$0xff]  }
 0x2af   : > { %v2714_v52 = vpop.f32.mrf.mxu1  ;;  %3165 = vmatprep.subr.bf16.mxu1 %v6864_v25  ;;  %v6891_v27 = vld [vmem:[#allocation10 + $0x64] ss:$16 sps:$4 sm:$0xff]   ;;  %v6886_v25 = vld [vmem:[#allocation10 + $0x88] ss:$16 sps:$4 sm:$0xff]  }
 0x2b0   : > { %v2715_v16 = vadd.f32 %v2714_v52, %v2602_v35  ;;  %2986 = vmatprep.mubr.bf16.mxu0 %v2780_v26  ;;  %v2760_v21 = vmax.f32 %v2713_v11, 0.0  ;;  %3166 = vmatpush1.bf16.msra.mxu1 %v6862_v44  ;;  %v6865_v35 = vld [vmem:[#allocation10 + $0xe0] ss:$16 sps:$4 sm:$0xff]   ;;  %v6867_v26 = vld [vmem:[#allocation10 + $0xe4] ss:$16 sps:$4 sm:$0xff]  }
 0x2b1   : > { %v2716_v22 = vpop.f32.mrf.mxu1  ;;  %2987 = vmatmul.mubr.bf16.gmra.mxu0 %v2779_v48  ;;  %v6873_v48 = vld [vmem:[#allocation10 + $0xc4] ss:$16 sps:$4 sm:$0xff]   ;;  %3718 = vmatprep.subr.bf16.mxu0 %v6867_v26  ;;  %v6871_v52 = vld [vmem:[#allocation10 + $0xc0] ss:$16 sps:$4 sm:$0xff]   ;;  %v6894_v26 = vld [vmem:[#allocation10 + $0x6c] ss:$16 sps:$4 sm:$0xff]  }
 0x2b2   : > { %v2717_v4 = vadd.f32 %v2716_v22, %v2604_v10  ;;  %v2761_v57 = vmax.f32 %v2715_v16, 0.0  ;;  %3831 = vmatprep.subr.bf16.mxu1 %v6870_v39  ;;  %3719 = vmatpush1.bf16.msra.mxu0 %v6865_v35  ;;  %v6879_v10 = vld [vmem:[#allocation10 + $0xa4] ss:$16 sps:$4 sm:$0xff]   ;;  %v6877_v11 = vld [vmem:[#allocation10 + $0xa0] ss:$16 sps:$4 sm:$0xff]  }
 0x2b3   : > { %v2720_v18 = vpop.f32.mrf.mxu1  ;;  %3720 = vmatprep.subr.bf16.mxu0 %v6873_v48  ;;  %v6885_v16 = vld [vmem:[#allocation10 + $0x84] ss:$16 sps:$4 sm:$0xff]   ;;  %v6889_v22 = vld [vmem:[#allocation10 + $0x60] ss:$16 sps:$4 sm:$0xff]  }
 0x2b4   : > { %v2762_v5 = vmax.f32 %v2717_v4, 0.0  ;;  %v2781_v34 = vpack.c.bf16 %v2761_v57, %v2759_v58  ;;  %v2721_v0 = vadd.f32 %v2720_v18, %v2608_v51  ;;  %v6897_v4 = vld [vmem:[#allocation10 + $0x44] ss:$16 sps:$4 sm:$0xff]   ;;  %v6895_v57 = vld [vmem:[#allocation10 + $0x40] ss:$16 sps:$4 sm:$0xff]  }
 0x2b5   : > { %v2722_v28 = vpop.f32.mrf.mxu1  ;;  %v6903_v18 = vld [vmem:[#allocation10 + $0x24] ss:$16 sps:$4 sm:$0xff]   ;;  %v6925_v51 = vld [vmem:[#allocation10 + $0x1a0] ss:$16 sps:$4 sm:$0xff]  }
 0x2b6   : > { %v2782_v30 = vpack.c.bf16 %v2762_v5, %v2760_v21  ;;  %v2723_v63 = vadd.f32 %v2722_v28, %v2610_v7  ;;  %v2763_v38 = vmax.f32 %v2721_v0, 0.0  ;;  %3721 = vmatpush1.bf16.msra.mxu0 %v6871_v52  ;;  %v6901_v21 = vld [vmem:[#allocation10 + $0x20] ss:$16 sps:$4 sm:$0xff]   ;;  %v6909_v5 = vld [vmem:[#allocation10 + $0x4] ss:$16 sps:$4 sm:$0xff]  }
 0x2b7   : > { %v2724_v53 = vpop.f32.mrf.mxu1  ;;  %3722 = vmatprep.subr.bf16.mxu0 %v6879_v10  ;;  %v6915_v58 = vld [vmem:[#allocation10 + $0x1e4] ss:$16 sps:$4 sm:$0xff]   ;;  %v6913_v28 = vld [vmem:[#allocation10 + $0x1e0] ss:$16 sps:$4 sm:$0xff]   ;;  %v6892_v10 = vld [vmem:[#allocation10 + $0x68] ss:$16 sps:$4 sm:$0xff]  }
 0x2b8   : > { %v2725_v45 = vadd.f32 %v2724_v53, %v2612_v29  ;;  %2994 = vmatprep.mubr.bf16.mxu0 %v2782_v30  ;;  %v2764_v46 = vmax.f32 %v2723_v63, 0.0  ;;  %v6921_v7 = vld [vmem:[#allocation10 + $0x1c4] ss:$16 sps:$4 sm:$0xff]   ;;  %v6919_v29 = vld [vmem:[#allocation10 + $0x1c0] ss:$16 sps:$4 sm:$0xff]  }
 0x2b9   : > { %v2726_v40 = vpop.f32.mrf.mxu1  ;;  %2995 = vmatmul.mubr.bf16.gmra.mxu0 %v2781_v34  ;;  %v6927_v30 = vld [vmem:[#allocation10 + $0x1a4] ss:$16 sps:$4 sm:$0xff]   ;;  %v6931_v53 = vld [vmem:[#allocation10 + $0x180] ss:$16 sps:$4 sm:$0xff]  }
 0x2ba   : > { %v2727_v37 = vadd.f32 %v2726_v40, %v2614_v59  ;;  %v2765_v41 = vmax.f32 %v2725_v45, 0.0  ;;  %3723 = vmatpush1.bf16.msra.mxu0 %v6877_v11  ;;  %v6933_v34 = vld [vmem:[#allocation10 + $0x184] ss:$16 sps:$4 sm:$0xff]   ;;  %v6937_v63 = vld [vmem:[#allocation10 + $0x160] ss:$16 sps:$4 sm:$0xff]  }
 0x2bb   : > { %v2730_v47 = vpop.f32.mrf.mxu1  ;;  %3724 = vmatprep.subr.bf16.mxu0 %v6885_v16  ;;  %v6939_v59 = vld [vmem:[#allocation10 + $0x164] ss:$16 sps:$4 sm:$0xff]  }
 0x2bc   : > { %v2766_v33 = vmax.f32 %v2727_v37, 0.0  ;;  %v2783_v60 = vpack.c.bf16 %v2765_v41, %v2763_v38  ;;  %v2731_v2 = vadd.f32 %v2730_v47, %v2618_v55 }
 0x2bd   : > { %v2732_v6 = vpop.f32.mrf.mxu1 }
 0x2be   : > { %v2784_v54 = vpack.c.bf16 %v2766_v33, %v2764_v46  ;;  %v2733_v15 = vadd.f32 %v2732_v6, %v2620_v62  ;;  %v2767_v19 = vmax.f32 %v2731_v2, 0.0  ;;  %3725 = vmatpush1.bf16.msra.mxu0 %v6883_v17  ;;  %v6868_v6 = vld [vmem:[#allocation10 + $0xe8] ss:$16 sps:$4 sm:$0xff]   ;;  %v6900_v17 = vld [vmem:[#allocation10 + $0x4c] ss:$16 sps:$4 sm:$0xff]  }
 0x2bf   : > { %v2734_v61 = vpop.f32.mrf.mxu1  ;;  %3726 = vmatprep.subr.bf16.mxu0 %v6891_v27 }
 0x2c0   : > { %v2735_v9 = vadd.f32 %v2734_v61, %v2622_v8  ;;  %3002 = vmatprep.mubr.bf16.mxu0 %v2784_v54  ;;  %v2768_v23 = vmax.f32 %v2733_v15, 0.0  ;;  %v6876_v54 = vld [vmem:[#allocation10 + $0xcc] ss:$16 sps:$4 sm:$0xff]  }
 0x2c1   : > { %v2736_v50 = vpop.f32.mrf.mxu1  ;;  %3003 = vmatmul.mubr.bf16.gmra.mxu0 %v2783_v60 }
 0x2c2   : > { %v2737_v3 = vadd.f32 %v2736_v50, %v2624_v14  ;;  %v2769_v12 = vmax.f32 %v2735_v9, 0.0  ;;  %3727 = vmatpush1.bf16.msra.mxu0 %v6889_v22  ;;  %v6874_v14 = vld [vmem:[#allocation10 + $0xc8] ss:$16 sps:$4 sm:$0xff]   ;;  %v6882_v9 = vld [vmem:[#allocation10 + $0xac] ss:$16 sps:$4 sm:$0xff]  }
 0x2c3   : > { %3728 = vmatprep.subr.bf16.mxu0 %v6897_v4 }
 0x2c4   : > { %v2770_v13 = vmax.f32 %v2737_v3, 0.0  ;;  %v2785_v42 = vpack.c.bf16 %v2769_v12, %v2767_v19  ;;  %v6880_v12 = vld [vmem:[#allocation10 + $0xa8] ss:$16 sps:$4 sm:$0xff]   ;;  %v6888_v19 = vld [vmem:[#allocation10 + $0x8c] ss:$16 sps:$4 sm:$0xff]  }
 0x2c6   : > { %v2786_v24 = vpack.c.bf16 %v2770_v13, %v2768_v23  ;;  %3729 = vmatpush1.bf16.msra.mxu0 %v6895_v57  ;;  %v6898_v57 = vld [vmem:[#allocation10 + $0x48] ss:$16 sps:$4 sm:$0xff]  }
 0x2c7   : > { %3730 = vmatprep.subr.bf16.mxu0 %v6903_v18 }
 0x2c8   : > { %3010 = vmatprep.mubr.bf16.mxu0 %v2786_v24 }
 0x2c9   : > { %3011 = vmatmul.mubr.bf16.gmra.mxu0 %v2785_v42 }
 0x2ca   : > { %3731 = vmatpush1.bf16.msra.mxu0 %v6901_v21  ;;  %v6906_v21 = vld [vmem:[#allocation10 + $0x2c] ss:$16 sps:$4 sm:$0xff]  }
 0x2cb   : > { %3732 = vmatprep.subr.bf16.mxu0 %v6909_v5 }
 0x2ce   : > { %3733 = vmatpush1.bf16.msra.mxu0 %v6907_v31 }
 0x2cf   : > { %3734 = vmatprep.subr.bf16.mxu0 %v6915_v58 }
 0x2d2   : > { %3735 = vmatpush2.bf16.msra.mxu0 %v6913_v28  ;;  %v6904_v28 = vld [vmem:[#allocation10 + $0x28] ss:$16 sps:$4 sm:$0xff]  }
 0x2d3   : > { %3736 = vmatprep.subr.bf16.mxu0 %v6921_v7 }
 0x2d6   : > { %3737 = vmatpush2.bf16.msra.mxu0 %v6919_v29 }
 0x2d7   : > { %3738 = vmatprep.subr.bf16.mxu0 %v6927_v30  ;;  %v6912_v30 = vld [vmem:[#allocation10 + $0xc] ss:$16 sps:$4 sm:$0xff]  }
 0x2da   : > { %3739 = vmatpush2.bf16.msra.mxu0 %v6925_v51 }
 0x2db   : > { %3740 = vmatprep.subr.bf16.mxu0 %v6933_v34 }
 0x2de   : > { %3741 = vmatpush2.bf16.msra.mxu0 %v6931_v53 }
 0x2df   : > { %3742 = vmatprep.subr.bf16.mxu0 %v6939_v59  ;;  %v6910_v59 = vld [vmem:[#allocation10 + $0x8] ss:$16 sps:$4 sm:$0xff]  }
 0x2e2   : > { %3743 = vmatpush2.bf16.msra.mxu0 %v6937_v63 }
 0x351   : > { %v6355_v45 = vpop.f32.mrf.mxu0 }
 0x353   : > { %v6356_v0 = vpop.f32.mrf.mxu0 }
 0x354   : > { %v6357_v40 = vadd.f32 %v6356_v0, %v6355_v45  ;;  %v6918_v45 = vld [vmem:[#allocation10 + $0x1ec] ss:$16 sps:$4 sm:$0xff]  }
 0x355   : > { %v6358_v37 = vpop.f32.mrf.mxu0 }
 0x356   : > { %v2957_v41 = vadd.f32 %v6357_v40, %v8484_v36 }
 0x357   : > { %v6359_v47 = vpop.f32.mrf.mxu0 }
 0x358   : > { %3019 = vst [vmem:[%s8489_s17] sm:$0xff] %v2957_v41  ;;  %v6360_v46 = vadd.f32 %v6359_v47, %v6358_v37 }
 0x359   : > { %v6361_v33 = vpop.f32.mrf.mxu0 }
 0x35a   : > { %v2960_v1 = vadd.f32 %v6360_v46, %v8484_v36 }
 0x35b   : > { %v6362_v38 = vpop.f32.mrf.mxu0 }
 0x35c   : > { %3020 = vst [vmem:[%s8489_s17 + $0x8] sm:$0xff] %v2960_v1  ;;  %v3035_v62 = vpack.c.bf16 %v2960_v1, %v2957_v41  ;;  %v6363_v8 = vadd.f32 %v6362_v38, %v6361_v33  ;;  %v6916_v41 = vld [vmem:[#allocation10 + $0x1e8] ss:$16 sps:$4 sm:$0xff]   ;;  %v6924_v33 = vld [vmem:[#allocation10 + $0x1cc] ss:$16 sps:$4 sm:$0xff]  }
 0x35d   : > { %v6364_v55 = vpop.f32.mrf.mxu0 }
 0x35e   : > { %v2965_v60 = vadd.f32 %v6363_v8, %v8484_v36  ;;  %3184 = vmatmul.mubr.bf16.vlgmr.msra.gmra.mxu1 %v3035_v62  ;;  %v6922_v62 = vld [vmem:[#allocation10 + $0x1c8] ss:$16 sps:$4 sm:$0xff]  }
 0x35f   : > { %v6365_v61 = vpop.f32.mrf.mxu0  ;;  %3193 = vmatprep.mubr.bf16.mxu1 %v7372_v43  ;;  %3832 = vmatpush1.bf16.msra.mxu1 %v6868_v6 }
 0x360   : > { %3021 = vst [vmem:[%s8489_s17 + $0x10] sm:$0xff] %v2965_v60  ;;  %v6366_v15 = vadd.f32 %v6365_v61, %v6364_v55  ;;  %3833 = vmatprep.subr.bf16.mxu1 %v6876_v54  ;;  %v6930_v54 = vld [vmem:[#allocation10 + $0x1ac] ss:$16 sps:$4 sm:$0xff]  }
 0x361   : > { %v6367_v2 = vpop.f32.mrf.mxu0 }
 0x362   : > { %v2968_v50 = vadd.f32 %v6366_v15, %v8484_v36 }
 0x363   : > { %v6368_v3 = vpop.f32.mrf.mxu0  ;;  %3834 = vmatpush1.bf16.msra.mxu1 %v6874_v14  ;;  %v6928_v14 = vld [vmem:[#allocation10 + $0x1a8] ss:$16 sps:$4 sm:$0xff]  }
 0x364   : > { %3022 = vst [vmem:[%s8489_s17 + $0x18] sm:$0xff] %v2968_v50  ;;  %v6369_v23 = vadd.f32 %v6368_v3, %v6367_v2  ;;  %v3036_v13 = vpack.c.bf16 %v2968_v50, %v2965_v60  ;;  %3835 = vmatprep.subr.bf16.mxu1 %v6882_v9  ;;  %v6936_v2 = vld [vmem:[#allocation10 + $0x18c] ss:$16 sps:$4 sm:$0xff]  }
 0x365   : > { %v6370_v24 = vpop.f32.mrf.mxu0 }
 0x366   : > { %v2973_v42 = vadd.f32 %v6369_v23, %v8484_v36  ;;  %3194 = vmatmul.mubr.bf16.gmra.mxu1 %v3036_v13  ;;  %v6934_v23 = vld [vmem:[#allocation10 + $0x188] ss:$16 sps:$4 sm:$0xff]  }
 0x367   : > { %v6371_v44 = vpop.f32.mrf.mxu0  ;;  %3203 = vmatprep.mubr.bf16.mxu1 %v7372_v43  ;;  %3836 = vmatpush1.bf16.msra.mxu1 %v6880_v12 }
 0x368   : > { %3023 = vst [vmem:[%s8489_s17 + $0x20] sm:$0xff] %v2973_v42  ;;  %v6372_v35 = vadd.f32 %v6371_v44, %v6370_v24  ;;  %3837 = vmatprep.subr.bf16.mxu1 %v6888_v19  ;;  %v6942_v19 = vld [vmem:[#allocation10 + $0x16c] ss:$16 sps:$4 sm:$0xff]  }
 0x369   : > { %v6373_v39 = vpop.f32.mrf.mxu0 }
 0x36a   : > { %v2976_v48 = vadd.f32 %v6372_v35, %v8484_v36 }
 0x36b   : > { %v6374_v52 = vpop.f32.mrf.mxu0  ;;  %3838 = vmatpush1.bf16.msra.mxu1 %v6886_v25  ;;  %v6940_v25 = vld [vmem:[#allocation10 + $0x168] ss:$16 sps:$4 sm:$0xff]  }
 0x36c   : > { %3024 = vst [vmem:[%s8489_s17 + $0x28] sm:$0xff] %v2976_v48  ;;  %v6375_v11 = vadd.f32 %v6374_v52, %v6373_v39  ;;  %v3037_v16 = vpack.c.bf16 %v2976_v48, %v2973_v42  ;;  %3839 = vmatprep.subr.bf16.mxu1 %v6894_v26 }
 0x36d   : > { %v6376_v27 = vpop.f32.mrf.mxu0 }
 0x36e   : > { %v2981_v22 = vadd.f32 %v6375_v11, %v8484_v36  ;;  %3204 = vmatmul.mubr.bf16.gmra.mxu1 %v3037_v16 }
 0x36f   : > { %v6377_v4 = vpop.f32.mrf.mxu0  ;;  %3213 = vmatprep.mubr.bf16.mxu1 %v7372_v43  ;;  %3840 = vmatpush1.bf16.msra.mxu1 %v6892_v10 }
 0x370   : > { %3025 = vst [vmem:[%s8489_s17 + $0x30] sm:$0xff] %v2981_v22  ;;  %v6378_v18 = vadd.f32 %v6377_v4, %v6376_v27  ;;  %3841 = vmatprep.subr.bf16.mxu1 %v6900_v17  ;;  %v6945_v17 = vld [vmem:[#allocation10 + $0x144] ss:$16 sps:$4 sm:$0xff]   ;;  %v6948_v27 = vld [vmem:[#allocation10 + $0x14c] ss:$16 sps:$4 sm:$0xff]  }
 0x371   : > { %v6379_v5 = vpop.f32.mrf.mxu0  ;;  %v6946_v4 = vld [vmem:[#allocation10 + $0x148] ss:$16 sps:$4 sm:$0xff]   ;;  %3744 = vmatprep.subr.bf16.mxu0 %v6945_v17 }
 0x372   : > { %v2984_v31 = vadd.f32 %v6378_v18, %v8484_v36  ;;  %v6954_v18 = vld [vmem:[#allocation10 + $0x12c] ss:$16 sps:$4 sm:$0xff]  }
 0x373   : > { %v6380_v58 = vpop.f32.mrf.mxu0  ;;  %3842 = vmatpush1.bf16.msra.mxu1 %v6898_v57  ;;  %v6951_v57 = vld [vmem:[#allocation10 + $0x124] ss:$16 sps:$4 sm:$0xff]  }
 0x374   : > { %3026 = vst [vmem:[%s8489_s17 + $0x38] sm:$0xff] %v2984_v31  ;;  %v6381_v7 = vadd.f32 %v6380_v58, %v6379_v5  ;;  %v3038_v29 = vpack.c.bf16 %v2984_v31, %v2981_v22  ;;  %3843 = vmatprep.subr.bf16.mxu1 %v6906_v21  ;;  %v6943_v22 = vld [vmem:[#allocation10 + $0x140] ss:$16 sps:$4 sm:$0xff]   ;;  %v6960_v5 = vld [vmem:[#allocation10 + $0x10c] ss:$16 sps:$4 sm:$0xff]  }
 0x375   : > { %v6382_v51 = vpop.f32.mrf.mxu0  ;;  %3745 = vmatpush2.bf16.msra.mxu0 %v6943_v22  ;;  %v6949_v21 = vld [vmem:[#allocation10 + $0x120] ss:$16 sps:$4 sm:$0xff]   ;;  %v6958_v58 = vld [vmem:[#allocation10 + $0x108] ss:$16 sps:$4 sm:$0xff]  }
 0x376   : > { %v2989_v34 = vadd.f32 %v6381_v7, %v8484_v36  ;;  %3214 = vmatmul.mubr.bf16.gmra.mxu1 %v3038_v29  ;;  %3746 = vmatprep.subr.bf16.mxu0 %v6951_v57  ;;  %v6955_v31 = vld [vmem:[#allocation10 + $0x100] ss:$16 sps:$4 sm:$0xff]   ;;  %v6966_v7 = vld [vmem:[#allocation12 + $0x2e4] ss:$16 sps:$4 sm:$0xff]   ;;  %v3059_v29 = vld [vmem:[#allocation9] sm:$0x3] }
 0x377   : > { %v6383_v53 = vpop.f32.mrf.mxu0  ;;  %3223 = vmatprep.mubr.bf16.mxu1 %v7372_v43  ;;  %3844 = vmatpush1.bf16.msra.mxu1 %v6904_v28  ;;  %v6963_v28 = vld [vmem:[#allocation12 + $0xe4] ss:$16 sps:$4 sm:$0xff]  }
 0x378   : > { %3027 = vst [vmem:[%s8489_s17 + $0x40] sm:$0xff] %v2989_v34  ;;  %v6384_v63 = vadd.f32 %v6383_v53, %v6382_v51  ;;  %3845 = vmatprep.subr.bf16.mxu1 %v6912_v30  ;;  %v8531_v51 = vrot.slane %v3059_v29, %v8318_v56 }
 0x379   : > { %v6385_v0 = vpop.f32.mrf.mxu0  ;;  %3747 = vmatpush2.bf16.msra.mxu0 %v6949_v21  ;;  %v6982_v21 = vld [vmem:[#allocation12 + $0x280] ss:$16 sps:$4 sm:$0xff]  }
 0x37a   : > { %v2992_v40 = vadd.f32 %v6384_v63, %v8484_v36 }
 0x37b   : > { %v6386_v37 = vpop.f32.mrf.mxu0  ;;  %3846 = vmatpush1.bf16.msra.mxu1 %v6910_v59 }
 0x37c   : > { %3028 = vst [vmem:[%s8489_s17 + $0x48] sm:$0xff] %v2992_v40  ;;  %v3039_v47 = vpack.c.bf16 %v2992_v40, %v2989_v34  ;;  %v6387_v46 = vadd.f32 %v6386_v37, %v6385_v0  ;;  %3847 = vmatprep.subr.bf16.mxu1 %v6918_v45  ;;  %v8534_v34 = vrot.slane %v3059_v29, %v8321_v49 }
 0x37d   : > { %v6388_v1 = vpop.f32.mrf.mxu0 }
 0x37e   : > { %v2997_v38 = vadd.f32 %v6387_v46, %v8484_v36  ;;  %3224 = vmatmul.mubr.bf16.gmra.mxu1 %v3039_v47 }
 0x37f   : > { %v6389_v6 = vpop.f32.mrf.mxu0  ;;  %3233 = vmatprep.mubr.bf16.mxu1 %v7372_v43  ;;  %3848 = vmatpush2.bf16.msra.mxu1 %v6916_v41 }
 0x380   : > { %3029 = vst [vmem:[%s8489_s17 + $0x50] sm:$0xff] %v2997_v38  ;;  %v6390_v8 = vadd.f32 %v6389_v6, %v6388_v1  ;;  %3849 = vmatprep.subr.bf16.mxu1 %v6924_v33 }
 0x381   : > { %v6391_v55 = vpop.f32.mrf.mxu0 }
 0x382   : > { %v3000_v60 = vadd.f32 %v6390_v8, %v8484_v36  ;;  %v6964_v8 = vld [vmem:[#allocation12 + $0x2e0] ss:$16 sps:$4 sm:$0xff]  }
 0x383   : > { %v6392_v61 = vpop.f32.mrf.mxu0  ;;  %3850 = vmatpush2.bf16.msra.mxu1 %v6922_v62  ;;  %v6961_v62 = vld [vmem:[#allocation12 + $0xe0] ss:$16 sps:$4 sm:$0xff]  }
 0x384   : > { %3030 = vst [vmem:[%s8489_s17 + $0x58] sm:$0xff] %v3000_v60  ;;  %v3040_v15 = vpack.c.bf16 %v3000_v60, %v2997_v38  ;;  %v6393_v9 = vadd.f32 %v6392_v61, %v6391_v55  ;;  %3851 = vmatprep.subr.bf16.mxu1 %v6930_v54  ;;  %v6969_v60 = vld [vmem:[#allocation12 + $0xc4] ss:$16 sps:$4 sm:$0xff]  }
 0x385   : > { %v6394_v50 = vpop.f32.mrf.mxu0  ;;  %v6972_v61 = vld [vmem:[#allocation12 + $0x2c4] ss:$16 sps:$4 sm:$0xff]  }
 0x386   : > { %v3005_v3 = vadd.f32 %v6393_v9, %v8484_v36  ;;  %3234 = vmatmul.mubr.bf16.gmra.mxu1 %v3040_v15 }
 0x387   : > { %v6395_v12 = vpop.f32.mrf.mxu0  ;;  %3243 = vmatprep.mubr.bf16.mxu1 %v7372_v43  ;;  %3852 = vmatpush2.bf16.msra.mxu1 %v6928_v14 }
 0x388   : > { %3031 = vst [vmem:[%s8489_s17 + $0x60] sm:$0xff] %v3005_v3  ;;  %v6396_v13 = vadd.f32 %v6395_v12, %v6394_v50  ;;  %3853 = vmatprep.subr.bf16.mxu1 %v6936_v2  ;;  %v6970_v12 = vld [vmem:[#allocation12 + $0x2c0] ss:$16 sps:$4 sm:$0xff]  }
 0x389   : > { %v6397_v24 = vpop.f32.mrf.mxu0 }
 0x38a   : > { %v3008_v42 = vadd.f32 %v6396_v13, %v8484_v36 }
 0x38b   : > { %v6398_v44 = vpop.f32.mrf.mxu0  ;;  %3854 = vmatpush2.bf16.msra.mxu1 %v6934_v23 }
 0x38c   : > { %3032 = vst [vmem:[%s8489_s17 + $0x68] sm:$0xff] %v3008_v42  ;;  %v3041_v35 = vpack.c.bf16 %v3008_v42, %v3005_v3  ;;  %v6399_v26 = vadd.f32 %v6398_v44, %v6397_v24  ;;  %3855 = vmatprep.subr.bf16.mxu1 %v6942_v19  ;;  %v6967_v3 = vld [vmem:[#allocation12 + $0xc0] ss:$16 sps:$4 sm:$0xff]   ;;  %v6975_v19 = vld [vmem:[#allocation12 + $0xa4] ss:$16 sps:$4 sm:$0xff]  }
 0x38d   : > { %v6400_v39 = vpop.f32.mrf.mxu0  ;;  %v6978_v24 = vld [vmem:[#allocation12 + $0x2a4] ss:$16 sps:$4 sm:$0xff]  }
 0x38e   : > { %v3013_v48 = vadd.f32 %v6399_v26, %v8484_v36  ;;  %3244 = vmatmul.mubr.bf16.gmra.mxu1 %v3041_v35 }
 0x38f   : > { %v6401_v52 = vpop.f32.mrf.mxu0  ;;  %3253 = vmatprep.mubr.bf16.mxu1 %v7372_v43  ;;  %3856 = vmatpush2.bf16.msra.mxu1 %v6940_v25  ;;  %v6952_v43 = vld [vmem:[#allocation10 + $0x128] ss:$16 sps:$4 sm:$0xff]  }
 0x390   : > { %3033 = vst [vmem:[%s8489_s17 + $0x70] sm:$0xff] %v3013_v48  ;;  %v6402_v10 = vadd.f32 %v6401_v52, %v6400_v39  ;;  %3857 = vmatprep.subr.bf16.mxu1 %v6948_v27  ;;  %v6973_v39 = vld [vmem:[#allocation12 + $0xa0] ss:$16 sps:$4 sm:$0xff]  }
 0x392   : > { %v3016_v11 = vadd.f32 %v6402_v10, %v8484_v36  ;;  %v6957_v36 = vld [vmem:[#allocation10 + $0x104] ss:$16 sps:$4 sm:$0xff]  }
 0x393   : > { %3858 = vmatpush2.bf16.msra.mxu1 %v6946_v4  ;;  %3748 = vmatprep.subr.bf16.mxu0 %v6957_v36 }
 0x394   : > { %3034 = vst [vmem:[%s8489_s17 + $0x78] sm:$0xff] %v3016_v11  ;;  %v3042_v16 = vpack.c.bf16 %v3016_v11, %v3013_v48  ;;  %3859 = vmatprep.subr.bf16.mxu1 %v6954_v18  ;;  %3749 = vmatpush2.bf16.msra.mxu0 %v6955_v31  ;;  %v6976_v48 = vld [vmem:[#allocation12 + $0x2a0] ss:$16 sps:$4 sm:$0xff]   ;;  %v6981_v11 = vld [vmem:[#allocation12 + $0x84] ss:$16 sps:$4 sm:$0xff]  }
 0x395   : > { %4830 = vmatprep.subr.bf16.mxu0 %v6963_v28  ;;  %v6979_v18 = vld [vmem:[#allocation12 + $0x80] ss:$16 sps:$4 sm:$0xff]   ;;  %v6990_v31 = vld [vmem:[#allocation12 + $0x264] ss:$16 sps:$4 sm:$0xff]  }
 0x396   : > { %3254 = vmatmul.mubr.bf16.gmra.mxu1 %v3042_v16  ;;  %v6984_v16 = vld [vmem:[#allocation12 + $0x284] ss:$16 sps:$4 sm:$0xff]  }
 0x397   : > { %3860 = vmatpush2.bf16.msra.mxu1 %v6952_v43 }
 0x398   : > { %3861 = vmatprep.subr.bf16.mxu1 %v6960_v5  ;;  %v6987_v5 = vld [vmem:[#allocation12 + $0x64] ss:$16 sps:$4 sm:$0xff]  }
 0x39b   : > { %3862 = vmatpush2.bf16.msra.mxu1 %v6958_v58 }
 0x39c   : > { %4943 = vmatprep.subr.bf16.mxu1 %v6966_v7 }
 0x41e   : > { %v3185_v30 = vpop.f32.mrf.mxu1 }
 0x41f   : > { %v3186_v0 = vadd.f32 %v3185_v30, %v8534_v34 }
 0x420   : > { %v3187_v53 = vpop.f32.mrf.mxu1 }
 0x421   : > { %v3188_v63 = vadd.f32 %v3187_v53, %v8531_v51  ;;  %v3264_v1 = vmax.f32 %v3186_v0, 0.0  ;;  %v6985_v53 = vld [vmem:[#allocation12 + $0x60] ss:$16 sps:$4 sm:$0xff]   ;;  %v6993_v0 = vld [vmem:[#allocation12 + $0x44] ss:$16 sps:$4 sm:$0xff]  }
 0x422   : > { %v3189_v59 = vpop.f32.mrf.mxu1 }
 0x423   : > { %v3190_v45 = vadd.f32 %v3189_v59, %v8534_v34  ;;  %v3265_v46 = vmax.f32 %v3188_v63, 0.0  ;;  %v6988_v59 = vld [vmem:[#allocation12 + $0x260] ss:$16 sps:$4 sm:$0xff]  }
 0x424   : > { %v3191_v40 = vpop.f32.mrf.mxu1 }
 0x425   : > { %v3192_v37 = vadd.f32 %v3191_v40, %v8531_v51  ;;  %v3266_v41 = vmax.f32 %v3190_v45, 0.0  ;;  %v6996_v40 = vld [vmem:[#allocation12 + $0x244] ss:$16 sps:$4 sm:$0xff]  }
 0x426   : > { %v3195_v47 = vpop.f32.mrf.mxu1 }
 0x427   : > { %v3267_v33 = vmax.f32 %v3192_v37, 0.0  ;;  %v3296_v54 = vpack.c.bf16 %v3266_v41, %v3264_v1  ;;  %v3196_v9 = vadd.f32 %v3195_v47, %v8534_v34  ;;  %v6991_v1 = vld [vmem:[#allocation12 + $0x40] ss:$16 sps:$4 sm:$0xff]  }
 0x428   : > { %v3197_v38 = vpop.f32.mrf.mxu1 }
 0x429   : > { %v3297_v6 = vpack.c.bf16 %v3267_v33, %v3265_v46  ;;  %v3198_v14 = vadd.f32 %v3197_v38, %v8531_v51  ;;  %v3268_v25 = vmax.f32 %v3196_v9, 0.0  ;;  %v6994_v38 = vld [vmem:[#allocation12 + $0x240] ss:$16 sps:$4 sm:$0xff]  }
 0x42a   : > { %v3199_v55 = vpop.f32.mrf.mxu1  ;;  %v6997_v9 = vld [vmem:[#allocation12 + $0x20] ss:$16 sps:$4 sm:$0xff]  }
 0x42b   : > { %v3200_v15 = vadd.f32 %v3199_v55, %v8534_v34  ;;  %3750 = vmatprep.mubr.bf16.mxu0 %v3297_v6  ;;  %3863 = vmatprep.mubr.bf16.mxu1 %v3297_v6  ;;  %v3269_v42 = vmax.f32 %v3198_v14, 0.0 }
 0x42c   : > { %v3201_v2 = vpop.f32.mrf.mxu1  ;;  %3751 = vmatmul.mubr.bf16.vlgmr.msra.gmra.mxu0 %v3296_v54  ;;  %3864 = vmatmul.mubr.bf16.vlgmr.msra.gmra.mxu1 %v3296_v54  ;;  %v7002_v54 = vld [vmem:[#allocation12 + $0x224] ss:$16 sps:$4 sm:$0xff]  }
 0x42d   : > { %v3202_v50 = vadd.f32 %v3201_v2, %v8531_v51  ;;  %4831 = vmatpush1.bf16.msra.mxu0 %v6961_v62  ;;  %4944 = vmatpush1.bf16.msra.mxu1 %v6964_v8  ;;  %v3270_v23 = vmax.f32 %v3200_v15, 0.0  ;;  %v6999_v8 = vld [vmem:[#allocation12 + $0x24] ss:$16 sps:$4 sm:$0xff]   ;;  %v7000_v2 = vld [vmem:[#allocation12 + $0x220] ss:$16 sps:$4 sm:$0xff]  }
 0x42e   : > { %v3205_v13 = vpop.f32.mrf.mxu1  ;;  %4832 = vmatprep.subr.bf16.mxu0 %v6969_v60  ;;  %4945 = vmatprep.subr.bf16.mxu1 %v6972_v61 }
 0x42f   : > { %v3271_v44 = vmax.f32 %v3202_v50, 0.0  ;;  %v3298_v52 = vpack.c.bf16 %v3270_v23, %v3268_v25  ;;  %v3206_v22 = vadd.f32 %v3205_v13, %v8534_v34  ;;  %v7008_v23 = vld [vmem:[#allocation12 + $0x204] ss:$16 sps:$4 sm:$0xff]   ;;  %v7003_v25 = vld [vmem:[#allocation12] ss:$16 sps:$4 sm:$0xff]  }
 0x430   : > { %v3207_v35 = vpop.f32.mrf.mxu1 }
 0x431   : > { %v3299_v26 = vpack.c.bf16 %v3271_v44, %v3269_v42  ;;  %4833 = vmatpush1.bf16.msra.mxu0 %v6967_v3  ;;  %4946 = vmatpush1.bf16.msra.mxu1 %v6970_v12  ;;  %v3208_v17 = vadd.f32 %v3207_v35, %v8531_v51  ;;  %v3272_v7 = vmax.f32 %v3206_v22, 0.0  ;;  %v7005_v12 = vld [vmem:[#allocation12 + $0x4] ss:$16 sps:$4 sm:$0xff]   ;;  %v7006_v35 = vld [vmem:[#allocation12 + $0x200] ss:$16 sps:$4 sm:$0xff]  }
 0x432   : > { %v3209_v10 = vpop.f32.mrf.mxu1  ;;  %4834 = vmatprep.subr.bf16.mxu0 %v6975_v19  ;;  %4947 = vmatprep.subr.bf16.mxu1 %v6978_v24  ;;  %v7009_v22 = vld [vmem:[#allocation12 + $0x1e0] ss:$16 sps:$4 sm:$0xff]  }
 0x433   : > { %v3210_v27 = vadd.f32 %v3209_v10, %v8534_v34  ;;  %3760 = vmatprep.mubr.bf16.mxu0 %v3299_v26  ;;  %3873 = vmatprep.mubr.bf16.mxu1 %v3299_v26  ;;  %v3273_v58 = vmax.f32 %v3208_v17, 0.0 }
 0x434   : > { %v3211_v4 = vpop.f32.mrf.mxu1  ;;  %3761 = vmatmul.mubr.bf16.gmra.mxu0 %v3298_v52  ;;  %3874 = vmatmul.mubr.bf16.gmra.mxu1 %v3298_v52  ;;  %v7014_v52 = vld [vmem:[#allocation12 + $0x3e4] ss:$16 sps:$4 sm:$0xff]  }
 0x435   : > { %v3212_v57 = vadd.f32 %v3211_v4, %v8531_v51  ;;  %4835 = vmatpush1.bf16.msra.mxu0 %v6973_v39  ;;  %4948 = vmatpush1.bf16.msra.mxu1 %v6976_v48  ;;  %v3274_v43 = vmax.f32 %v3210_v27, 0.0  ;;  %v7011_v48 = vld [vmem:[#allocation12 + $0x1e4] ss:$16 sps:$4 sm:$0xff]   ;;  %v7012_v4 = vld [vmem:[#allocation12 + $0x3e0] ss:$16 sps:$4 sm:$0xff]  }
 0x436   : > { %v3215_v36 = vpop.f32.mrf.mxu1  ;;  %4836 = vmatprep.subr.bf16.mxu0 %v6981_v11  ;;  %4949 = vmatprep.subr.bf16.mxu1 %v6984_v16 }
 0x437   : > { %v3275_v28 = vmax.f32 %v3212_v57, 0.0  ;;  %v3300_v63 = vpack.c.bf16 %v3274_v43, %v3272_v7  ;;  %v3216_v47 = vadd.f32 %v3215_v36, %v8534_v34  ;;  %v7020_v43 = vld [vmem:[#allocation12 + $0x3c4] ss:$16 sps:$4 sm:$0xff]   ;;  %v7015_v7 = vld [vmem:[#allocation12 + $0x1c0] ss:$16 sps:$4 sm:$0xff]  }
 0x438   : > { %v3217_v29 = vpop.f32.mrf.mxu1 }
 0x439   : > { %v3301_v30 = vpack.c.bf16 %v3275_v28, %v3273_v58  ;;  %4837 = vmatpush1.bf16.msra.mxu0 %v6979_v18  ;;  %4950 = vmatpush1.bf16.msra.mxu1 %v6982_v21  ;;  %v3218_v37 = vadd.f32 %v3217_v29, %v8531_v51  ;;  %v3276_v61 = vmax.f32 %v3216_v47, 0.0  ;;  %v7017_v21 = vld [vmem:[#allocation12 + $0x1c4] ss:$16 sps:$4 sm:$0xff]   ;;  %v7018_v29 = vld [vmem:[#allocation12 + $0x3c0] ss:$16 sps:$4 sm:$0xff]  }
 0x43a   : > { %v3219_v45 = vpop.f32.mrf.mxu1  ;;  %4838 = vmatprep.subr.bf16.mxu0 %v6987_v5  ;;  %4951 = vmatprep.subr.bf16.mxu1 %v6990_v31  ;;  %v7021_v47 = vld [vmem:[#allocation12 + $0x1a0] ss:$16 sps:$4 sm:$0xff]  }
 0x43b   : > { %v3220_v41 = vadd.f32 %v3219_v45, %v8534_v34  ;;  %3770 = vmatprep.mubr.bf16.mxu0 %v3301_v30  ;;  %3883 = vmatprep.mubr.bf16.mxu1 %v3301_v30  ;;  %v3277_v55 = vmax.f32 %v3218_v37, 0.0 }
 0x43c   : > { %v3221_v46 = vpop.f32.mrf.mxu1  ;;  %3771 = vmatmul.mubr.bf16.gmra.mxu0 %v3300_v63  ;;  %3884 = vmatmul.mubr.bf16.gmra.mxu1 %v3300_v63  ;;  %v7026_v63 = vld [vmem:[#allocation12 + $0x3a4] ss:$16 sps:$4 sm:$0xff]  }
 0x43d   : > { %v3222_v33 = vadd.f32 %v3221_v46, %v8531_v51  ;;  %4839 = vmatpush1.bf16.msra.mxu0 %v6985_v53  ;;  %4952 = vmatpush1.bf16.msra.mxu1 %v6988_v59  ;;  %v3278_v6 = vmax.f32 %v3220_v41, 0.0  ;;  %v7023_v59 = vld [vmem:[#allocation12 + $0x1a4] ss:$16 sps:$4 sm:$0xff]   ;;  %v7024_v46 = vld [vmem:[#allocation12 + $0x3a0] ss:$16 sps:$4 sm:$0xff]  }
 0x43e   : > { %v3225_v62 = vpop.f32.mrf.mxu1  ;;  %4840 = vmatprep.subr.bf16.mxu0 %v6993_v0  ;;  %4953 = vmatprep.subr.bf16.mxu1 %v6996_v40 }
 0x43f   : > { %v3279_v60 = vmax.f32 %v3222_v33, 0.0  ;;  %v3302_v50 = vpack.c.bf16 %v3278_v6, %v3276_v61  ;;  %v3226_v24 = vadd.f32 %v3225_v62, %v8534_v34  ;;  %v7032_v6 = vld [vmem:[#allocation12 + $0x384] ss:$16 sps:$4 sm:$0xff]   ;;  %v7027_v61 = vld [vmem:[#allocation12 + $0x180] ss:$16 sps:$4 sm:$0xff]  }
 0x440   : > { %v3227_v14 = vpop.f32.mrf.mxu1 }
 0x441   : > { %v3303_v15 = vpack.c.bf16 %v3279_v60, %v3277_v55  ;;  %4841 = vmatpush1.bf16.msra.mxu0 %v6991_v1  ;;  %4954 = vmatpush1.bf16.msra.mxu1 %v6994_v38  ;;  %v3228_v13 = vadd.f32 %v3227_v14, %v8531_v51  ;;  %v3280_v16 = vmax.f32 %v3226_v24, 0.0  ;;  %v7029_v38 = vld [vmem:[#allocation12 + $0x184] ss:$16 sps:$4 sm:$0xff]   ;;  %v7030_v14 = vld [vmem:[#allocation12 + $0x380] ss:$16 sps:$4 sm:$0xff]  }
 0x442   : > { %v3229_v3 = vpop.f32.mrf.mxu1  ;;  %4842 = vmatprep.subr.bf16.mxu0 %v6999_v8  ;;  %4955 = vmatprep.subr.bf16.mxu1 %v7002_v54  ;;  %v7033_v24 = vld [vmem:[#allocation12 + $0x160] ss:$16 sps:$4 sm:$0xff]  }
 0x443   : > { %v3230_v19 = vadd.f32 %v3229_v3, %v8534_v34  ;;  %3780 = vmatprep.mubr.bf16.mxu0 %v3303_v15  ;;  %3893 = vmatprep.mubr.bf16.mxu1 %v3303_v15  ;;  %v3281_v10 = vmax.f32 %v3228_v13, 0.0 }
 0x444   : > { %v3231_v42 = vpop.f32.mrf.mxu1  ;;  %3781 = vmatmul.mubr.bf16.gmra.mxu0 %v3302_v50  ;;  %3894 = vmatmul.mubr.bf16.gmra.mxu1 %v3302_v50  ;;  %v7038_v50 = vld [vmem:[#allocation12 + $0x364] ss:$16 sps:$4 sm:$0xff]  }
 0x445   : > { %v3232_v44 = vadd.f32 %v3231_v42, %v8531_v51  ;;  %4843 = vmatpush1.bf16.msra.mxu0 %v6997_v9  ;;  %4956 = vmatpush1.bf16.msra.mxu1 %v7000_v2  ;;  %v3282_v26 = vmax.f32 %v3230_v19, 0.0  ;;  %v7035_v2 = vld [vmem:[#allocation12 + $0x164] ss:$16 sps:$4 sm:$0xff]   ;;  %v7036_v42 = vld [vmem:[#allocation12 + $0x360] ss:$16 sps:$4 sm:$0xff]  }
 0x446   : > { %v3235_v39 = vpop.f32.mrf.mxu1  ;;  %4844 = vmatprep.subr.bf16.mxu0 %v7005_v12  ;;  %4957 = vmatprep.subr.bf16.mxu1 %v7008_v23 }
 0x447   : > { %v3283_v11 = vmax.f32 %v3232_v44, 0.0  ;;  %v3304_v57 = vpack.c.bf16 %v3282_v26, %v3280_v16  ;;  %v3236_v31 = vadd.f32 %v3235_v39, %v8534_v34 }
 0x448   : > { %v3237_v17 = vpop.f32.mrf.mxu1 }
 0x449   : > { %v3305_v27 = vpack.c.bf16 %v3283_v11, %v3281_v10  ;;  %4845 = vmatpush1.bf16.msra.mxu0 %v7003_v25  ;;  %4958 = vmatpush1.bf16.msra.mxu1 %v7006_v35  ;;  %v3238_v36 = vadd.f32 %v3237_v17, %v8531_v51  ;;  %v3284_v40 = vmax.f32 %v3236_v31, 0.0  ;;  %v7056_v31 = vld [vmem:[#allocation12 + $0x304] ss:$16 sps:$4 sm:$0xff]  }
 0x44a   : > { %v3239_v18 = vpop.f32.mrf.mxu1  ;;  %4846 = vmatprep.subr.bf16.mxu0 %v7011_v48  ;;  %4959 = vmatprep.subr.bf16.mxu1 %v7014_v52 }
 0x44b   : > { %v3240_v5 = vadd.f32 %v3239_v18, %v8534_v34  ;;  %3790 = vmatprep.mubr.bf16.mxu0 %v3305_v27  ;;  %3903 = vmatprep.mubr.bf16.mxu1 %v3305_v27  ;;  %v3285_v45 = vmax.f32 %v3238_v36, 0.0  ;;  %v7042_v18 = vld [vmem:[#allocation12 + $0x340] ss:$16 sps:$4 sm:$0xff]  }
 0x44c   : > { %v3241_v58 = vpop.f32.mrf.mxu1  ;;  %3791 = vmatmul.mubr.bf16.gmra.mxu0 %v3304_v57  ;;  %3904 = vmatmul.mubr.bf16.gmra.mxu1 %v3304_v57  ;;  %v7044_v57 = vld [vmem:[#allocation12 + $0x344] ss:$16 sps:$4 sm:$0xff]   ;;  %v7048_v36 = vld [vmem:[#allocation12 + $0x320] ss:$16 sps:$4 sm:$0xff]  }
 0x44d   : > { %v3242_v28 = vadd.f32 %v3241_v58, %v8531_v51  ;;  %4847 = vmatpush2.bf16.msra.mxu0 %v7009_v22  ;;  %4960 = vmatpush2.bf16.msra.mxu1 %v7012_v4  ;;  %v3286_v30 = vmax.f32 %v3240_v5, 0.0  ;;  %v7041_v4 = vld [vmem:[#allocation12 + $0x144] ss:$16 sps:$4 sm:$0xff]   ;;  %v7051_v58 = vld [vmem:[#allocation12 + $0x100] ss:$16 sps:$4 sm:$0xff]  }
 0x44e   : > { %v3245_v53 = vpop.f32.mrf.mxu1  ;;  %4848 = vmatprep.subr.bf16.mxu0 %v7017_v21  ;;  %4961 = vmatprep.subr.bf16.mxu1 %v7020_v43  ;;  %v7050_v21 = vld [vmem:[#allocation12 + $0x324] ss:$16 sps:$4 sm:$0xff]   ;;  %v7045_v43 = vld [vmem:[#allocation12 + $0x120] ss:$16 sps:$4 sm:$0xff]  }
 0x44f   : > { %v3287_v0 = vmax.f32 %v3242_v28, 0.0  ;;  %v3306_v33 = vpack.c.bf16 %v3286_v30, %v3284_v40  ;;  %v3246_v54 = vadd.f32 %v3245_v53, %v8534_v34  ;;  %v7053_v5 = vld [vmem:[#allocation12 + $0x104] ss:$16 sps:$4 sm:$0xff]   ;;  %v7054_v28 = vld [vmem:[#allocation12 + $0x300] ss:$16 sps:$4 sm:$0xff]  }
 0x450   : > { %v3247_v37 = vpop.f32.mrf.mxu1  ;;  %v3376_v30 = vld [vmem:[%s8896_s10] sm:$0xf] }
 0x451   : > { %v3307_v41 = vpack.c.bf16 %v3287_v0, %v3285_v45  ;;  %4849 = vmatpush2.bf16.msra.mxu0 %v7015_v7  ;;  %4962 = vmatpush2.bf16.msra.mxu1 %v7018_v29  ;;  %v3248_v62 = vadd.f32 %v3247_v37, %v8531_v51  ;;  %v3288_v23 = vmax.f32 %v3246_v54, 0.0  ;;  %v7059_v7 = vld [vmem:[#allocation12 + $0xec] ss:$16 sps:$4 sm:$0xff]   ;;  %v8575_v45 = vrot.slane %v3376_v30, %v8363_v20 }
 0x452   : > { %v3249_v1 = vpop.f32.mrf.mxu1  ;;  %4850 = vmatprep.subr.bf16.mxu0 %v7023_v59  ;;  %4963 = vmatprep.subr.bf16.mxu1 %v7026_v63  ;;  %v7062_v29 = vld [vmem:[#allocation12 + $0x2ec] ss:$16 sps:$4 sm:$0xff]   ;;  %v8572_v63 = vrot.slane %v3376_v30, %v8318_v56  ;;  %v8578_v0 = vrot.slane %v3376_v30, %v8321_v49  ;;  %v8581_v40 = vrot.slane %v3376_v30, %v8367_v32 }
 0x453   : > { %v3250_v8 = vadd.f32 %v3249_v1, %v8534_v34  ;;  %3800 = vmatprep.mubr.bf16.mxu0 %v3307_v41  ;;  %3913 = vmatprep.mubr.bf16.mxu1 %v3307_v41  ;;  %v3289_v3 = vmax.f32 %v3248_v62, 0.0 }
 0x454   : > { %v3251_v55 = vpop.f32.mrf.mxu1  ;;  %3801 = vmatmul.mubr.bf16.gmra.mxu0 %v3306_v33  ;;  %3914 = vmatmul.mubr.bf16.gmra.mxu1 %v3306_v33 }
 0x455   : > { %v3252_v60 = vadd.f32 %v3251_v55, %v8531_v51  ;;  %4851 = vmatpush2.bf16.msra.mxu0 %v7021_v47  ;;  %4964 = vmatpush2.bf16.msra.mxu1 %v7024_v46  ;;  %v3290_v15 = vmax.f32 %v3250_v8, 0.0 }
 0x456   : > { %v3255_v9 = vpop.f32.mrf.mxu1  ;;  %4852 = vmatprep.subr.bf16.mxu0 %v7029_v38  ;;  %4965 = vmatprep.subr.bf16.mxu1 %v7032_v6 }
 0x457   : > { %v3291_v12 = vmax.f32 %v3252_v60, 0.0  ;;  %v3308_v44 = vpack.c.bf16 %v3290_v15, %v3288_v23  ;;  %v3256_v39 = vadd.f32 %v3255_v9, %v8534_v34 }
 0x458   : > { %v3257_v13 = vpop.f32.mrf.mxu1 }
 0x459   : > { %v3309_v19 = vpack.c.bf16 %v3291_v12, %v3289_v3  ;;  %4853 = vmatpush2.bf16.msra.mxu0 %v7027_v61  ;;  %4966 = vmatpush2.bf16.msra.mxu1 %v7030_v14  ;;  %v3258_v35 = vadd.f32 %v3257_v13, %v8531_v51  ;;  %v3292_v17 = vmax.f32 %v3256_v39, 0.0 }
 0x45a   : > { %v3259_v25 = vpop.f32.mrf.mxu1  ;;  %4854 = vmatprep.subr.bf16.mxu0 %v7035_v2  ;;  %4967 = vmatprep.subr.bf16.mxu1 %v7038_v50 }
 0x45b   : > { %v3260_v26 = vadd.f32 %v3259_v25, %v8534_v34  ;;  %3810 = vmatprep.mubr.bf16.mxu0 %v3309_v19  ;;  %3923 = vmatprep.mubr.bf16.mxu1 %v3309_v19  ;;  %v3293_v11 = vmax.f32 %v3258_v35, 0.0  ;;  %v7039_v34 = vld [vmem:[#allocation12 + $0x140] ss:$16 sps:$4 sm:$0xff]   ;;  %v7057_v35 = vld [vmem:[#allocation12 + $0xe8] ss:$16 sps:$4 sm:$0xff]  }
 0x45c   : > { %v3261_v48 = vpop.f32.mrf.mxu1  ;;  %3811 = vmatmul.mubr.bf16.gmra.mxu0 %v3308_v44  ;;  %3924 = vmatmul.mubr.bf16.gmra.mxu1 %v3308_v44 }
 0x45d   : > { %v3262_v52 = vadd.f32 %v3261_v48, %v8531_v51  ;;  %4855 = vmatpush2.bf16.msra.mxu0 %v7033_v24  ;;  %4968 = vmatpush2.bf16.msra.mxu1 %v7036_v42  ;;  %v3294_v10 = vmax.f32 %v3260_v26, 0.0  ;;  %v7047_v51 = vld [vmem:[#allocation12 + $0x124] ss:$16 sps:$4 sm:$0xff]   ;;  %v7060_v26 = vld [vmem:[#allocation12 + $0x2e8] ss:$16 sps:$4 sm:$0xff]  }
 0x45e   : > { %4856 = vmatprep.subr.bf16.mxu0 %v7041_v4  ;;  %4969 = vmatprep.subr.bf16.mxu1 %v7044_v57 }
 0x45f   : > { %v3295_v16 = vmax.f32 %v3262_v52, 0.0  ;;  %v3310_v22 = vpack.c.bf16 %v3294_v10, %v3292_v17  ;;  %v7068_v17 = vld [vmem:[#allocation12 + $0x2cc] ss:$16 sps:$4 sm:$0xff]  }
 0x461   : > { %v3311_v27 = vpack.c.bf16 %v3295_v16, %v3293_v11  ;;  %4857 = vmatpush2.bf16.msra.mxu0 %v7039_v34  ;;  %4970 = vmatpush2.bf16.msra.mxu1 %v7042_v18  ;;  %v7065_v16 = vld [vmem:[#allocation12 + $0xcc] ss:$16 sps:$4 sm:$0xff]  }
 0x462   : > { %4858 = vmatprep.subr.bf16.mxu0 %v7047_v51  ;;  %4971 = vmatprep.subr.bf16.mxu1 %v7050_v21 }
 0x463   : > { %3820 = vmatprep.mubr.bf16.mxu0 %v3311_v27  ;;  %3933 = vmatprep.mubr.bf16.mxu1 %v3311_v27 }
 0x464   : > { %3821 = vmatmul.mubr.bf16.gmra.mxu0 %v3310_v22  ;;  %3934 = vmatmul.mubr.bf16.gmra.mxu1 %v3310_v22 }
 0x465   : > { %4859 = vmatpush2.bf16.msra.mxu0 %v7045_v43  ;;  %4972 = vmatpush2.bf16.msra.mxu1 %v7048_v36  ;;  %v7063_v36 = vld [vmem:[#allocation12 + $0xc8] ss:$16 sps:$4 sm:$0xff]  }
 0x466   : > { %4860 = vmatprep.subr.bf16.mxu0 %v7053_v5  ;;  %4973 = vmatprep.subr.bf16.mxu1 %v7056_v31 }
 0x469   : > { %4861 = vmatpush2.bf16.msra.mxu0 %v7051_v58  ;;  %4974 = vmatpush2.bf16.msra.mxu1 %v7054_v28 }
 0x46a   : > { %5056 = vmatprep.subr.bf16.mxu0 %v7059_v7  ;;  %5169 = vmatprep.subr.bf16.mxu1 %v7062_v29  ;;  %v7066_v7 = vld [vmem:[#allocation12 + $0x2c8] ss:$16 sps:$4 sm:$0xff]   ;;  %v7071_v29 = vld [vmem:[#allocation12 + $0xac] ss:$16 sps:$4 sm:$0xff]  }
 0x4ec   : > { %v3752_v53 = vpop.f32.mrf.mxu0  ;;  %v3865_v59 = vpop.f32.mrf.mxu1 }
 0x4ed   : > { %v3753_v62 = vadd.f32 %v3752_v53, %v8578_v0  ;;  %v3866_v8 = vadd.f32 %v3865_v59, %v8581_v40 }
 0x4ee   : > { %v3754_v37 = vpop.f32.mrf.mxu0  ;;  %v3867_v41 = vpop.f32.mrf.mxu1 }
 0x4ef   : > { %v3755_v33 = vadd.f32 %v3754_v37, %v8572_v63  ;;  %v3868_v1 = vadd.f32 %v3867_v41, %v8575_v45  ;;  %v3944_v13 = vmax.f32 %v3753_v62, 0.0  ;;  %v3946_v19 = vmax.f32 %v3866_v8, 0.0  ;;  %v7074_v62 = vld [vmem:[#allocation12 + $0x2ac] ss:$16 sps:$4 sm:$0xff]  }
 0x4f0   : > { %v3756_v47 = vpop.f32.mrf.mxu0  ;;  %v3869_v46 = vpop.f32.mrf.mxu1 }
 0x4f1   : > { %v3757_v38 = vadd.f32 %v3756_v47, %v8578_v0  ;;  %v3870_v6 = vadd.f32 %v3869_v46, %v8581_v40  ;;  %v3945_v50 = vmax.f32 %v3755_v33, 0.0  ;;  %v3947_v3 = vmax.f32 %v3868_v1, 0.0 }
 0x4f2   : > { %v3758_v54 = vpop.f32.mrf.mxu0  ;;  %v3871_v55 = vpop.f32.mrf.mxu1 }
 0x4f3   : > { %v3759_v60 = vadd.f32 %v3758_v54, %v8572_v63  ;;  %v3872_v61 = vadd.f32 %v3871_v55, %v8575_v45  ;;  %v3948_v14 = vmax.f32 %v3757_v38, 0.0  ;;  %v3950_v15 = vmax.f32 %v3870_v6, 0.0  ;;  %v7069_v6 = vld [vmem:[#allocation12 + $0xa8] ss:$16 sps:$4 sm:$0xff]  }
 0x4f4   : > { %v3762_v9 = vpop.f32.mrf.mxu0  ;;  %v3875_v2 = vpop.f32.mrf.mxu1 }
 0x4f5   : > { %v3949_v12 = vmax.f32 %v3759_v60, 0.0  ;;  %v3951_v23 = vmax.f32 %v3872_v61, 0.0  ;;  %v8595_v39 = vpack.c.bf16 %v3948_v14, %v3944_v13  ;;  %v8597_v48 = vpack.c.bf16 %v3950_v15, %v3946_v19  ;;  %v7072_v14 = vld [vmem:[#allocation12 + $0x2a8] ss:$16 sps:$4 sm:$0xff]   ;;  %v7077_v15 = vld [vmem:[#allocation12 + $0x8c] ss:$16 sps:$4 sm:$0xff]  }
 0x4f6   : > { %v3764_v24 = vpop.f32.mrf.mxu0  ;;  %v3877_v42 = vpop.f32.mrf.mxu1  ;;  %v3763_v57 = vadd.f32 %v3762_v9, %v8578_v0  ;;  %v3876_v34 = vadd.f32 %v3875_v2, %v8581_v40 }
 0x4f7   : > { %v8591_v44 = vpack.c.bf16 %v3949_v12, %v3945_v50  ;;  %v8593_v25 = vpack.c.bf16 %v3951_v23, %v3947_v3  ;;  %v3765_v52 = vadd.f32 %v3764_v24, %v8572_v63  ;;  %v3878_v27 = vadd.f32 %v3877_v42, %v8575_v45  ;;  %v7080_v3 = vld [vmem:[#allocation12 + $0x28c] ss:$16 sps:$4 sm:$0xff]  }
 0x4f8   : > { %v3766_v10 = vpop.f32.mrf.mxu0  ;;  %v3879_v11 = vpop.f32.mrf.mxu1  ;;  %v3952_v41 = vmax.f32 %v3763_v57, 0.0  ;;  %v3954_v47 = vmax.f32 %v3876_v34, 0.0 }
 0x4f9   : > { %v3767_v22 = vadd.f32 %v3766_v10, %v8578_v0  ;;  %v3880_v4 = vadd.f32 %v3879_v11, %v8581_v40  ;;  %4862 = vmatprep.mubr.bf16.mxu0 %v8591_v44  ;;  %4975 = vmatprep.mubr.bf16.mxu1 %v8593_v25  ;;  %v3953_v30 = vmax.f32 %v3765_v52, 0.0  ;;  %v3955_v53 = vmax.f32 %v3878_v27, 0.0 }
 0x4fa   : > { %v3768_v18 = vpop.f32.mrf.mxu0  ;;  %v3881_v51 = vpop.f32.mrf.mxu1  ;;  %4863 = vmatmul.mubr.bf16.vlgmr.msra.gmra.mxu0 %v8595_v39  ;;  %4976 = vmatmul.mubr.bf16.vlgmr.msra.gmra.mxu1 %v8597_v48 }
 0x4fb   : > { %v3769_v21 = vadd.f32 %v3768_v18, %v8572_v63  ;;  %v3882_v43 = vadd.f32 %v3881_v51, %v8575_v45  ;;  %5057 = vmatpush1.bf16.msra.mxu0 %v7057_v35  ;;  %5170 = vmatpush1.bf16.msra.mxu1 %v7060_v26  ;;  %v3956_v5 = vmax.f32 %v3767_v22, 0.0  ;;  %v3958_v31 = vmax.f32 %v3880_v4, 0.0  ;;  %v7075_v35 = vld [vmem:[#allocation12 + $0x88] ss:$16 sps:$4 sm:$0xff]  }
 0x4fc   : > { %v3772_v58 = vpop.f32.mrf.mxu0  ;;  %v3885_v28 = vpop.f32.mrf.mxu1  ;;  %5058 = vmatprep.subr.bf16.mxu0 %v7065_v16  ;;  %5171 = vmatprep.subr.bf16.mxu1 %v7068_v17  ;;  %v7078_v16 = vld [vmem:[#allocation12 + $0x288] ss:$16 sps:$4 sm:$0xff]   ;;  %v7083_v17 = vld [vmem:[#allocation12 + $0x6c] ss:$16 sps:$4 sm:$0xff]  }
 0x4fd   : > { %v3957_v59 = vmax.f32 %v3769_v21, 0.0  ;;  %v3959_v37 = vmax.f32 %v3882_v43, 0.0  ;;  %v8615_v8 = vpack.c.bf16 %v3956_v5, %v3952_v41  ;;  %v8617_v54 = vpack.c.bf16 %v3958_v31, %v3954_v47  ;;  %v7081_v5 = vld [vmem:[#allocation12 + $0x68] ss:$16 sps:$4 sm:$0xff]   ;;  %v7086_v31 = vld [vmem:[#allocation12 + $0x26c] ss:$16 sps:$4 sm:$0xff]  }
 0x4fe   : > { %v3774_v46 = vpop.f32.mrf.mxu0  ;;  %v3887_v33 = vpop.f32.mrf.mxu1  ;;  %v3773_v12 = vadd.f32 %v3772_v58, %v8578_v0  ;;  %v3886_v23 = vadd.f32 %v3885_v28, %v8581_v40 }
 0x4ff   : > { %v8611_v1 = vpack.c.bf16 %v3957_v59, %v3953_v30  ;;  %v8613_v38 = vpack.c.bf16 %v3959_v37, %v3955_v53  ;;  %5059 = vmatpush1.bf16.msra.mxu0 %v7063_v36  ;;  %v3775_v55 = vadd.f32 %v3774_v46, %v8572_v63  ;;  %5172 = vmatpush1.bf16.msra.mxu1 %v7066_v7  ;;  %v7084_v53 = vld [vmem:[#allocation12 + $0x268] ss:$16 sps:$4 sm:$0xff]   ;;  %v7089_v59 = vld [vmem:[#allocation12 + $0x4c] ss:$16 sps:$4 sm:$0xff]  }
 0x500   : > { %v3776_v60 = vpop.f32.mrf.mxu0  ;;  %v3889_v61 = vpop.f32.mrf.mxu1  ;;  %5060 = vmatprep.subr.bf16.mxu0 %v7071_v29  ;;  %v3888_v9 = vadd.f32 %v3887_v33, %v8575_v45  ;;  %5173 = vmatprep.subr.bf16.mxu1 %v7074_v62  ;;  %v3960_v34 = vmax.f32 %v3773_v12, 0.0  ;;  %v3962_v18 = vmax.f32 %v3886_v23, 0.0  ;;  %v7092_v46 = vld [vmem:[#allocation12 + $0x24c] ss:$16 sps:$4 sm:$0xff]  }
 0x501   : > { %v3777_v2 = vadd.f32 %v3776_v60, %v8578_v0  ;;  %v3890_v50 = vadd.f32 %v3889_v61, %v8581_v40  ;;  %4872 = vmatprep.mubr.bf16.mxu0 %v8611_v1  ;;  %4985 = vmatprep.mubr.bf16.mxu1 %v8613_v38  ;;  %v3961_v27 = vmax.f32 %v3775_v55, 0.0  ;;  %v7095_v12 = vld [vmem:[#allocation12 + $0x2c] ss:$16 sps:$4 sm:$0xff]  }
 0x502   : > { %v3778_v13 = vpop.f32.mrf.mxu0  ;;  %v3891_v19 = vpop.f32.mrf.mxu1  ;;  %4873 = vmatmul.mubr.bf16.gmra.mxu0 %v8615_v8  ;;  %4986 = vmatmul.mubr.bf16.gmra.mxu1 %v8617_v54  ;;  %v3963_v22 = vmax.f32 %v3888_v9, 0.0 }
 0x503   : > { %v3779_v24 = vadd.f32 %v3778_v13, %v8572_v63  ;;  %v3892_v42 = vadd.f32 %v3891_v19, %v8575_v45  ;;  %5061 = vmatpush1.bf16.msra.mxu0 %v7069_v6  ;;  %v3964_v26 = vmax.f32 %v3777_v2, 0.0  ;;  %v3966_v52 = vmax.f32 %v3890_v50, 0.0  ;;  %5174 = vmatpush1.bf16.msra.mxu1 %v7072_v14  ;;  %v7087_v14 = vld [vmem:[#allocation12 + $0x48] ss:$16 sps:$4 sm:$0xff]  }
 0x504   : > { %v3782_v10 = vpop.f32.mrf.mxu0  ;;  %v3895_v11 = vpop.f32.mrf.mxu1  ;;  %5062 = vmatprep.subr.bf16.mxu0 %v7077_v15  ;;  %5175 = vmatprep.subr.bf16.mxu1 %v7080_v3  ;;  %v7090_v3 = vld [vmem:[#allocation12 + $0x248] ss:$16 sps:$4 sm:$0xff]  }
 0x505   : > { %v3965_v4 = vmax.f32 %v3779_v24, 0.0  ;;  %v3967_v57 = vmax.f32 %v3892_v42, 0.0  ;;  %v8635_v58 = vpack.c.bf16 %v3964_v26, %v3960_v34  ;;  %v8637_v28 = vpack.c.bf16 %v3966_v52, %v3962_v18  ;;  %v7096_v18 = vld [vmem:[#allocation12 + $0x228] ss:$16 sps:$4 sm:$0xff]  }
 0x506   : > { %v3784_v51 = vpop.f32.mrf.mxu0  ;;  %v3897_v21 = vpop.f32.mrf.mxu1  ;;  %v3783_v33 = vadd.f32 %v3782_v10, %v8578_v0  ;;  %v3896_v6 = vadd.f32 %v3895_v11, %v8581_v40 }
 0x507   : > { %v8631_v43 = vpack.c.bf16 %v3965_v4, %v3961_v27  ;;  %v8633_v36 = vpack.c.bf16 %v3967_v57, %v3963_v22  ;;  %5063 = vmatpush1.bf16.msra.mxu0 %v7075_v35  ;;  %v3785_v7 = vadd.f32 %v3784_v51, %v8572_v63  ;;  %5176 = vmatpush1.bf16.msra.mxu1 %v7078_v16  ;;  %v7093_v16 = vld [vmem:[#allocation12 + $0x28] ss:$16 sps:$4 sm:$0xff]   ;;  %v7101_v51 = vld [vmem:[#allocation12 + $0xc] ss:$16 sps:$4 sm:$0xff]  }
 0x508   : > { %v3786_v29 = vpop.f32.mrf.mxu0  ;;  %v3899_v30 = vpop.f32.mrf.mxu1  ;;  %5064 = vmatprep.subr.bf16.mxu0 %v7083_v17  ;;  %v3898_v37 = vadd.f32 %v3897_v21, %v8575_v45  ;;  %5177 = vmatprep.subr.bf16.mxu1 %v7086_v31  ;;  %v3968_v42 = vmax.f32 %v3783_v33, 0.0  ;;  %v3970_v35 = vmax.f32 %v3896_v6, 0.0  ;;  %v7098_v17 = vld [vmem:[#allocation12 + $0x22c] ss:$16 sps:$4 sm:$0xff]  }
 0x509   : > { %v3787_v41 = vadd.f32 %v3786_v29, %v8578_v0  ;;  %v3900_v47 = vadd.f32 %v3899_v30, %v8581_v40  ;;  %4882 = vmatprep.mubr.bf16.mxu0 %v8631_v43  ;;  %4995 = vmatprep.mubr.bf16.mxu1 %v8633_v36  ;;  %v3969_v23 = vmax.f32 %v3785_v7, 0.0  ;;  %v7104_v7 = vld [vmem:[#allocation12 + $0x20c] ss:$16 sps:$4 sm:$0xff]  }
 0x50a   : > { %v3788_v62 = vpop.f32.mrf.mxu0  ;;  %v3901_v55 = vpop.f32.mrf.mxu1  ;;  %4883 = vmatmul.mubr.bf16.gmra.mxu0 %v8635_v58  ;;  %4996 = vmatmul.mubr.bf16.gmra.mxu1 %v8637_v28  ;;  %v3971_v13 = vmax.f32 %v3898_v37, 0.0 }
 0x50b   : > { %v3789_v60 = vadd.f32 %v3788_v62, %v8572_v63  ;;  %v3902_v61 = vadd.f32 %v3901_v55, %v8575_v45  ;;  %5065 = vmatpush1.bf16.msra.mxu0 %v7081_v5  ;;  %v3972_v15 = vmax.f32 %v3787_v41, 0.0  ;;  %v3974_v9 = vmax.f32 %v3900_v47, 0.0  ;;  %5178 = vmatpush1.bf16.msra.mxu1 %v7084_v53  ;;  %v7099_v47 = vld [vmem:[#allocation12 + $0x8] ss:$16 sps:$4 sm:$0xff]  }
 0x50c   : > { %v3792_v2 = vpop.f32.mrf.mxu0  ;;  %v3905_v50 = vpop.f32.mrf.mxu1  ;;  %5066 = vmatprep.subr.bf16.mxu0 %v7089_v59  ;;  %5179 = vmatprep.subr.bf16.mxu1 %v7092_v46  ;;  %v7102_v55 = vld [vmem:[#allocation12 + $0x208] ss:$16 sps:$4 sm:$0xff]  }
 0x50d   : > { %v3973_v19 = vmax.f32 %v3789_v60, 0.0  ;;  %v3975_v24 = vmax.f32 %v3902_v61, 0.0  ;;  %v8655_v27 = vpack.c.bf16 %v3972_v15, %v3968_v42  ;;  %v8657_v22 = vpack.c.bf16 %v3974_v9, %v3970_v35  ;;  %v7107_v60 = vld [vmem:[#allocation12 + $0x1ec] ss:$16 sps:$4 sm:$0xff]  }
 0x50e   : > { %v3794_v26 = vpop.f32.mrf.mxu0  ;;  %v3907_v52 = vpop.f32.mrf.mxu1  ;;  %v3793_v29 = vadd.f32 %v3792_v2, %v8578_v0  ;;  %v3906_v30 = vadd.f32 %v3905_v50, %v8581_v40 }
 0x50f   : > { %v8651_v10 = vpack.c.bf16 %v3973_v19, %v3969_v23  ;;  %v8653_v11 = vpack.c.bf16 %v3975_v24, %v3971_v13  ;;  %5067 = vmatpush1.bf16.msra.mxu0 %v7087_v14  ;;  %v3795_v4 = vadd.f32 %v3794_v26, %v8572_v63  ;;  %5180 = vmatpush1.bf16.msra.mxu1 %v7090_v3  ;;  %v7105_v19 = vld [vmem:[#allocation12 + $0x1e8] ss:$16 sps:$4 sm:$0xff]   ;;  %v7110_v24 = vld [vmem:[#allocation12 + $0x3ec] ss:$16 sps:$4 sm:$0xff]  }
 0x510   : > { %v3796_v57 = vpop.f32.mrf.mxu0  ;;  %v3909_v34 = vpop.f32.mrf.mxu1  ;;  %5068 = vmatprep.subr.bf16.mxu0 %v7095_v12  ;;  %v3908_v21 = vadd.f32 %v3907_v52, %v8575_v45  ;;  %5181 = vmatprep.subr.bf16.mxu1 %v7098_v17  ;;  %v3976_v2 = vmax.f32 %v3793_v29, 0.0  ;;  %v3978_v50 = vmax.f32 %v3906_v30, 0.0  ;;  %v7108_v17 = vld [vmem:[#allocation12 + $0x3e8] ss:$16 sps:$4 sm:$0xff]  }
 0x511   : > { %v3797_v5 = vadd.f32 %v3796_v57, %v8578_v0  ;;  %v3910_v31 = vadd.f32 %v3909_v34, %v8581_v40  ;;  %4892 = vmatprep.mubr.bf16.mxu0 %v8651_v10  ;;  %5005 = vmatprep.mubr.bf16.mxu1 %v8653_v11  ;;  %v3977_v61 = vmax.f32 %v3795_v4, 0.0  ;;  %v7113_v4 = vld [vmem:[#allocation12 + $0x1cc] ss:$16 sps:$4 sm:$0xff]  }
 0x512   : > { %v3798_v53 = vpop.f32.mrf.mxu0  ;;  %v3911_v59 = vpop.f32.mrf.mxu1  ;;  %4893 = vmatmul.mubr.bf16.gmra.mxu0 %v8655_v27  ;;  %5006 = vmatmul.mubr.bf16.gmra.mxu1 %v8657_v22  ;;  %v3979_v14 = vmax.f32 %v3908_v21, 0.0 }
 0x513   : > { %v3799_v37 = vadd.f32 %v3798_v53, %v8572_v63  ;;  %v3912_v41 = vadd.f32 %v3911_v59, %v8575_v45  ;;  %5069 = vmatpush1.bf16.msra.mxu0 %v7093_v16  ;;  %v3980_v46 = vmax.f32 %v3797_v5, 0.0  ;;  %v3982_v33 = vmax.f32 %v3910_v31, 0.0  ;;  %5182 = vmatpush1.bf16.msra.mxu1 %v7096_v18  ;;  %v7111_v53 = vld [vmem:[#allocation12 + $0x1c8] ss:$16 sps:$4 sm:$0xff]  }
 0x514   : > { %v3802_v6 = vpop.f32.mrf.mxu0  ;;  %v3915_v62 = vpop.f32.mrf.mxu1  ;;  %5070 = vmatprep.subr.bf16.mxu0 %v7101_v51  ;;  %5183 = vmatprep.subr.bf16.mxu1 %v7104_v7  ;;  %v7116_v51 = vld [vmem:[#allocation12 + $0x3cc] ss:$16 sps:$4 sm:$0xff]  }
 0x515   : > { %v3981_v15 = vmax.f32 %v3799_v37, 0.0  ;;  %v3983_v9 = vmax.f32 %v3912_v41, 0.0  ;;  %v8675_v42 = vpack.c.bf16 %v3980_v46, %v3976_v2  ;;  %v8677_v35 = vpack.c.bf16 %v3982_v33, %v3978_v50  ;;  %v7114_v46 = vld [vmem:[#allocation12 + $0x3c8] ss:$16 sps:$4 sm:$0xff]   ;;  %v7119_v33 = vld [vmem:[#allocation12 + $0x1ac] ss:$16 sps:$4 sm:$0xff]  }
 0x516   : > { %v3804_v3 = vpop.f32.mrf.mxu0  ;;  %v3917_v12 = vpop.f32.mrf.mxu1  ;;  %v3803_v21 = vadd.f32 %v3802_v6, %v8578_v0  ;;  %v3916_v5 = vadd.f32 %v3915_v62, %v8581_v40 }
 0x517   : > { %v8671_v23 = vpack.c.bf16 %v3981_v15, %v3977_v61  ;;  %v8673_v13 = vpack.c.bf16 %v3983_v9, %v3979_v14  ;;  %5071 = vmatpush1.bf16.msra.mxu0 %v7099_v47  ;;  %v3805_v26 = vadd.f32 %v3804_v3, %v8572_v63  ;;  %5184 = vmatpush1.bf16.msra.mxu1 %v7102_v55  ;;  %v7117_v3 = vld [vmem:[#allocation12 + $0x1a8] ss:$16 sps:$4 sm:$0xff]  }
 0x518   : > { %v3806_v52 = vpop.f32.mrf.mxu0  ;;  %v3919_v16 = vpop.f32.mrf.mxu1  ;;  %5072 = vmatprep.subr.bf16.mxu0 %v7107_v60  ;;  %v3918_v57 = vadd.f32 %v3917_v12, %v8575_v45  ;;  %5185 = vmatprep.subr.bf16.mxu1 %v7110_v24  ;;  %v3984_v61 = vmax.f32 %v3803_v21, 0.0  ;;  %v3986_v14 = vmax.f32 %v3916_v5, 0.0  ;;  %v7122_v12 = vld [vmem:[#allocation12 + $0x3ac] ss:$16 sps:$4 sm:$0xff]  }
 0x519   : > { %v3807_v34 = vadd.f32 %v3806_v52, %v8578_v0  ;;  %v3920_v18 = vadd.f32 %v3919_v16, %v8581_v40  ;;  %4902 = vmatprep.mubr.bf16.mxu0 %v8671_v23  ;;  %5015 = vmatprep.mubr.bf16.mxu1 %v8673_v13  ;;  %v3985_v6 = vmax.f32 %v3805_v26, 0.0 }
 0x51a   : > { %v3808_v31 = vpop.f32.mrf.mxu0  ;;  %v3921_v7 = vpop.f32.mrf.mxu1  ;;  %4903 = vmatmul.mubr.bf16.gmra.mxu0 %v8675_v42  ;;  %5016 = vmatmul.mubr.bf16.gmra.mxu1 %v8677_v35  ;;  %v3987_v62 = vmax.f32 %v3918_v57, 0.0 }
 0x51b   : > { %v3809_v29 = vadd.f32 %v3808_v31, %v8572_v63  ;;  %v3922_v30 = vadd.f32 %v3921_v7, %v8575_v45  ;;  %5073 = vmatpush2.bf16.msra.mxu0 %v7105_v19  ;;  %v3988_v59 = vmax.f32 %v3807_v34, 0.0  ;;  %v3990_v37 = vmax.f32 %v3920_v18, 0.0  ;;  %5186 = vmatpush2.bf16.msra.mxu1 %v7108_v17  ;;  %v7120_v17 = vld [vmem:[#allocation12 + $0x3a8] ss:$16 sps:$4 sm:$0xff]  }
 0x51c   : > { %v3812_v41 = vpop.f32.mrf.mxu0  ;;  %v3925_v47 = vpop.f32.mrf.mxu1  ;;  %5074 = vmatprep.subr.bf16.mxu0 %v7113_v4  ;;  %5187 = vmatprep.subr.bf16.mxu1 %v7116_v51  ;;  %v7125_v4 = vld [vmem:[#allocation12 + $0x18c] ss:$16 sps:$4 sm:$0xff]  }
 0x51d   : > { %v3989_v55 = vmax.f32 %v3809_v29, 0.0  ;;  %v3991_v60 = vmax.f32 %v3922_v30, 0.0  ;;  %v8695_v19 = vpack.c.bf16 %v3988_v59, %v3984_v61  ;;  %v8697_v24 = vpack.c.bf16 %v3990_v37, %v3986_v14  ;;  %v7128_v51 = vld [vmem:[#allocation12 + $0x38c] ss:$16 sps:$4 sm:$0xff]  }
 0x51e   : > { %v3814_v15 = vpop.f32.mrf.mxu0  ;;  %v3927_v9 = vpop.f32.mrf.mxu1  ;;  %v3813_v21 = vadd.f32 %v3812_v41, %v8578_v0  ;;  %v3926_v5 = vadd.f32 %v3925_v47, %v8581_v40  ;;  %v7126_v47 = vld [vmem:[#allocation12 + $0x388] ss:$16 sps:$4 sm:$0xff]  }
 0x51f   : > { %v8691_v2 = vpack.c.bf16 %v3989_v55, %v3985_v6  ;;  %v8693_v50 = vpack.c.bf16 %v3991_v60, %v3987_v62  ;;  %5075 = vmatpush2.bf16.msra.mxu0 %v7111_v53  ;;  %v3815_v26 = vadd.f32 %v3814_v15, %v8572_v63  ;;  %5188 = vmatpush2.bf16.msra.mxu1 %v7114_v46  ;;  %v7123_v53 = vld [vmem:[#allocation12 + $0x188] ss:$16 sps:$4 sm:$0xff]  }
 0x520   : > { %v3816_v52 = vpop.f32.mrf.mxu0  ;;  %v3929_v16 = vpop.f32.mrf.mxu1  ;;  %5076 = vmatprep.subr.bf16.mxu0 %v7119_v33  ;;  %v3928_v57 = vadd.f32 %v3927_v9, %v8575_v45  ;;  %5189 = vmatprep.subr.bf16.mxu1 %v7122_v12  ;;  %v7131_v33 = vld [vmem:[#allocation12 + $0x16c] ss:$16 sps:$4 sm:$0xff]   ;;  %v3992_v61 = vmax.f32 %v3813_v21, 0.0  ;;  %v3994_v14 = vmax.f32 %v3926_v5, 0.0 }
 0x521   : > { %v3817_v34 = vadd.f32 %v3816_v52, %v8578_v0  ;;  %v3930_v18 = vadd.f32 %v3929_v16, %v8581_v40  ;;  %4912 = vmatprep.mubr.bf16.mxu0 %v8691_v2  ;;  %5025 = vmatprep.mubr.bf16.mxu1 %v8693_v50  ;;  %v3993_v6 = vmax.f32 %v3815_v26, 0.0  ;;  %v7129_v52 = vld [vmem:[#allocation12 + $0x168] ss:$16 sps:$4 sm:$0xff]   ;;  %v7134_v16 = vld [vmem:[#allocation12 + $0x36c] ss:$16 sps:$4 sm:$0xff]  }
 0x522   : > { %v3818_v31 = vpop.f32.mrf.mxu0  ;;  %v3931_v7 = vpop.f32.mrf.mxu1  ;;  %4913 = vmatmul.mubr.bf16.gmra.mxu0 %v8695_v19  ;;  %5026 = vmatmul.mubr.bf16.gmra.mxu1 %v8697_v24  ;;  %v3995_v62 = vmax.f32 %v3928_v57, 0.0 }
 0x523   : > { %v3819_v29 = vadd.f32 %v3818_v31, %v8572_v63  ;;  %v3932_v30 = vadd.f32 %v3931_v7, %v8575_v45  ;;  %5077 = vmatpush2.bf16.msra.mxu0 %v7117_v3  ;;  %v3996_v59 = vmax.f32 %v3817_v34, 0.0  ;;  %v3998_v37 = vmax.f32 %v3930_v18, 0.0  ;;  %5190 = vmatpush2.bf16.msra.mxu1 %v7120_v17  ;;  %v7132_v18 = vld [vmem:[#allocation12 + $0x368] ss:$16 sps:$4 sm:$0xff]   ;;  %v7140_v7 = vld [vmem:[#allocation12 + $0x34c] ss:$16 sps:$4 sm:$0xff]  }
 0x524   : > { %v3822_v46 = vpop.f32.mrf.mxu0  ;;  %v3935_v41 = vpop.f32.mrf.mxu1  ;;  %5078 = vmatprep.subr.bf16.mxu0 %v7125_v4  ;;  %5191 = vmatprep.subr.bf16.mxu1 %v7128_v51  ;;  %v7137_v51 = vld [vmem:[#allocation12 + $0x14c] ss:$16 sps:$4 sm:$0xff]  }
 0x525   : > { %v3997_v55 = vmax.f32 %v3819_v29, 0.0  ;;  %v3999_v60 = vmax.f32 %v3932_v30, 0.0  ;;  %v8715_v17 = vpack.c.bf16 %v3996_v59, %v3992_v61  ;;  %v8717_v4 = vpack.c.bf16 %v3998_v37, %v3994_v14 }
 0x526   : > { %v3824_v15 = vpop.f32.mrf.mxu0  ;;  %v3937_v9 = vpop.f32.mrf.mxu1  ;;  %v3823_v29 = vadd.f32 %v3822_v46, %v8578_v0  ;;  %v3936_v30 = vadd.f32 %v3935_v41, %v8581_v40  ;;  %v7143_v46 = vld [vmem:[#allocation12 + $0x12c] ss:$16 sps:$4 sm:$0xff]  }
 0x527   : > { %v8711_v12 = vpack.c.bf16 %v3997_v55, %v3993_v6  ;;  %v8713_v3 = vpack.c.bf16 %v3999_v60, %v3995_v62  ;;  %5079 = vmatpush2.bf16.msra.mxu0 %v7123_v53  ;;  %v3825_v26 = vadd.f32 %v3824_v15, %v8572_v63  ;;  %5192 = vmatpush2.bf16.msra.mxu1 %v7126_v47 }
 0x528   : > { %v3826_v57 = vpop.f32.mrf.mxu0  ;;  %v3939_v34 = vpop.f32.mrf.mxu1  ;;  %5080 = vmatprep.subr.bf16.mxu0 %v7131_v33  ;;  %v3938_v21 = vadd.f32 %v3937_v9, %v8575_v45  ;;  %5193 = vmatprep.subr.bf16.mxu1 %v7134_v16  ;;  %v7135_v33 = vld [vmem:[#allocation12 + $0x148] ss:$16 sps:$4 sm:$0xff]   ;;  %v4000_v61 = vmax.f32 %v3823_v29, 0.0  ;;  %v4002_v14 = vmax.f32 %v3936_v30, 0.0  ;;  %v7146_v9 = vld [vmem:[#allocation12 + $0x32c] ss:$16 sps:$4 sm:$0xff]  }
 0x529   : > { %v3827_v5 = vadd.f32 %v3826_v57, %v8578_v0  ;;  %v3940_v31 = vadd.f32 %v3939_v34, %v8581_v40  ;;  %4922 = vmatprep.mubr.bf16.mxu0 %v8711_v12  ;;  %5035 = vmatprep.mubr.bf16.mxu1 %v8713_v3  ;;  %v7138_v0 = vld [vmem:[#allocation12 + $0x348] ss:$16 sps:$4 sm:$0xff]   ;;  %v4001_v40 = vmax.f32 %v3825_v26, 0.0  ;;  %v7149_v34 = vld [vmem:[#allocation12 + $0x10c] ss:$16 sps:$4 sm:$0xff]  }
 0x52a   : > { %v3828_v53 = vpop.f32.mrf.mxu0  ;;  %v3941_v59 = vpop.f32.mrf.mxu1  ;;  %4923 = vmatmul.mubr.bf16.gmra.mxu0 %v8715_v17  ;;  %5036 = vmatmul.mubr.bf16.gmra.mxu1 %v8717_v4  ;;  %v4003_v41 = vmax.f32 %v3938_v21, 0.0  ;;  %v7144_v57 = vld [vmem:[#allocation12 + $0x328] ss:$16 sps:$4 sm:$0xff]   ;;  %v7152_v26 = vld [vmem:[#allocation12 + $0x30c] ss:$16 sps:$4 sm:$0xff]  }
 0x52b   : > { %v3829_v37 = vadd.f32 %v3828_v53, %v8572_v63  ;;  %v3942_v47 = vadd.f32 %v3941_v59, %v8575_v45  ;;  %5081 = vmatpush2.bf16.msra.mxu0 %v7129_v52  ;;  %v4004_v6 = vmax.f32 %v3827_v5, 0.0  ;;  %v4006_v62 = vmax.f32 %v3940_v31, 0.0  ;;  %5194 = vmatpush2.bf16.msra.mxu1 %v7132_v18  ;;  %v7141_v45 = vld [vmem:[#allocation12 + $0x128] ss:$16 sps:$4 sm:$0xff]  }
 0x52c   : > { %5082 = vmatprep.subr.bf16.mxu0 %v7137_v51  ;;  %5195 = vmatprep.subr.bf16.mxu1 %v7140_v7  ;;  %v7147_v18 = vld [vmem:[#allocation12 + $0x108] ss:$16 sps:$4 sm:$0xff]  }
 0x52d   : > { %v4005_v55 = vmax.f32 %v3829_v37, 0.0  ;;  %v4007_v60 = vmax.f32 %v3942_v47, 0.0  ;;  %v4036_v52 = vpack.c.bf16 %v4004_v6, %v4000_v61  ;;  %v4038_v16 = vpack.c.bf16 %v4006_v62, %v4002_v14  ;;  %v7150_v51 = vld [vmem:[#allocation12 + $0x308] ss:$16 sps:$4 sm:$0xff]  }
 0x52f   : > { %v4037_v15 = vpack.c.bf16 %v4005_v55, %v4001_v40  ;;  %v4039_v63 = vpack.c.bf16 %v4007_v60, %v4003_v41  ;;  %5083 = vmatpush2.bf16.msra.mxu0 %v7135_v33  ;;  %5196 = vmatpush2.bf16.msra.mxu1 %v7138_v0 }
 0x530   : > { %5084 = vmatprep.subr.bf16.mxu0 %v7143_v46  ;;  %5197 = vmatprep.subr.bf16.mxu1 %v7146_v9 }
 0x531   : > { %4932 = vmatprep.mubr.bf16.mxu0 %v4037_v15  ;;  %5045 = vmatprep.mubr.bf16.mxu1 %v4039_v63 }
 0x532   : > { %4933 = vmatmul.mubr.bf16.gmra.mxu0 %v4036_v52  ;;  %5046 = vmatmul.mubr.bf16.gmra.mxu1 %v4038_v16 }
 0x533   : > { %5085 = vmatpush2.bf16.msra.mxu0 %v7141_v45  ;;  %5088 = vmatprep.mubr.bf16.mxu0 %v8591_v44  ;;  %v8762_v44 = vld [vmem:[%s8898_s12] sm:$0xf] }
 0x534   : > { %5198 = vmatpush2.bf16.msra.mxu1 %v7144_v57  ;;  %5201 = vmatprep.mubr.bf16.mxu1 %v8593_v25  ;;  %v8766_v25 = vrot.slane %v8762_v44, %v8321_v49 }
 0x535   : > { %5086 = vmatprep.subr.bf16.mxu0 %v7149_v34  ;;  %5199 = vmatprep.subr.bf16.mxu1 %v7152_v26 }
 0x537   : > { %5087 = vmatpush2.bf16.msra.mxu0 %v7147_v18 }
 0x538   : > { %5200 = vmatpush2.bf16.msra.mxu1 %v7150_v51 }
 0x53a   : > { %5089 = vmatmul.mubr.bf16.vlgmr.msra.gmra.mxu0 %v8595_v39  ;;  %v8770_v39 = vrot.slane %v8762_v44, %v8318_v56 }
 0x53b   : > { %5202 = vmatmul.mubr.bf16.vlgmr.msra.gmra.mxu1 %v8597_v48  ;;  %5098 = vmatprep.mubr.bf16.mxu0 %v8611_v1 }
 0x53c   : > { %5211 = vmatprep.mubr.bf16.mxu1 %v8613_v38 }
 0x542   : > { %5099 = vmatmul.mubr.bf16.gmra.mxu0 %v8615_v8 }
 0x543   : > { %5212 = vmatmul.mubr.bf16.gmra.mxu1 %v8617_v54  ;;  %5108 = vmatprep.mubr.bf16.mxu0 %v8631_v43 }
 0x544   : > { %5221 = vmatprep.mubr.bf16.mxu1 %v8633_v36 }
 0x54a   : > { %5109 = vmatmul.mubr.bf16.gmra.mxu0 %v8635_v58 }
 0x54b   : > { %5222 = vmatmul.mubr.bf16.gmra.mxu1 %v8637_v28  ;;  %5118 = vmatprep.mubr.bf16.mxu0 %v8651_v10 }
 0x54c   : > { %5231 = vmatprep.mubr.bf16.mxu1 %v8653_v11 }
 0x552   : > { %5119 = vmatmul.mubr.bf16.gmra.mxu0 %v8655_v27 }
 0x553   : > { %5232 = vmatmul.mubr.bf16.gmra.mxu1 %v8657_v22  ;;  %5128 = vmatprep.mubr.bf16.mxu0 %v8671_v23 }
 0x554   : > { %5241 = vmatprep.mubr.bf16.mxu1 %v8673_v13 }
 0x55a   : > { %5129 = vmatmul.mubr.bf16.gmra.mxu0 %v8675_v42 }
 0x55b   : > { %5242 = vmatmul.mubr.bf16.gmra.mxu1 %v8677_v35  ;;  %5138 = vmatprep.mubr.bf16.mxu0 %v8691_v2 }
 0x55c   : > { %5251 = vmatprep.mubr.bf16.mxu1 %v8693_v50 }
 0x562   : > { %5139 = vmatmul.mubr.bf16.gmra.mxu0 %v8695_v19 }
 0x563   : > { %5252 = vmatmul.mubr.bf16.gmra.mxu1 %v8697_v24  ;;  %5148 = vmatprep.mubr.bf16.mxu0 %v8711_v12 }
 0x564   : > { %5261 = vmatprep.mubr.bf16.mxu1 %v8713_v3 }
 0x56a   : > { %5149 = vmatmul.mubr.bf16.gmra.mxu0 %v8715_v17 }
 0x56b   : > { %5262 = vmatmul.mubr.bf16.gmra.mxu1 %v8717_v4  ;;  %5158 = vmatprep.mubr.bf16.mxu0 %v4037_v15 }
 0x56c   : > { %5271 = vmatprep.mubr.bf16.mxu1 %v4039_v63 }
 0x572   : > { %5159 = vmatmul.mubr.bf16.gmra.mxu0 %v4036_v52 }
 0x573   : > { %5272 = vmatmul.mubr.bf16.gmra.mxu1 %v4038_v16 }
 0x5ba   : > { %v4864_v48 = vpop.f32.mrf.mxu0  ;;  %v4977_v1 = vpop.f32.mrf.mxu1 }
 0x5bb   : > { %v4865_v38 = vadd.f32 %v4864_v48, %v8766_v25 }
 0x5bc   : > { %v4866_v8 = vpop.f32.mrf.mxu0  ;;  %v4979_v54 = vpop.f32.mrf.mxu1 }
 0x5bd   : > { %v4978_v43 = vadd.f32 %v4977_v1, %v4865_v38  ;;  %v4867_v36 = vadd.f32 %v4866_v8, %v8770_v39 }
 0x5be   : > { %v4868_v58 = vpop.f32.mrf.mxu0  ;;  %v4981_v28 = vpop.f32.mrf.mxu1 }
 0x5bf   : > { %v5282_v10 = vmax.f32 %v4978_v43, 0.0  ;;  %v4980_v11 = vadd.f32 %v4979_v54, %v4867_v36  ;;  %v4869_v49 = vadd.f32 %v4868_v58, %v8766_v25 }
 0x5c0   : > { %v4870_v27 = vpop.f32.mrf.mxu0  ;;  %v4983_v22 = vpop.f32.mrf.mxu1 }
 0x5c1   : > { %v5283_v56 = vmax.f32 %v4980_v11, 0.0  ;;  %v4982_v23 = vadd.f32 %v4981_v28, %v4869_v49  ;;  %v4871_v13 = vadd.f32 %v4870_v27, %v8770_v39  ;;  %v5346_v42 = vmin.f32 %v5282_v10, 2.0 }
 0x5c2   : > { %v4874_v35 = vpop.f32.mrf.mxu0  ;;  %v4987_v2 = vpop.f32.mrf.mxu1 }
 0x5c3   : > { %v5347_v50 = vmin.f32 %v5283_v56, 2.0  ;;  %v5286_v19 = vmax.f32 %v4982_v23, 0.0  ;;  %v4984_v24 = vadd.f32 %v4983_v22, %v4871_v13  ;;  %v4875_v12 = vadd.f32 %v4874_v35, %v8766_v25 }
 0x5c4   : > { %v4876_v3 = vpop.f32.mrf.mxu0  ;;  %v4989_v17 = vpop.f32.mrf.mxu1 }
 0x5c5   : > { %v6307_v4 = vpack.c.bf16 %v5347_v50, %v5346_v42  ;;  %v5287_v21 = vmax.f32 %v4984_v24, 0.0  ;;  %v4988_v5 = vadd.f32 %v4987_v2, %v4875_v12  ;;  %v4877_v31 = vadd.f32 %v4876_v3, %v8770_v39 }
 0x5c6   : > { %v4878_v7 = vpop.f32.mrf.mxu0  ;;  %v4991_v29 = vpop.f32.mrf.mxu1  ;;  %v5350_v30 = vmin.f32 %v5286_v19, 2.0 }
 0x5c7   : > { %5602 = vst [vmem:[%s8782_s18] sm:$0xff] %v6307_v4  ;;  %v5351_v53 = vmin.f32 %v5287_v21, 2.0  ;;  %v4879_v59 = vadd.f32 %v4878_v7, %v8766_v25  ;;  %v5290_v37 = vmax.f32 %v4988_v5, 0.0  ;;  %v4990_v47 = vadd.f32 %v4989_v17, %v4877_v31 }
 0x5c8   : > { %v4880_v33 = vpop.f32.mrf.mxu0  ;;  %v4993_v6 = vpop.f32.mrf.mxu1 }
 0x5c9   : > { %v6309_v62 = vpack.c.bf16 %v5351_v53, %v5350_v30  ;;  %v4992_v0 = vadd.f32 %v4991_v29, %v4879_v59  ;;  %v4881_v46 = vadd.f32 %v4880_v33, %v8770_v39  ;;  %v5291_v40 = vmax.f32 %v4990_v47, 0.0 }
 0x5ca   : > { %v4884_v41 = vpop.f32.mrf.mxu0  ;;  %v4997_v55 = vpop.f32.mrf.mxu1  ;;  %v5354_v15 = vmin.f32 %v5290_v37, 2.0 }
 0x5cb   : > { %5604 = vst [vmem:[%s8782_s18 + $0x10] sm:$0xff] %v6309_v62  ;;  %v5294_v60 = vmax.f32 %v4992_v0, 0.0  ;;  %v4994_v61 = vadd.f32 %v4993_v6, %v4881_v46  ;;  %v4885_v14 = vadd.f32 %v4884_v41, %v8766_v25  ;;  %v5355_v63 = vmin.f32 %v5291_v40, 2.0 }
 0x5cc   : > { %v4886_v45 = vpop.f32.mrf.mxu0  ;;  %v4999_v9 = vpop.f32.mrf.mxu1 }
 0x5cd   : > { %v5295_v52 = vmax.f32 %v4994_v61, 0.0  ;;  %v4998_v16 = vadd.f32 %v4997_v55, %v4885_v14  ;;  %v4887_v57 = vadd.f32 %v4886_v45, %v8770_v39  ;;  %v6311_v34 = vpack.c.bf16 %v5355_v63, %v5354_v15 }
 0x5ce   : > { %v5358_v26 = vmin.f32 %v5294_v60, 2.0  ;;  %v4888_v18 = vpop.f32.mrf.mxu0  ;;  %v5001_v51 = vpop.f32.mrf.mxu1 }
 0x5cf   : > { %v5359_v48 = vmin.f32 %v5295_v52, 2.0  ;;  %v5298_v1 = vmax.f32 %v4998_v16, 0.0  ;;  %v5000_v38 = vadd.f32 %v4999_v9, %v4887_v57  ;;  %v4889_v8 = vadd.f32 %v4888_v18, %v8766_v25  ;;  %5606 = vst [vmem:[%s8782_s18 + $0x20] sm:$0xff] %v6311_v34 }
 0x5d0   : > { %v4890_v54 = vpop.f32.mrf.mxu0  ;;  %v5003_v43 = vpop.f32.mrf.mxu1 }
 0x5d1   : > { %v6313_v36 = vpack.c.bf16 %v5359_v48, %v5358_v26  ;;  %v5299_v58 = vmax.f32 %v5000_v38, 0.0  ;;  %v5002_v28 = vadd.f32 %v5001_v51, %v4889_v8  ;;  %v4891_v10 = vadd.f32 %v4890_v54, %v8770_v39 }
 0x5d2   : > { %v4894_v11 = vpop.f32.mrf.mxu0  ;;  %v5007_v49 = vpop.f32.mrf.mxu1  ;;  %v5362_v27 = vmin.f32 %v5298_v1, 2.0 }
 0x5d3   : > { %5608 = vst [vmem:[%s8782_s18 + $0x30] sm:$0xff] %v6313_v36  ;;  %v5363_v22 = vmin.f32 %v5299_v58, 2.0  ;;  %v4895_v56 = vadd.f32 %v4894_v11, %v8766_v25  ;;  %v5302_v23 = vmax.f32 %v5002_v28, 0.0  ;;  %v5004_v13 = vadd.f32 %v5003_v43, %v4891_v10 }
 0x5d4   : > { %v4896_v42 = vpop.f32.mrf.mxu0  ;;  %v5009_v35 = vpop.f32.mrf.mxu1 }
 0x5d5   : > { %v6315_v2 = vpack.c.bf16 %v5363_v22, %v5362_v27  ;;  %v5008_v50 = vadd.f32 %v5007_v49, %v4895_v56  ;;  %v4897_v19 = vadd.f32 %v4896_v42, %v8770_v39  ;;  %v5303_v24 = vmax.f32 %v5004_v13, 0.0 }
 0x5d6   : > { %v4898_v12 = vpop.f32.mrf.mxu0  ;;  %v5011_v3 = vpop.f32.mrf.mxu1  ;;  %v5366_v5 = vmin.f32 %v5302_v23, 2.0 }
 0x5d7   : > { %5610 = vst [vmem:[%s8782_s18 + $0x40] sm:$0xff] %v6315_v2  ;;  %v5306_v17 = vmax.f32 %v5008_v50, 0.0  ;;  %v5010_v4 = vadd.f32 %v5009_v35, %v4897_v19  ;;  %v4899_v21 = vadd.f32 %v4898_v12, %v8766_v25  ;;  %v5367_v31 = vmin.f32 %v5303_v24, 2.0 }
 0x5d8   : > { %v4900_v7 = vpop.f32.mrf.mxu0  ;;  %v5013_v29 = vpop.f32.mrf.mxu1 }
 0x5d9   : > { %v5307_v30 = vmax.f32 %v5010_v4, 0.0  ;;  %v5012_v53 = vadd.f32 %v5011_v3, %v4899_v21  ;;  %v4901_v59 = vadd.f32 %v4900_v7, %v8770_v39  ;;  %v6317_v37 = vpack.c.bf16 %v5367_v31, %v5366_v5 }
 0x5da   : > { %v5370_v47 = vmin.f32 %v5306_v17, 2.0  ;;  %v4904_v33 = vpop.f32.mrf.mxu0  ;;  %v5017_v6 = vpop.f32.mrf.mxu1 }
 0x5db   : > { %v5371_v62 = vmin.f32 %v5307_v30, 2.0  ;;  %v5310_v0 = vmax.f32 %v5012_v53, 0.0  ;;  %v5014_v46 = vadd.f32 %v5013_v29, %v4901_v59  ;;  %v4905_v40 = vadd.f32 %v4904_v33, %v8766_v25  ;;  %5612 = vst [vmem:[%s8782_s18 + $0x50] sm:$0xff] %v6317_v37 }
 0x5dc   : > { %v4906_v41 = vpop.f32.mrf.mxu0  ;;  %v5019_v55 = vpop.f32.mrf.mxu1 }
 0x5dd   : > { %v6319_v60 = vpack.c.bf16 %v5371_v62, %v5370_v47  ;;  %v5311_v61 = vmax.f32 %v5014_v46, 0.0  ;;  %v5018_v14 = vadd.f32 %v5017_v6, %v4905_v40  ;;  %v4907_v15 = vadd.f32 %v4906_v41, %v8770_v39 }
 0x5de   : > { %v4908_v63 = vpop.f32.mrf.mxu0  ;;  %v5021_v45 = vpop.f32.mrf.mxu1  ;;  %v5374_v9 = vmin.f32 %v5310_v0, 2.0 }
 0x5df   : > { %5614 = vst [vmem:[%s8782_s18 + $0x60] sm:$0xff] %v6319_v60  ;;  %v5375_v52 = vmin.f32 %v5311_v61, 2.0  ;;  %v4909_v16 = vadd.f32 %v4908_v63, %v8766_v25  ;;  %v5314_v57 = vmax.f32 %v5018_v14, 0.0  ;;  %v5020_v34 = vadd.f32 %v5019_v55, %v4907_v15 }
 0x5e0   : > { %v4910_v26 = vpop.f32.mrf.mxu0  ;;  %v5023_v18 = vpop.f32.mrf.mxu1 }
 0x5e1   : > { %v6321_v51 = vpack.c.bf16 %v5375_v52, %v5374_v9  ;;  %v5022_v48 = vadd.f32 %v5021_v45, %v4909_v16  ;;  %v4911_v1 = vadd.f32 %v4910_v26, %v8770_v39  ;;  %v5315_v38 = vmax.f32 %v5020_v34, 0.0 }
 0x5e2   : > { %v4914_v8 = vpop.f32.mrf.mxu0  ;;  %v5027_v54 = vpop.f32.mrf.mxu1  ;;  %v5378_v28 = vmin.f32 %v5314_v57, 2.0 }
 0x5e3   : > { %5616 = vst [vmem:[%s8782_s18 + $0x70] sm:$0xff] %v6321_v51  ;;  %v5318_v43 = vmax.f32 %v5022_v48, 0.0  ;;  %v5024_v36 = vadd.f32 %v5023_v18, %v4911_v1  ;;  %v4915_v58 = vadd.f32 %v4914_v8, %v8766_v25  ;;  %v5379_v10 = vmin.f32 %v5315_v38, 2.0 }
 0x5e4   : > { %v4916_v11 = vpop.f32.mrf.mxu0  ;;  %v5029_v49 = vpop.f32.mrf.mxu1 }
 0x5e5   : > { %v5319_v27 = vmax.f32 %v5024_v36, 0.0  ;;  %v5028_v22 = vadd.f32 %v5027_v54, %v4915_v58  ;;  %v4917_v56 = vadd.f32 %v4916_v11, %v8770_v39  ;;  %v6323_v23 = vpack.c.bf16 %v5379_v10, %v5378_v28 }
 0x5e6   : > { %v5382_v13 = vmin.f32 %v5318_v43, 2.0  ;;  %v4918_v42 = vpop.f32.mrf.mxu0  ;;  %v5031_v35 = vpop.f32.mrf.mxu1 }
 0x5e7   : > { %v5383_v2 = vmin.f32 %v5319_v27, 2.0  ;;  %v5322_v50 = vmax.f32 %v5028_v22, 0.0  ;;  %v5030_v19 = vadd.f32 %v5029_v49, %v4917_v56  ;;  %v4919_v24 = vadd.f32 %v4918_v42, %v8766_v25  ;;  %5618 = vst [vmem:[%s8782_s18 + $0x80] sm:$0xff] %v6323_v23 }
 0x5e8   : > { %v4920_v12 = vpop.f32.mrf.mxu0  ;;  %v5033_v3 = vpop.f32.mrf.mxu1  ;;  %v8825_v56 = vrot.slane %v8762_v44, %v8367_v32 }
 0x5e9   : > { %v6325_v17 = vpack.c.bf16 %v5383_v2, %v5382_v13  ;;  %v5323_v4 = vmax.f32 %v5030_v19, 0.0  ;;  %v5032_v21 = vadd.f32 %v5031_v35, %v4919_v24  ;;  %v4921_v5 = vadd.f32 %v4920_v12, %v8770_v39 }
 0x5ea   : > { %v4924_v31 = vpop.f32.mrf.mxu0  ;;  %v5037_v7 = vpop.f32.mrf.mxu1  ;;  %v5386_v29 = vmin.f32 %v5322_v50, 2.0  ;;  %v8830_v24 = vrot.slane %v8762_v44, %v8363_v20 }
 0x5eb   : > { %5620 = vst [vmem:[%s8782_s18 + $0x90] sm:$0xff] %v6325_v17  ;;  %v5387_v30 = vmin.f32 %v5323_v4, 2.0  ;;  %v4925_v53 = vadd.f32 %v4924_v31, %v8766_v25  ;;  %v5326_v59 = vmax.f32 %v5032_v21, 0.0  ;;  %v5034_v37 = vadd.f32 %v5033_v3, %v4921_v5 }
 0x5ec   : > { %v4926_v47 = vpop.f32.mrf.mxu0  ;;  %v5039_v33 = vpop.f32.mrf.mxu1 }
 0x5ed   : > { %v6327_v6 = vpack.c.bf16 %v5387_v30, %v5386_v29  ;;  %v5038_v62 = vadd.f32 %v5037_v7, %v4925_v53  ;;  %v4927_v0 = vadd.f32 %v4926_v47, %v8770_v39  ;;  %v5327_v46 = vmax.f32 %v5034_v37, 0.0 }
 0x5ee   : > { %v4928_v40 = vpop.f32.mrf.mxu0  ;;  %v5041_v41 = vpop.f32.mrf.mxu1  ;;  %v5390_v14 = vmin.f32 %v5326_v59, 2.0 }
 0x5ef   : > { %5622 = vst [vmem:[%s8782_s18 + $0xa0] sm:$0xff] %v6327_v6  ;;  %v5330_v55 = vmax.f32 %v5038_v62, 0.0  ;;  %v5040_v60 = vadd.f32 %v5039_v33, %v4927_v0  ;;  %v4929_v61 = vadd.f32 %v4928_v40, %v8766_v25  ;;  %v5391_v15 = vmin.f32 %v5327_v46, 2.0 }
 0x5f0   : > { %v4930_v63 = vpop.f32.mrf.mxu0  ;;  %v5043_v45 = vpop.f32.mrf.mxu1 }
 0x5f1   : > { %v5331_v9 = vmax.f32 %v5040_v60, 0.0  ;;  %v5042_v52 = vadd.f32 %v5041_v41, %v4929_v61  ;;  %v4931_v16 = vadd.f32 %v4930_v63, %v8770_v39  ;;  %v6329_v57 = vpack.c.bf16 %v5391_v15, %v5390_v14 }
 0x5f2   : > { %v5394_v34 = vmin.f32 %v5330_v55, 2.0  ;;  %v4934_v26 = vpop.f32.mrf.mxu0  ;;  %v5047_v18 = vpop.f32.mrf.mxu1 }
 0x5f3   : > { %v5395_v51 = vmin.f32 %v5331_v9, 2.0  ;;  %v5334_v48 = vmax.f32 %v5042_v52, 0.0  ;;  %v5044_v1 = vadd.f32 %v5043_v45, %v4931_v16  ;;  %v4935_v38 = vadd.f32 %v4934_v26, %v8766_v25  ;;  %5624 = vst [vmem:[%s8782_s18 + $0xb0] sm:$0xff] %v6329_v57 }
 0x5f4   : > { %v4936_v8 = vpop.f32.mrf.mxu0  ;;  %v5049_v54 = vpop.f32.mrf.mxu1 }
 0x5f5   : > { %v6331_v43 = vpack.c.bf16 %v5395_v51, %v5394_v34  ;;  %v5335_v36 = vmax.f32 %v5044_v1, 0.0  ;;  %v5048_v58 = vadd.f32 %v5047_v18, %v4935_v38  ;;  %v4937_v28 = vadd.f32 %v4936_v8, %v8770_v39 }
 0x5f6   : > { %v4938_v10 = vpop.f32.mrf.mxu0  ;;  %v5051_v11 = vpop.f32.mrf.mxu1  ;;  %v5398_v49 = vmin.f32 %v5334_v48, 2.0 }
 0x5f7   : > { %5626 = vst [vmem:[%s8782_s18 + $0xc0] sm:$0xff] %v6331_v43  ;;  %v5399_v27 = vmin.f32 %v5335_v36, 2.0  ;;  %v4939_v22 = vadd.f32 %v4938_v10, %v8766_v25  ;;  %v5338_v23 = vmax.f32 %v5048_v58, 0.0  ;;  %v5050_v13 = vadd.f32 %v5049_v54, %v4937_v28 }
 0x5f8   : > { %v4940_v42 = vpop.f32.mrf.mxu0  ;;  %v5053_v35 = vpop.f32.mrf.mxu1 }
 0x5f9   : > { %v6333_v2 = vpack.c.bf16 %v5399_v27, %v5398_v49  ;;  %v5052_v50 = vadd.f32 %v5051_v11, %v4939_v22  ;;  %v4941_v19 = vadd.f32 %v4940_v42, %v8770_v39  ;;  %v5339_v12 = vmax.f32 %v5050_v13, 0.0 }
 0x5fa   : > { %v5090_v3 = vpop.f32.mrf.mxu0  ;;  %v5402_v21 = vmin.f32 %v5338_v23, 2.0 }
 0x5fb   : > { %5628 = vst [vmem:[%s8782_s18 + $0xd0] sm:$0xff] %v6333_v2  ;;  %v5342_v25 = vmax.f32 %v5052_v50, 0.0  ;;  %v5054_v17 = vadd.f32 %v5053_v35, %v4941_v19  ;;  %v5091_v32 = vadd.f32 %v5090_v3, %v8825_v56  ;;  %v5203_v4 = vpop.f32.mrf.mxu1  ;;  %v5403_v5 = vmin.f32 %v5339_v12, 2.0 }
 0x5fc   : > { %v5092_v31 = vpop.f32.mrf.mxu0 }
 0x5fd   : > { %v5343_v7 = vmax.f32 %v5054_v17, 0.0  ;;  %v5204_v29 = vadd.f32 %v5203_v4, %v5091_v32  ;;  %v5093_v39 = vadd.f32 %v5092_v31, %v8830_v24  ;;  %v5205_v30 = vpop.f32.mrf.mxu1  ;;  %v6335_v53 = vpack.c.bf16 %v5403_v5, %v5402_v21 }
 0x5fe   : > { %v5406_v20 = vmin.f32 %v5342_v25, 2.0  ;;  %v5094_v44 = vpop.f32.mrf.mxu0 }
 0x5ff   : > { %v5407_v59 = vmin.f32 %v5343_v7, 2.0  ;;  %v5284_v37 = vmax.f32 %v5204_v29, 0.0  ;;  %v5206_v47 = vadd.f32 %v5205_v30, %v5093_v39  ;;  %v5095_v33 = vadd.f32 %v5094_v44, %v8825_v56  ;;  %v5207_v6 = vpop.f32.mrf.mxu1  ;;  %5630 = vst [vmem:[%s8782_s18 + $0xe0] sm:$0xff] %v6335_v53 }
 0x600   : > { %v5096_v62 = vpop.f32.mrf.mxu0 }
 0x601   : > { %v6337_v0 = vpack.c.bf16 %v5407_v59, %v5406_v20  ;;  %v5285_v46 = vmax.f32 %v5206_v47, 0.0  ;;  %v5208_v40 = vadd.f32 %v5207_v6, %v5095_v33  ;;  %v5209_v41 = vpop.f32.mrf.mxu1  ;;  %v5097_v55 = vadd.f32 %v5096_v62, %v8830_v24 }
 0x602   : > { %v5100_v60 = vpop.f32.mrf.mxu0  ;;  %v5348_v61 = vmin.f32 %v5284_v37, 2.0 }
 0x603   : > { %5632 = vst [vmem:[%s8782_s18 + $0xf0] sm:$0xff] %v6337_v0  ;;  %v5349_v14 = vmin.f32 %v5285_v46, 2.0  ;;  %v5101_v15 = vadd.f32 %v5100_v60, %v8825_v56  ;;  %v5213_v63 = vpop.f32.mrf.mxu1  ;;  %v5288_v45 = vmax.f32 %v5208_v40, 0.0  ;;  %v5210_v9 = vadd.f32 %v5209_v41, %v5097_v55 }
 0x604   : > { %v5102_v52 = vpop.f32.mrf.mxu0 }
 0x605   : > { %v6308_v16 = vpack.c.bf16 %v5349_v14, %v5348_v61  ;;  %v5214_v57 = vadd.f32 %v5213_v63, %v5101_v15  ;;  %v5103_v34 = vadd.f32 %v5102_v52, %v8830_v24  ;;  %v5215_v26 = vpop.f32.mrf.mxu1  ;;  %v5289_v18 = vmax.f32 %v5210_v9, 0.0 }
 0x606   : > { %v5104_v51 = vpop.f32.mrf.mxu0  ;;  %v5352_v54 = vmin.f32 %v5288_v45, 2.0 }
 0x607   : > { %5603 = vst [vmem:[%s8782_s18 + $0x8] sm:$0xff] %v6308_v16  ;;  %v5292_v48 = vmax.f32 %v5214_v57, 0.0  ;;  %v5216_v1 = vadd.f32 %v5215_v26, %v5103_v34  ;;  %v5105_v38 = vadd.f32 %v5104_v51, %v8825_v56  ;;  %v5217_v8 = vpop.f32.mrf.mxu1  ;;  %v5353_v43 = vmin.f32 %v5289_v18, 2.0 }
 0x608   : > { %v5106_v36 = vpop.f32.mrf.mxu0 }
 0x609   : > { %v5293_v58 = vmax.f32 %v5216_v1, 0.0  ;;  %v5218_v28 = vadd.f32 %v5217_v8, %v5105_v38  ;;  %v5107_v10 = vadd.f32 %v5106_v36, %v8830_v24  ;;  %v5219_v11 = vpop.f32.mrf.mxu1  ;;  %v6310_v49 = vpack.c.bf16 %v5353_v43, %v5352_v54 }
 0x60a   : > { %v5356_v27 = vmin.f32 %v5292_v48, 2.0  ;;  %v5110_v22 = vpop.f32.mrf.mxu0 }
 0x60b   : > { %v5357_v23 = vmin.f32 %v5293_v58, 2.0  ;;  %v5296_v13 = vmax.f32 %v5218_v28, 0.0  ;;  %v5220_v42 = vadd.f32 %v5219_v11, %v5107_v10  ;;  %v5111_v35 = vadd.f32 %v5110_v22, %v8825_v56  ;;  %v5223_v2 = vpop.f32.mrf.mxu1  ;;  %5605 = vst [vmem:[%s8782_s18 + $0x18] sm:$0xff] %v6310_v49 }
 0x60c   : > { %v5112_v50 = vpop.f32.mrf.mxu0 }
 0x60d   : > { %v6312_v19 = vpack.c.bf16 %v5357_v23, %v5356_v27  ;;  %v5297_v12 = vmax.f32 %v5220_v42, 0.0  ;;  %v5224_v3 = vadd.f32 %v5223_v2, %v5111_v35  ;;  %v5225_v25 = vpop.f32.mrf.mxu1  ;;  %v5113_v17 = vadd.f32 %v5112_v50, %v8830_v24 }
 0x60e   : > { %v5114_v32 = vpop.f32.mrf.mxu0  ;;  %v5360_v4 = vmin.f32 %v5296_v13, 2.0 }
 0x60f   : > { %5607 = vst [vmem:[%s8782_s18 + $0x28] sm:$0xff] %v6312_v19  ;;  %v5361_v21 = vmin.f32 %v5297_v12, 2.0  ;;  %v5115_v5 = vadd.f32 %v5114_v32, %v8825_v56  ;;  %v5227_v31 = vpop.f32.mrf.mxu1  ;;  %v5300_v7 = vmax.f32 %v5224_v3, 0.0  ;;  %v5226_v29 = vadd.f32 %v5225_v25, %v5113_v17 }
 0x610   : > { %v5116_v39 = vpop.f32.mrf.mxu0 }
 0x611   : > { %v6314_v30 = vpack.c.bf16 %v5361_v21, %v5360_v4  ;;  %v5228_v53 = vadd.f32 %v5227_v31, %v5115_v5  ;;  %v5117_v20 = vadd.f32 %v5116_v39, %v8830_v24  ;;  %v5229_v44 = vpop.f32.mrf.mxu1  ;;  %v5301_v59 = vmax.f32 %v5226_v29, 0.0 }
 0x612   : > { %v5120_v37 = vpop.f32.mrf.mxu0  ;;  %v5364_v0 = vmin.f32 %v5300_v7, 2.0 }
 0x613   : > { %5609 = vst [vmem:[%s8782_s18 + $0x38] sm:$0xff] %v6314_v30  ;;  %v5304_v47 = vmax.f32 %v5228_v53, 0.0  ;;  %v5230_v33 = vadd.f32 %v5229_v44, %v5117_v20  ;;  %v5121_v6 = vadd.f32 %v5120_v37, %v8825_v56  ;;  %v5233_v62 = vpop.f32.mrf.mxu1  ;;  %v5365_v46 = vmin.f32 %v5301_v59, 2.0 }
 0x614   : > { %v5122_v40 = vpop.f32.mrf.mxu0 }
 0x615   : > { %v5305_v41 = vmax.f32 %v5230_v33, 0.0  ;;  %v5234_v55 = vadd.f32 %v5233_v62, %v5121_v6  ;;  %v5123_v60 = vadd.f32 %v5122_v40, %v8830_v24  ;;  %v5235_v61 = vpop.f32.mrf.mxu1  ;;  %v6316_v14 = vpack.c.bf16 %v5365_v46, %v5364_v0 }
 0x616   : > { %v5368_v15 = vmin.f32 %v5304_v47, 2.0  ;;  %v5124_v63 = vpop.f32.mrf.mxu0 }
 0x617   : > { %v5369_v45 = vmin.f32 %v5305_v41, 2.0  ;;  %v5308_v9 = vmax.f32 %v5234_v55, 0.0  ;;  %v5236_v52 = vadd.f32 %v5235_v61, %v5123_v60  ;;  %v5125_v16 = vadd.f32 %v5124_v63, %v8825_v56  ;;  %v5237_v57 = vpop.f32.mrf.mxu1  ;;  %5611 = vst [vmem:[%s8782_s18 + $0x48] sm:$0xff] %v6316_v14 }
 0x618   : > { %v5126_v34 = vpop.f32.mrf.mxu0 }
 0x619   : > { %v6318_v26 = vpack.c.bf16 %v5369_v45, %v5368_v15  ;;  %v5309_v18 = vmax.f32 %v5236_v52, 0.0  ;;  %v5238_v51 = vadd.f32 %v5237_v57, %v5125_v16  ;;  %v5239_v48 = vpop.f32.mrf.mxu1  ;;  %v5127_v1 = vadd.f32 %v5126_v34, %v8830_v24 }
 0x61a   : > { %v5130_v38 = vpop.f32.mrf.mxu0  ;;  %v5372_v8 = vmin.f32 %v5308_v9, 2.0 }
 0x61b   : > { %5613 = vst [vmem:[%s8782_s18 + $0x58] sm:$0xff] %v6318_v26  ;;  %v5373_v54 = vmin.f32 %v5309_v18, 2.0  ;;  %v5131_v43 = vadd.f32 %v5130_v38, %v8825_v56  ;;  %v5243_v36 = vpop.f32.mrf.mxu1  ;;  %v5312_v58 = vmax.f32 %v5238_v51, 0.0  ;;  %v5240_v28 = vadd.f32 %v5239_v48, %v5127_v1 }
 0x61c   : > { %v5132_v10 = vpop.f32.mrf.mxu0 }
 0x61d   : > { %v6320_v11 = vpack.c.bf16 %v5373_v54, %v5372_v8  ;;  %v5244_v49 = vadd.f32 %v5243_v36, %v5131_v43  ;;  %v5133_v27 = vadd.f32 %v5132_v10, %v8830_v24  ;;  %v5245_v22 = vpop.f32.mrf.mxu1  ;;  %v5313_v23 = vmax.f32 %v5240_v28, 0.0 }
 0x61e   : > { %v5134_v13 = vpop.f32.mrf.mxu0  ;;  %v5376_v19 = vmin.f32 %v5312_v58, 2.0 }
 0x61f   : > { %5615 = vst [vmem:[%s8782_s18 + $0x68] sm:$0xff] %v6320_v11  ;;  %v5316_v42 = vmax.f32 %v5244_v49, 0.0  ;;  %v5246_v35 = vadd.f32 %v5245_v22, %v5133_v27  ;;  %v5135_v2 = vadd.f32 %v5134_v13, %v8825_v56  ;;  %v5247_v50 = vpop.f32.mrf.mxu1  ;;  %v5377_v12 = vmin.f32 %v5313_v23, 2.0 }
 0x620   : > { %v5136_v3 = vpop.f32.mrf.mxu0 }
 0x621   : > { %v5317_v25 = vmax.f32 %v5246_v35, 0.0  ;;  %v5248_v17 = vadd.f32 %v5247_v50, %v5135_v2  ;;  %v5137_v32 = vadd.f32 %v5136_v3, %v8830_v24  ;;  %v5249_v4 = vpop.f32.mrf.mxu1  ;;  %v6322_v21 = vpack.c.bf16 %v5377_v12, %v5376_v19 }
 0x622   : > { %v5380_v5 = vmin.f32 %v5316_v42, 2.0  ;;  %v5140_v31 = vpop.f32.mrf.mxu0 }
 0x623   : > { %v5381_v7 = vmin.f32 %v5317_v25, 2.0  ;;  %v5320_v29 = vmax.f32 %v5248_v17, 0.0  ;;  %v5250_v39 = vadd.f32 %v5249_v4, %v5137_v32  ;;  %v5141_v30 = vadd.f32 %v5140_v31, %v8825_v56  ;;  %v5253_v53 = vpop.f32.mrf.mxu1  ;;  %5617 = vst [vmem:[%s8782_s18 + $0x78] sm:$0xff] %v6322_v21 }
 0x624   : > { %v5142_v20 = vpop.f32.mrf.mxu0 }
 0x625   : > { %v6324_v44 = vpack.c.bf16 %v5381_v7, %v5380_v5  ;;  %v5321_v59 = vmax.f32 %v5250_v39, 0.0  ;;  %v5254_v37 = vadd.f32 %v5253_v53, %v5141_v30  ;;  %v5255_v47 = vpop.f32.mrf.mxu1  ;;  %v5143_v33 = vadd.f32 %v5142_v20, %v8830_v24 }
 0x626   : > { %v5144_v6 = vpop.f32.mrf.mxu0  ;;  %v5384_v62 = vmin.f32 %v5320_v29, 2.0 }
 0x627   : > { %5619 = vst [vmem:[%s8782_s18 + $0x88] sm:$0xff] %v6324_v44  ;;  %v5385_v0 = vmin.f32 %v5321_v59, 2.0  ;;  %v5145_v46 = vadd.f32 %v5144_v6, %v8825_v56  ;;  %v5257_v40 = vpop.f32.mrf.mxu1  ;;  %v5324_v41 = vmax.f32 %v5254_v37, 0.0  ;;  %v5256_v55 = vadd.f32 %v5255_v47, %v5143_v33 }
 0x628   : > { %v5146_v60 = vpop.f32.mrf.mxu0 }
 0x629   : > { %v6326_v61 = vpack.c.bf16 %v5385_v0, %v5384_v62  ;;  %v5258_v14 = vadd.f32 %v5257_v40, %v5145_v46  ;;  %v5147_v15 = vadd.f32 %v5146_v60, %v8830_v24  ;;  %v5259_v63 = vpop.f32.mrf.mxu1  ;;  %v5325_v45 = vmax.f32 %v5256_v55, 0.0 }
 0x62a   : > { %v5150_v9 = vpop.f32.mrf.mxu0  ;;  %v5388_v26 = vmin.f32 %v5324_v41, 2.0 }
 0x62b   : > { %5621 = vst [vmem:[%s8782_s18 + $0x98] sm:$0xff] %v6326_v61  ;;  %v5328_v52 = vmax.f32 %v5258_v14, 0.0  ;;  %v5260_v16 = vadd.f32 %v5259_v63, %v5147_v15  ;;  %v5151_v57 = vadd.f32 %v5150_v9, %v8825_v56  ;;  %v5263_v34 = vpop.f32.mrf.mxu1  ;;  %v5389_v18 = vmin.f32 %v5325_v45, 2.0 }
 0x62c   : > { %v5152_v51 = vpop.f32.mrf.mxu0 }
 0x62d   : > { %v5329_v48 = vmax.f32 %v5260_v16, 0.0  ;;  %v5264_v1 = vadd.f32 %v5263_v34, %v5151_v57  ;;  %v5153_v38 = vadd.f32 %v5152_v51, %v8830_v24  ;;  %v5265_v8 = vpop.f32.mrf.mxu1  ;;  %v6328_v54 = vpack.c.bf16 %v5389_v18, %v5388_v26 }
 0x62e   : > { %v5392_v43 = vmin.f32 %v5328_v52, 2.0  ;;  %v5154_v36 = vpop.f32.mrf.mxu0 }
 0x62f   : > { %v5393_v58 = vmin.f32 %v5329_v48, 2.0  ;;  %v5332_v28 = vmax.f32 %v5264_v1, 0.0  ;;  %v5266_v10 = vadd.f32 %v5265_v8, %v5153_v38  ;;  %v5155_v11 = vadd.f32 %v5154_v36, %v8825_v56  ;;  %v5267_v49 = vpop.f32.mrf.mxu1  ;;  %5623 = vst [vmem:[%s8782_s18 + $0xa8] sm:$0xff] %v6328_v54 }
 0x630   : > { %v5156_v27 = vpop.f32.mrf.mxu0 }
 0x631   : > { %v6330_v22 = vpack.c.bf16 %v5393_v58, %v5392_v43  ;;  %v5333_v23 = vmax.f32 %v5266_v10, 0.0  ;;  %v5268_v13 = vadd.f32 %v5267_v49, %v5155_v11  ;;  %v5269_v42 = vpop.f32.mrf.mxu1  ;;  %v5157_v35 = vadd.f32 %v5156_v27, %v8830_v24 }
 0x632   : > { %v5160_v2 = vpop.f32.mrf.mxu0  ;;  %v5396_v50 = vmin.f32 %v5332_v28, 2.0 }
 0x633   : > { %5625 = vst [vmem:[%s8782_s18 + $0xb8] sm:$0xff] %v6330_v22  ;;  %v5397_v19 = vmin.f32 %v5333_v23, 2.0  ;;  %v5161_v12 = vadd.f32 %v5160_v2, %v8825_v56  ;;  %v5273_v3 = vpop.f32.mrf.mxu1  ;;  %v5336_v25 = vmax.f32 %v5268_v13, 0.0  ;;  %v5270_v17 = vadd.f32 %v5269_v42, %v5157_v35 }
 0x634   : > { %v5162_v32 = vpop.f32.mrf.mxu0 }
 0x635   : > { %v6332_v4 = vpack.c.bf16 %v5397_v19, %v5396_v50  ;;  %v5274_v21 = vadd.f32 %v5273_v3, %v5161_v12  ;;  %v5163_v5 = vadd.f32 %v5162_v32, %v8830_v24  ;;  %v5275_v31 = vpop.f32.mrf.mxu1  ;;  %v5337_v7 = vmax.f32 %v5270_v17, 0.0 }
 0x636   : > { %v5164_v29 = vpop.f32.mrf.mxu0  ;;  %v5400_v44 = vmin.f32 %v5336_v25, 2.0 }
 0x637   : > { %5627 = vst [vmem:[%s8782_s18 + $0xc8] sm:$0xff] %v6332_v4  ;;  %v5340_v39 = vmax.f32 %v5274_v21, 0.0  ;;  %v5276_v30 = vadd.f32 %v5275_v31, %v5163_v5  ;;  %v5165_v53 = vadd.f32 %v5164_v29, %v8825_v56  ;;  %v5277_v20 = vpop.f32.mrf.mxu1  ;;  %v5401_v59 = vmin.f32 %v5337_v7, 2.0 }
 0x638   : > { %v5166_v37 = vpop.f32.mrf.mxu0 }
 0x639   : > { %v5341_v47 = vmax.f32 %v5276_v30, 0.0  ;;  %v5278_v33 = vadd.f32 %v5277_v20, %v5165_v53  ;;  %v5167_v6 = vadd.f32 %v5166_v37, %v8830_v24  ;;  %v6334_v62 = vpack.c.bf16 %v5401_v59, %v5400_v44  ;;  %v5279_v0 = vpop.f32.mrf.mxu1 }
 0x63a   : > { %v5404_v46 = vmin.f32 %v5340_v39, 2.0 }
 0x63b   : > { %v5405_v40 = vmin.f32 %v5341_v47, 2.0  ;;  %v5344_v41 = vmax.f32 %v5278_v33, 0.0  ;;  %v5280_v55 = vadd.f32 %v5279_v0, %v5167_v6  ;;  %5629 = vst [vmem:[%s8782_s18 + $0xd8] sm:$0xff] %v6334_v62 }
 0x63d   : > { %v6336_v60 = vpack.c.bf16 %v5405_v40, %v5404_v46  ;;  %v5345_v61 = vmax.f32 %v5280_v55, 0.0  ;;  %v5408_v56 = vmin.f32 %v5344_v41, 2.0 }
 0x63f   : > { %5631 = vst [vmem:[%s8782_s18 + $0xe8] sm:$0xff] %v6336_v60  ;;  %v5409_v14 = vmin.f32 %v5345_v61, 2.0 }
 0x641   : > { %v6338_v15 = vpack.c.bf16 %v5409_v14, %v5408_v56 }
 0x643   : > { %5633 = vst [vmem:[%s8782_s18 + $0xf8] sm:$0xff] %v6338_v15 }
 0x644 PF: > { %s29_s29 = sadd.s32 1, %s7357_s29  }
 0x645   : > { %p26_p11 = scmp.ge.s32.totalorder %s29_s29, 4  }
 0x647   :  { %28 = sbr.rel (!%p26_p11) target bundleno = 4 (0x4), region = 143 }
 0x64c   :  { %5675 = vsyncpa [#allocation3], 1 }
 0x64d   :  { %5677 = vsyncpa [#allocation3 + $0x1], 1 }
 0x64e   :  { %5678 = vsyncpa [#allocation5], 1 }
 0x64f   :  { %5679 = vsyncpa [#allocation8], 1 }
 0x650   :  { %5680 = vsyncpa [#allocation11], 1 }

</bundles_post_ra>
